<compile_context>
chip_gen: v5e
topology: v5e:2x2
jax: 0.10.0
libtpu: 0.0.40
codegen_flags: <defaults>
</compile_context>

<pallas_src>
import jax
import jax.numpy as jnp
import numpy as np
from jax.experimental import pallas as pl
from jax.experimental.pallas import tpu as pltpu

_VMEM = pl.BlockSpec(memory_space=pltpu.MemorySpace.VMEM)

# Static geometry of the PyTorch Net (fc1 = 20*3*3 pins the input to 3x32x32).
_H0 = 32
_K1, _C0, _C1 = 3, 3, 6        # conv1: 3 -> 6, 3x3
_K2, _C2 = 3, 16               # conv2: 6 -> 16, 3x3
_C3 = 20                       # conv3: 16 -> 20, 1x1
_HP1 = (_H0 - _K1 + 1) // 2    # 15   (conv1 pooled)
_HP2 = (_HP1 - _K2 + 1) // 2   # 6    (conv2 pooled, floor mode)
_HP3 = _HP2 // 2               # 3    (conv3 pooled)
_F = _C3 * _HP3 * _HP3         # 180
_D1, _D2, _D3 = 120, 84, 10
_D3P = 16                      # fc3 output rows padded to a sublane multiple


def _round_up(x, m):
    return (x + m - 1) // m * m


# ---------------------------------------------------------------------------
# The single fused kernel
# ---------------------------------------------------------------------------
def _net_kernel(p1_ref, w1_ref, b1_ref, w2_ref, b2_ref, s2_ref,
                w3_ref, b3_ref, s3_ref, w1u_ref, g0_ref,
                b1f_ref, w2f_ref, b2f_ref, w3f_ref, b3f_ref, o_ref):
    f32 = jnp.float32
    r1p = p1_ref.shape[1] // 4          # padded conv1 output positions (512)

    def shl(x, k):
        """Shift columns left by static k, zero-filling on the right."""
        if k == 0:
            return x
        pad = jnp.zeros((x.shape[0], k), x.dtype)
        return jnp.concatenate([x[:, k:], pad], axis=1)

    # ---- conv1 + bias + ReLU + 2x2 max-pool (corner slabs lane-concatenated)
    z1 = jnp.dot(w1_ref[...], p1_ref[...], preferred_element_type=f32)  # (6,4*r1p)
    a1 = jnp.maximum(jnp.maximum(z1[:, :r1p], z1[:, r1p:2 * r1p]),
                     jnp.maximum(z1[:, 2 * r1p:3 * r1p], z1[:, 3 * r1p:]))
    # max_i(relu(x_i + b)) == relu(max_i(x_i) + b)  (monotonicity)
    a1 = jnp.maximum(a1 + b1_ref[...], 0.0)                             # (6, r1p)

    # ---- conv2: one long (144,6)@(6,r1p) dot; k*k taps = lane shifts;
    #      2x2 pool corners = lane shifts + one selection matmul each.
    z2 = jnp.dot(w2_ref[...], a1, preferred_element_type=f32)           # (144, r1p)
    zsum = None
    for t in range(_K2 * _K2):
        di, dj = divmod(t, _K2)
        zt = shl(z2[_C2 * t:_C2 * (t + 1), :], di * _HP1 + dj)
        zsum = zt if zsum is None else zsum + zt                        # (16, r1p)
    p2 = None
    for p in range(2):
        for q in range(2):
            acc = jnp.dot(shl(zsum, p * _HP1 + q), s2_ref[...],
                          preferred_element_type=f32)                   # (16, r2p)
            p2 = acc if p2 is None else jnp.maximum(p2, acc)
    a2 = jnp.maximum(p2 + b2_ref[...], 0.0)                             # (16, r2p)

    # ---- conv3 (1x1) + bias + ReLU + 2x2 max-pool
    y3 = jnp.dot(w3_ref[...], a2, preferred_element_type=f32)           # (20, r2p)
    p3 = None
    for p in range(2):
        for q in range(2):
            acc = jnp.dot(shl(y3, p * _HP2 + q), s3_ref[...],
                          preferred_element_type=f32)                   # (20, r3p)
            p3 = acc if p3 is None else jnp.maximum(p3, acc)
    a3 = jnp.maximum(p3 + b3_ref[...], 0.0)                             # (20, r3p)

    # ---- flatten (CHW) folded into fc1 (transposed, lane-dense orientation)
    m = None
    for u in range(_HP3 * _HP3):
        mu = jnp.dot(w1u_ref[u], shl(a3, u), preferred_element_type=f32)  # (120, r3p)
        m = mu if m is None else m + mu
    h1 = jnp.dot(m, g0_ref[...], preferred_element_type=f32)            # (120, r3p)
    h1 = jnp.maximum(h1 + b1f_ref[...], 0.0)
    h2 = jnp.maximum(
        jnp.dot(w2f_ref[...], h1, preferred_element_type=f32) + b2f_ref[...], 0.0)
    out = jnp.dot(w3f_ref[...], h2, preferred_element_type=f32) + b3f_ref[...]
    o_ref[...] = out.astype(o_ref.dtype)                                # (16, r3p)


# ---------------------------------------------------------------------------
# XLA glue (fused under jit)
# ---------------------------------------------------------------------------
def _conv1_corner_slab(x):
    """(N,3,32,32) -> (27, 4*r1p) corner-concatenated, 128-padded patch slab."""
    n = x.shape[0]
    r1 = n * _HP1 * _HP1
    r1p = _round_up(r1, 128)
    xc = jnp.transpose(x, (1, 0, 2, 3))                  # (3, N, 32, 32)
    blocks = []
    for p in range(2):
        for q in range(2):
            feats = []
            for di in range(_K1):
                for dj in range(_K1):
                    s = xc[:, :, p + di:p + di + 2 * _HP1 - 1:2,
                           q + dj:q + dj + 2 * _HP1 - 1:2]  # (3, N, 15, 15)
                    feats.append(s.reshape(_C0, r1))
            blk = jnp.stack(feats, axis=1).reshape(_C0 * _K1 * _K1, r1)
            blocks.append(jnp.pad(blk, ((0, 0), (0, r1p - r1))))
    return jnp.concatenate(blocks, axis=1)


def _selection_constants(n):
    """0/1 gather matrices (trace-time constants, folded by XLA)."""
    r1p = _round_up(n * _HP1 * _HP1, 128)
    r2p = _round_up(n * _HP2 * _HP2, 128)
    r3p = _round_up(n * _HP3 * _HP3, 128)
    s2 = np.zeros((r1p, r2p), np.float32)                # conv2 stride-2 subsample
    for nn in range(n):
        for a in range(_HP2):
            for b in range(_HP2):
                s2[nn * _HP1 * _HP1 + 2 * a * _HP1 + 2 * b,
                   nn * _HP2 * _HP2 + a * _HP2 + b] = 1.0
    s3 = np.zeros((r2p, r3p), np.float32)                # conv3 stride-2 subsample
    for nn in range(n):
        for a in range(_HP3):
            for b in range(_HP3):
                s3[nn * _HP2 * _HP2 + 2 * a * _HP2 + 2 * b,
                   nn * _HP3 * _HP3 + a * _HP3 + b] = 1.0
    g0 = np.zeros((r3p, r3p), np.float32)                # pick column n*9 -> n
    for nn in range(n):
        g0[nn * _HP3 * _HP3, nn] = 1.0
    return jnp.asarray(s2), jnp.asarray(s3), jnp.asarray(g0)


@jax.jit
def net_forward(kp, x):
    n = x.shape[0]
    assert x.shape[1:] == (_C0, _H0, _H0)
    p1 = _conv1_corner_slab(x.astype(jnp.float32))
    s2, s3, g0 = _selection_constants(n)
    r3p = g0.shape[0]
    out_t = pl.pallas_call(
        _net_kernel,
        out_shape=jax.ShapeDtypeStruct((_D3P, r3p), jnp.float32),
        in_specs=[_VMEM] * 16,
        out_specs=_VMEM,
    )(p1, kp["w1"], kp["b1"], kp["w2"], kp["b2"], s2,
      kp["w3"], kp["b3"], s3, kp["w1u"], g0,
      kp["b1f"], kp["w2fT"], kp["b2f"], kp["w3fT"], kp["b3f"])
    return out_t[:_D3, :n].T                             # (N, 10)


# ---------------------------------------------------------------------------
# Parameters
# ---------------------------------------------------------------------------
def init_params(key):
    def u(k, shape, fan_in):
        bound = 1.0 / np.sqrt(fan_in)
        return jax.random.uniform(k, shape, jnp.float32, -bound, bound)

    ks = jax.random.split(key, 12)
    return {
        "conv1_w": u(ks[0], (_C1, _C0, _K1, _K1), _C0 * _K1 * _K1),
        "conv1_b": u(ks[1], (_C1,), _C0 * _K1 * _K1),
        "conv2_w": u(ks[2], (_C2, _C1, _K2, _K2), _C1 * _K2 * _K2),
        "conv2_b": u(ks[3], (_C2,), _C1 * _K2 * _K2),
        "conv3_w": u(ks[4], (_C3, _C2, 1, 1), _C2),
        "conv3_b": u(ks[5], (_C3,), _C2),
        # fc weights stored (in, out)
        "fc1_w": u(ks[6], (_F, _D1), _F), "fc1_b": u(ks[7], (_D1,), _F),
        "fc2_w": u(ks[8], (_D1, _D2), _D1), "fc2_b": u(ks[9], (_D2,), _D1),
        "fc3_w": u(ks[10], (_D2, _D3), _D2), "fc3_b": u(ks[11], (_D3,), _D2),
    }


def pack_params(p):
    """One-time conversion to kernel-ready layouts (no per-call reshapes)."""
    return {
        "w1": p["conv1_w"].reshape(_C1, _C0 * _K1 * _K1),
        "b1": p["conv1_b"].reshape(_C1, 1),
        # rows = tap*16 + cout, cols = cin
        "w2": jnp.transpose(p["conv2_w"], (2, 3, 0, 1)).reshape(_K2 * _K2 * _C2, _C1),
        "b2": p["conv2_b"].reshape(_C2, 1),
        "w3": p["conv3_w"].reshape(_C3, _C2),
        "b3": p["conv3_b"].reshape(_C3, 1),
        # w1u[u, out, c] = fc1_w[c*9 + u, out]
        "w1u": jnp.transpose(p["fc1_w"].reshape(_C3, _HP3 * _HP3, _D1), (1, 2, 0)),
        "b1f": p["fc1_b"].reshape(_D1, 1),
        "w2fT": p["fc2_w"].T,
        "b2f": p["fc2_b"].reshape(_D2, 1),
        "w3fT": jnp.pad(p["fc3_w"].T, ((0, _D3P - _D3), (0, 0))),
        "b3f": jnp.pad(p["fc3_b"].reshape(_D3, 1), ((0, _D3P - _D3), (0, 0))),
    }


# Pure-JAX f32 reference (correctness check only).
def net_reference(params, x):
    def conv(x, w, b):
        y = jax.lax.conv_general_dilated(
            x, w, (1, 1), "VALID", dimension_numbers=("NCHW", "OIHW", "NCHW"))
        return jax.nn.relu(y + b[None, :, None, None])

    def pool(x):
        return jax.lax.reduce_window(
            x, -jnp.inf, jax.lax.max, (1, 1, 2, 2), (1, 1, 2, 2), "VALID")

    x = pool(conv(x, params["conv1_w"], params["conv1_b"]))
    x = pool(conv(x, params["conv2_w"], params["conv2_b"]))
    x = pool(conv(x, params["conv3_w"], params["conv3_b"]))
    x = x.reshape(x.shape[0], -1)
    x = jax.nn.relu(x @ params["fc1_w"] + params["fc1_b"])
    x = jax.nn.relu(x @ params["fc2_w"] + params["fc2_b"])
    return x @ params["fc3_w"] + params["fc3_b"]


if __name__ == "__main__":
    key = jax.random.PRNGKey(0)
    pkey, xkey = jax.random.split(key)
    params = init_params(pkey)
    kparams = pack_params(params)
    # fc1 expects 20*3*3 = 180 flat features -> input is 3x32x32 (CIFAR-10).
    x = jax.random.normal(xkey, (2, 3, 32, 32), jnp.float32)

    out = jax.block_until_ready(net_forward(kparams, x))
    assert out.shape == (2, 10), out.shape

    ref = jax.block_until_ready(net_reference(params, x))
    np.testing.assert_allclose(np.asarray(out), np.asarray(ref),
                               rtol=3e-2, atol=3e-2)
    print("KERNEL_OK")
</pallas_src>

<mosaic_0001>
module attributes {stable_mosaic.version = 11 : i64} {
  func.func @_net_kernel(%arg0: memref<27x2048xf32, #tpu.memory_space<vmem>>, %arg1: memref<6x27xf32, #tpu.memory_space<vmem>>, %arg2: memref<6x1xf32, #tpu.memory_space<vmem>>, %arg3: memref<144x6xf32, #tpu.memory_space<vmem>>, %arg4: memref<16x1xf32, #tpu.memory_space<vmem>>, %arg5: memref<512x128xf32, #tpu.memory_space<vmem>>, %arg6: memref<20x16xf32, #tpu.memory_space<vmem>>, %arg7: memref<20x1xf32, #tpu.memory_space<vmem>>, %arg8: memref<128x128xf32, #tpu.memory_space<vmem>>, %arg9: memref<9x120x20xf32, #tpu.memory_space<vmem>>, %arg10: memref<128x128xf32, #tpu.memory_space<vmem>>, %arg11: memref<120x1xf32, #tpu.memory_space<vmem>>, %arg12: memref<84x120xf32, #tpu.memory_space<vmem>>, %arg13: memref<84x1xf32, #tpu.memory_space<vmem>>, %arg14: memref<16x84xf32, #tpu.memory_space<vmem>>, %arg15: memref<16x1xf32, #tpu.memory_space<vmem>>, %arg16: memref<16x128xf32, #tpu.memory_space<vmem>>) attributes {dimension_semantics = [], scalar_prefetch = 0 : i64, scratch_operands = 0 : i64, tpu.core_type = #tpu.core_type<tc>} {
    %c0 = arith.constant 0 : index
    %c0_0 = arith.constant 0 : index
    %0 = vector.load %arg1[%c0, %c0_0] : memref<6x27xf32, #tpu.memory_space<vmem>>, vector<6x27xf32>
    %c0_1 = arith.constant 0 : index
    %c0_2 = arith.constant 0 : index
    %1 = vector.load %arg0[%c0_1, %c0_2] : memref<27x2048xf32, #tpu.memory_space<vmem>>, vector<27x2048xf32>
    %cst = arith.constant dense<0.000000e+00> : vector<6x2048xf32>
    %2 = tpu.matmul %0, %1, %cst {dimension_numbers = #tpu.dot_dimension_numbers<[1], [0], [0], [1], [0, 0, 1, 1], [], []>} : vector<6x27xf32>, vector<27x2048xf32>, vector<6x2048xf32> -> vector<6x2048xf32>
    %3 = vector.extract_strided_slice %2 {offsets = [0, 0], sizes = [6, 512], strides = [1, 1]} : vector<6x2048xf32> to vector<6x512xf32>
    %4 = vector.extract_strided_slice %2 {offsets = [0, 512], sizes = [6, 512], strides = [1, 1]} : vector<6x2048xf32> to vector<6x512xf32>
    %5 = arith.maximumf %3, %4 : vector<6x512xf32>
    %6 = vector.extract_strided_slice %2 {offsets = [0, 1024], sizes = [6, 512], strides = [1, 1]} : vector<6x2048xf32> to vector<6x512xf32>
    %7 = vector.extract_strided_slice %2 {offsets = [0, 1536], sizes = [6, 512], strides = [1, 1]} : vector<6x2048xf32> to vector<6x512xf32>
    %8 = arith.maximumf %6, %7 : vector<6x512xf32>
    %9 = arith.maximumf %5, %8 : vector<6x512xf32>
    %c0_3 = arith.constant 0 : index
    %c0_4 = arith.constant 0 : index
    %10 = vector.load %arg2[%c0_3, %c0_4] : memref<6x1xf32, #tpu.memory_space<vmem>>, vector<6x1xf32>
    %11 = vector.broadcast %10 : vector<6x1xf32> to vector<6x512xf32>
    %12 = arith.addf %9, %11 : vector<6x512xf32>
    %cst_5 = arith.constant 0.000000e+00 : f32
    %13 = vector.broadcast %cst_5 : f32 to vector<6x512xf32>
    %14 = arith.maximumf %12, %13 : vector<6x512xf32>
    %c0_6 = arith.constant 0 : index
    %c0_7 = arith.constant 0 : index
    %15 = vector.load %arg3[%c0_6, %c0_7] : memref<144x6xf32, #tpu.memory_space<vmem>>, vector<144x6xf32>
    %cst_8 = arith.constant dense<0.000000e+00> : vector<144x512xf32>
    %16 = tpu.matmul %15, %14, %cst_8 {dimension_numbers = #tpu.dot_dimension_numbers<[1], [0], [0], [1], [0, 0, 1, 1], [], []>} : vector<144x6xf32>, vector<6x512xf32>, vector<144x512xf32> -> vector<144x512xf32>
    %17 = vector.extract_strided_slice %16 {offsets = [0, 0], sizes = [16, 512], strides = [1, 1]} : vector<144x512xf32> to vector<16x512xf32>
    %18 = vector.extract_strided_slice %16 {offsets = [16, 0], sizes = [16, 512], strides = [1, 1]} : vector<144x512xf32> to vector<16x512xf32>
    %cst_9 = arith.constant 0.000000e+00 : f32
    %19 = vector.broadcast %cst_9 : f32 to vector<16x1xf32>
    %20 = vector.extract_strided_slice %18 {offsets = [0, 1], sizes = [16, 511], strides = [1, 1]} : vector<16x512xf32> to vector<16x511xf32>
    %21 = tpu.concatenate %20, %19 in 1 : vector<16x511xf32>, vector<16x1xf32> -> vector<16x512xf32>
    %22 = arith.addf %17, %21 : vector<16x512xf32>
    %23 = vector.extract_strided_slice %16 {offsets = [32, 0], sizes = [16, 512], strides = [1, 1]} : vector<144x512xf32> to vector<16x512xf32>
    %cst_10 = arith.constant 0.000000e+00 : f32
    %24 = vector.broadcast %cst_10 : f32 to vector<16x2xf32>
    %25 = vector.extract_strided_slice %23 {offsets = [0, 2], sizes = [16, 510], strides = [1, 1]} : vector<16x512xf32> to vector<16x510xf32>
    %26 = tpu.concatenate %25, %24 in 1 : vector<16x510xf32>, vector<16x2xf32> -> vector<16x512xf32>
    %27 = arith.addf %22, %26 : vector<16x512xf32>
    %28 = vector.extract_strided_slice %16 {offsets = [48, 0], sizes = [16, 512], strides = [1, 1]} : vector<144x512xf32> to vector<16x512xf32>
    %cst_11 = arith.constant 0.000000e+00 : f32
    %29 = vector.broadcast %cst_11 : f32 to vector<16x15xf32>
    %30 = vector.extract_strided_slice %28 {offsets = [0, 15], sizes = [16, 497], strides = [1, 1]} : vector<16x512xf32> to vector<16x497xf32>
    %31 = tpu.concatenate %30, %29 in 1 : vector<16x497xf32>, vector<16x15xf32> -> vector<16x512xf32>
    %32 = arith.addf %27, %31 : vector<16x512xf32>
    %33 = vector.extract_strided_slice %16 {offsets = [64, 0], sizes = [16, 512], strides = [1, 1]} : vector<144x512xf32> to vector<16x512xf32>
    %cst_12 = arith.constant 0.000000e+00 : f32
    %34 = vector.broadcast %cst_12 : f32 to vector<16x16xf32>
    %35 = vector.extract_strided_slice %33 {offsets = [0, 16], sizes = [16, 496], strides = [1, 1]} : vector<16x512xf32> to vector<16x496xf32>
    %36 = tpu.concatenate %35, %34 in 1 : vector<16x496xf32>, vector<16x16xf32> -> vector<16x512xf32>
    %37 = arith.addf %32, %36 : vector<16x512xf32>
    %38 = vector.extract_strided_slice %16 {offsets = [80, 0], sizes = [16, 512], strides = [1, 1]} : vector<144x512xf32> to vector<16x512xf32>
    %cst_13 = arith.constant 0.000000e+00 : f32
    %39 = vector.broadcast %cst_13 : f32 to vector<16x17xf32>
    %40 = vector.extract_strided_slice %38 {offsets = [0, 17], sizes = [16, 495], strides = [1, 1]} : vector<16x512xf32> to vector<16x495xf32>
    %41 = tpu.concatenate %40, %39 in 1 : vector<16x495xf32>, vector<16x17xf32> -> vector<16x512xf32>
    %42 = arith.addf %37, %41 : vector<16x512xf32>
    %43 = vector.extract_strided_slice %16 {offsets = [96, 0], sizes = [16, 512], strides = [1, 1]} : vector<144x512xf32> to vector<16x512xf32>
    %cst_14 = arith.constant 0.000000e+00 : f32
    %44 = vector.broadcast %cst_14 : f32 to vector<16x30xf32>
    %45 = vector.extract_strided_slice %43 {offsets = [0, 30], sizes = [16, 482], strides = [1, 1]} : vector<16x512xf32> to vector<16x482xf32>
    %46 = tpu.concatenate %45, %44 in 1 : vector<16x482xf32>, vector<16x30xf32> -> vector<16x512xf32>
    %47 = arith.addf %42, %46 : vector<16x512xf32>
    %48 = vector.extract_strided_slice %16 {offsets = [112, 0], sizes = [16, 512], strides = [1, 1]} : vector<144x512xf32> to vector<16x512xf32>
    %cst_15 = arith.constant 0.000000e+00 : f32
    %49 = vector.broadcast %cst_15 : f32 to vector<16x31xf32>
    %50 = vector.extract_strided_slice %48 {offsets = [0, 31], sizes = [16, 481], strides = [1, 1]} : vector<16x512xf32> to vector<16x481xf32>
    %51 = tpu.concatenate %50, %49 in 1 : vector<16x481xf32>, vector<16x31xf32> -> vector<16x512xf32>
    %52 = arith.addf %47, %51 : vector<16x512xf32>
    %53 = vector.extract_strided_slice %16 {offsets = [128, 0], sizes = [16, 512], strides = [1, 1]} : vector<144x512xf32> to vector<16x512xf32>
    %cst_16 = arith.constant 0.000000e+00 : f32
    %54 = vector.broadcast %cst_16 : f32 to vector<16x32xf32>
    %55 = vector.extract_strided_slice %53 {offsets = [0, 32], sizes = [16, 480], strides = [1, 1]} : vector<16x512xf32> to vector<16x480xf32>
    %56 = tpu.concatenate %55, %54 in 1 : vector<16x480xf32>, vector<16x32xf32> -> vector<16x512xf32>
    %57 = arith.addf %52, %56 : vector<16x512xf32>
    %c0_17 = arith.constant 0 : index
    %c0_18 = arith.constant 0 : index
    %58 = vector.load %arg5[%c0_17, %c0_18] : memref<512x128xf32, #tpu.memory_space<vmem>>, vector<512x128xf32>
    %cst_19 = arith.constant dense<0.000000e+00> : vector<16x128xf32>
    %59 = tpu.matmul %57, %58, %cst_19 {dimension_numbers = #tpu.dot_dimension_numbers<[1], [0], [0], [1], [0, 0, 1, 1], [], []>} : vector<16x512xf32>, vector<512x128xf32>, vector<16x128xf32> -> vector<16x128xf32>
    %cst_20 = arith.constant 0.000000e+00 : f32
    %60 = vector.broadcast %cst_20 : f32 to vector<16x1xf32>
    %61 = vector.extract_strided_slice %57 {offsets = [0, 1], sizes = [16, 511], strides = [1, 1]} : vector<16x512xf32> to vector<16x511xf32>
    %62 = tpu.concatenate %61, %60 in 1 : vector<16x511xf32>, vector<16x1xf32> -> vector<16x512xf32>
    %c0_21 = arith.constant 0 : index
    %c0_22 = arith.constant 0 : index
    %63 = vector.load %arg5[%c0_21, %c0_22] : memref<512x128xf32, #tpu.memory_space<vmem>>, vector<512x128xf32>
    %cst_23 = arith.constant dense<0.000000e+00> : vector<16x128xf32>
    %64 = tpu.matmul %62, %63, %cst_23 {dimension_numbers = #tpu.dot_dimension_numbers<[1], [0], [0], [1], [0, 0, 1, 1], [], []>} : vector<16x512xf32>, vector<512x128xf32>, vector<16x128xf32> -> vector<16x128xf32>
    %65 = arith.maximumf %59, %64 : vector<16x128xf32>
    %cst_24 = arith.constant 0.000000e+00 : f32
    %66 = vector.broadcast %cst_24 : f32 to vector<16x15xf32>
    %67 = vector.extract_strided_slice %57 {offsets = [0, 15], sizes = [16, 497], strides = [1, 1]} : vector<16x512xf32> to vector<16x497xf32>
    %68 = tpu.concatenate %67, %66 in 1 : vector<16x497xf32>, vector<16x15xf32> -> vector<16x512xf32>
    %c0_25 = arith.constant 0 : index
    %c0_26 = arith.constant 0 : index
    %69 = vector.load %arg5[%c0_25, %c0_26] : memref<512x128xf32, #tpu.memory_space<vmem>>, vector<512x128xf32>
    %cst_27 = arith.constant dense<0.000000e+00> : vector<16x128xf32>
    %70 = tpu.matmul %68, %69, %cst_27 {dimension_numbers = #tpu.dot_dimension_numbers<[1], [0], [0], [1], [0, 0, 1, 1], [], []>} : vector<16x512xf32>, vector<512x128xf32>, vector<16x128xf32> -> vector<16x128xf32>
    %71 = arith.maximumf %65, %70 : vector<16x128xf32>
    %cst_28 = arith.constant 0.000000e+00 : f32
    %72 = vector.broadcast %cst_28 : f32 to vector<16x16xf32>
    %73 = vector.extract_strided_slice %57 {offsets = [0, 16], sizes = [16, 496], strides = [1, 1]} : vector<16x512xf32> to vector<16x496xf32>
    %74 = tpu.concatenate %73, %72 in 1 : vector<16x496xf32>, vector<16x16xf32> -> vector<16x512xf32>
    %c0_29 = arith.constant 0 : index
    %c0_30 = arith.constant 0 : index
    %75 = vector.load %arg5[%c0_29, %c0_30] : memref<512x128xf32, #tpu.memory_space<vmem>>, vector<512x128xf32>
    %cst_31 = arith.constant dense<0.000000e+00> : vector<16x128xf32>
    %76 = tpu.matmul %74, %75, %cst_31 {dimension_numbers = #tpu.dot_dimension_numbers<[1], [0], [0], [1], [0, 0, 1, 1], [], []>} : vector<16x512xf32>, vector<512x128xf32>, vector<16x128xf32> -> vector<16x128xf32>
    %77 = arith.maximumf %71, %76 : vector<16x128xf32>
    %c0_32 = arith.constant 0 : index
    %c0_33 = arith.constant 0 : index
    %78 = vector.load %arg4[%c0_32, %c0_33] : memref<16x1xf32, #tpu.memory_space<vmem>>, vector<16x1xf32>
    %79 = vector.broadcast %78 : vector<16x1xf32> to vector<16x128xf32>
    %80 = arith.addf %77, %79 : vector<16x128xf32>
    %cst_34 = arith.constant 0.000000e+00 : f32
    %81 = vector.broadcast %cst_34 : f32 to vector<16x128xf32>
    %82 = arith.maximumf %80, %81 : vector<16x128xf32>
    %c0_35 = arith.constant 0 : index
    %c0_36 = arith.constant 0 : index
    %83 = vector.load %arg6[%c0_35, %c0_36] : memref<20x16xf32, #tpu.memory_space<vmem>>, vector<20x16xf32>
    %cst_37 = arith.constant dense<0.000000e+00> : vector<20x128xf32>
    %84 = tpu.matmul %83, %82, %cst_37 {dimension_numbers = #tpu.dot_dimension_numbers<[1], [0], [0], [1], [0, 0, 1, 1], [], []>} : vector<20x16xf32>, vector<16x128xf32>, vector<20x128xf32> -> vector<20x128xf32>
    %c0_38 = arith.constant 0 : index
    %c0_39 = arith.constant 0 : index
    %85 = vector.load %arg8[%c0_38, %c0_39] : memref<128x128xf32, #tpu.memory_space<vmem>>, vector<128x128xf32>
    %cst_40 = arith.constant dense<0.000000e+00> : vector<20x128xf32>
    %86 = tpu.matmul %84, %85, %cst_40 {dimension_numbers = #tpu.dot_dimension_numbers<[1], [0], [0], [1], [0, 0, 1, 1], [], []>} : vector<20x128xf32>, vector<128x128xf32>, vector<20x128xf32> -> vector<20x128xf32>
    %cst_41 = arith.constant 0.000000e+00 : f32
    %87 = vector.broadcast %cst_41 : f32 to vector<20x1xf32>
    %88 = vector.extract_strided_slice %84 {offsets = [0, 1], sizes = [20, 127], strides = [1, 1]} : vector<20x128xf32> to vector<20x127xf32>
    %89 = tpu.concatenate %88, %87 in 1 : vector<20x127xf32>, vector<20x1xf32> -> vector<20x128xf32>
    %c0_42 = arith.constant 0 : index
    %c0_43 = arith.constant 0 : index
    %90 = vector.load %arg8[%c0_42, %c0_43] : memref<128x128xf32, #tpu.memory_space<vmem>>, vector<128x128xf32>
    %cst_44 = arith.constant dense<0.000000e+00> : vector<20x128xf32>
    %91 = tpu.matmul %89, %90, %cst_44 {dimension_numbers = #tpu.dot_dimension_numbers<[1], [0], [0], [1], [0, 0, 1, 1], [], []>} : vector<20x128xf32>, vector<128x128xf32>, vector<20x128xf32> -> vector<20x128xf32>
    %92 = arith.maximumf %86, %91 : vector<20x128xf32>
    %cst_45 = arith.constant 0.000000e+00 : f32
    %93 = vector.broadcast %cst_45 : f32 to vector<20x6xf32>
    %94 = vector.extract_strided_slice %84 {offsets = [0, 6], sizes = [20, 122], strides = [1, 1]} : vector<20x128xf32> to vector<20x122xf32>
    %95 = tpu.concatenate %94, %93 in 1 : vector<20x122xf32>, vector<20x6xf32> -> vector<20x128xf32>
    %c0_46 = arith.constant 0 : index
    %c0_47 = arith.constant 0 : index
    %96 = vector.load %arg8[%c0_46, %c0_47] : memref<128x128xf32, #tpu.memory_space<vmem>>, vector<128x128xf32>
    %cst_48 = arith.constant dense<0.000000e+00> : vector<20x128xf32>
    %97 = tpu.matmul %95, %96, %cst_48 {dimension_numbers = #tpu.dot_dimension_numbers<[1], [0], [0], [1], [0, 0, 1, 1], [], []>} : vector<20x128xf32>, vector<128x128xf32>, vector<20x128xf32> -> vector<20x128xf32>
    %98 = arith.maximumf %92, %97 : vector<20x128xf32>
    %cst_49 = arith.constant 0.000000e+00 : f32
    %99 = vector.broadcast %cst_49 : f32 to vector<20x7xf32>
    %100 = vector.extract_strided_slice %84 {offsets = [0, 7], sizes = [20, 121], strides = [1, 1]} : vector<20x128xf32> to vector<20x121xf32>
    %101 = tpu.concatenate %100, %99 in 1 : vector<20x121xf32>, vector<20x7xf32> -> vector<20x128xf32>
    %c0_50 = arith.constant 0 : index
    %c0_51 = arith.constant 0 : index
    %102 = vector.load %arg8[%c0_50, %c0_51] : memref<128x128xf32, #tpu.memory_space<vmem>>, vector<128x128xf32>
    %cst_52 = arith.constant dense<0.000000e+00> : vector<20x128xf32>
    %103 = tpu.matmul %101, %102, %cst_52 {dimension_numbers = #tpu.dot_dimension_numbers<[1], [0], [0], [1], [0, 0, 1, 1], [], []>} : vector<20x128xf32>, vector<128x128xf32>, vector<20x128xf32> -> vector<20x128xf32>
    %104 = arith.maximumf %98, %103 : vector<20x128xf32>
    %c0_53 = arith.constant 0 : index
    %c0_54 = arith.constant 0 : index
    %105 = vector.load %arg7[%c0_53, %c0_54] : memref<20x1xf32, #tpu.memory_space<vmem>>, vector<20x1xf32>
    %106 = vector.broadcast %105 : vector<20x1xf32> to vector<20x128xf32>
    %107 = arith.addf %104, %106 : vector<20x128xf32>
    %cst_55 = arith.constant 0.000000e+00 : f32
    %108 = vector.broadcast %cst_55 : f32 to vector<20x128xf32>
    %109 = arith.maximumf %107, %108 : vector<20x128xf32>
    %c0_56 = arith.constant 0 : index
    %c0_57 = arith.constant 0 : index
    %c0_58 = arith.constant 0 : index
    %110 = vector.load %arg9[%c0_56, %c0_57, %c0_58] : memref<9x120x20xf32, #tpu.memory_space<vmem>>, vector<1x120x20xf32>
    %111 = vector.shape_cast %110 : vector<1x120x20xf32> to vector<120x20xf32>
    %cst_59 = arith.constant dense<0.000000e+00> : vector<120x128xf32>
    %112 = tpu.matmul %111, %109, %cst_59 {dimension_numbers = #tpu.dot_dimension_numbers<[1], [0], [0], [1], [0, 0, 1, 1], [], []>} : vector<120x20xf32>, vector<20x128xf32>, vector<120x128xf32> -> vector<120x128xf32>
    %c1 = arith.constant 1 : index
    %c0_60 = arith.constant 0 : index
    %c0_61 = arith.constant 0 : index
    %113 = vector.load %arg9[%c1, %c0_60, %c0_61] : memref<9x120x20xf32, #tpu.memory_space<vmem>>, vector<1x120x20xf32>
    %114 = vector.shape_cast %113 : vector<1x120x20xf32> to vector<120x20xf32>
    %cst_62 = arith.constant 0.000000e+00 : f32
    %115 = vector.broadcast %cst_62 : f32 to vector<20x1xf32>
    %116 = vector.extract_strided_slice %109 {offsets = [0, 1], sizes = [20, 127], strides = [1, 1]} : vector<20x128xf32> to vector<20x127xf32>
    %117 = tpu.concatenate %116, %115 in 1 : vector<20x127xf32>, vector<20x1xf32> -> vector<20x128xf32>
    %cst_63 = arith.constant dense<0.000000e+00> : vector<120x128xf32>
    %118 = tpu.matmul %114, %117, %cst_63 {dimension_numbers = #tpu.dot_dimension_numbers<[1], [0], [0], [1], [0, 0, 1, 1], [], []>} : vector<120x20xf32>, vector<20x128xf32>, vector<120x128xf32> -> vector<120x128xf32>
    %119 = arith.addf %112, %118 : vector<120x128xf32>
    %c2 = arith.constant 2 : index
    %c0_64 = arith.constant 0 : index
    %c0_65 = arith.constant 0 : index
    %120 = vector.load %arg9[%c2, %c0_64, %c0_65] : memref<9x120x20xf32, #tpu.memory_space<vmem>>, vector<1x120x20xf32>
    %121 = vector.shape_cast %120 : vector<1x120x20xf32> to vector<120x20xf32>
    %cst_66 = arith.constant 0.000000e+00 : f32
    %122 = vector.broadcast %cst_66 : f32 to vector<20x2xf32>
    %123 = vector.extract_strided_slice %109 {offsets = [0, 2], sizes = [20, 126], strides = [1, 1]} : vector<20x128xf32> to vector<20x126xf32>
    %124 = tpu.concatenate %123, %122 in 1 : vector<20x126xf32>, vector<20x2xf32> -> vector<20x128xf32>
    %cst_67 = arith.constant dense<0.000000e+00> : vector<120x128xf32>
    %125 = tpu.matmul %121, %124, %cst_67 {dimension_numbers = #tpu.dot_dimension_numbers<[1], [0], [0], [1], [0, 0, 1, 1], [], []>} : vector<120x20xf32>, vector<20x128xf32>, vector<120x128xf32> -> vector<120x128xf32>
    %126 = arith.addf %119, %125 : vector<120x128xf32>
    %c3 = arith.constant 3 : index
    %c0_68 = arith.constant 0 : index
    %c0_69 = arith.constant 0 : index
    %127 = vector.load %arg9[%c3, %c0_68, %c0_69] : memref<9x120x20xf32, #tpu.memory_space<vmem>>, vector<1x120x20xf32>
    %128 = vector.shape_cast %127 : vector<1x120x20xf32> to vector<120x20xf32>
    %cst_70 = arith.constant 0.000000e+00 : f32
    %129 = vector.broadcast %cst_70 : f32 to vector<20x3xf32>
    %130 = vector.extract_strided_slice %109 {offsets = [0, 3], sizes = [20, 125], strides = [1, 1]} : vector<20x128xf32> to vector<20x125xf32>
    %131 = tpu.concatenate %130, %129 in 1 : vector<20x125xf32>, vector<20x3xf32> -> vector<20x128xf32>
    %cst_71 = arith.constant dense<0.000000e+00> : vector<120x128xf32>
    %132 = tpu.matmul %128, %131, %cst_71 {dimension_numbers = #tpu.dot_dimension_numbers<[1], [0], [0], [1], [0, 0, 1, 1], [], []>} : vector<120x20xf32>, vector<20x128xf32>, vector<120x128xf32> -> vector<120x128xf32>
    %133 = arith.addf %126, %132 : vector<120x128xf32>
    %c4 = arith.constant 4 : index
    %c0_72 = arith.constant 0 : index
    %c0_73 = arith.constant 0 : index
    %134 = vector.load %arg9[%c4, %c0_72, %c0_73] : memref<9x120x20xf32, #tpu.memory_space<vmem>>, vector<1x120x20xf32>
    %135 = vector.shape_cast %134 : vector<1x120x20xf32> to vector<120x20xf32>
    %cst_74 = arith.constant 0.000000e+00 : f32
    %136 = vector.broadcast %cst_74 : f32 to vector<20x4xf32>
    %137 = vector.extract_strided_slice %109 {offsets = [0, 4], sizes = [20, 124], strides = [1, 1]} : vector<20x128xf32> to vector<20x124xf32>
    %138 = tpu.concatenate %137, %136 in 1 : vector<20x124xf32>, vector<20x4xf32> -> vector<20x128xf32>
    %cst_75 = arith.constant dense<0.000000e+00> : vector<120x128xf32>
    %139 = tpu.matmul %135, %138, %cst_75 {dimension_numbers = #tpu.dot_dimension_numbers<[1], [0], [0], [1], [0, 0, 1, 1], [], []>} : vector<120x20xf32>, vector<20x128xf32>, vector<120x128xf32> -> vector<120x128xf32>
    %140 = arith.addf %133, %139 : vector<120x128xf32>
    %c5 = arith.constant 5 : index
    %c0_76 = arith.constant 0 : index
    %c0_77 = arith.constant 0 : index
    %141 = vector.load %arg9[%c5, %c0_76, %c0_77] : memref<9x120x20xf32, #tpu.memory_space<vmem>>, vector<1x120x20xf32>
    %142 = vector.shape_cast %141 : vector<1x120x20xf32> to vector<120x20xf32>
    %cst_78 = arith.constant 0.000000e+00 : f32
    %143 = vector.broadcast %cst_78 : f32 to vector<20x5xf32>
    %144 = vector.extract_strided_slice %109 {offsets = [0, 5], sizes = [20, 123], strides = [1, 1]} : vector<20x128xf32> to vector<20x123xf32>
    %145 = tpu.concatenate %144, %143 in 1 : vector<20x123xf32>, vector<20x5xf32> -> vector<20x128xf32>
    %cst_79 = arith.constant dense<0.000000e+00> : vector<120x128xf32>
    %146 = tpu.matmul %142, %145, %cst_79 {dimension_numbers = #tpu.dot_dimension_numbers<[1], [0], [0], [1], [0, 0, 1, 1], [], []>} : vector<120x20xf32>, vector<20x128xf32>, vector<120x128xf32> -> vector<120x128xf32>
    %147 = arith.addf %140, %146 : vector<120x128xf32>
    %c6 = arith.constant 6 : index
    %c0_80 = arith.constant 0 : index
    %c0_81 = arith.constant 0 : index
    %148 = vector.load %arg9[%c6, %c0_80, %c0_81] : memref<9x120x20xf32, #tpu.memory_space<vmem>>, vector<1x120x20xf32>
    %149 = vector.shape_cast %148 : vector<1x120x20xf32> to vector<120x20xf32>
    %cst_82 = arith.constant 0.000000e+00 : f32
    %150 = vector.broadcast %cst_82 : f32 to vector<20x6xf32>
    %151 = vector.extract_strided_slice %109 {offsets = [0, 6], sizes = [20, 122], strides = [1, 1]} : vector<20x128xf32> to vector<20x122xf32>
    %152 = tpu.concatenate %151, %150 in 1 : vector<20x122xf32>, vector<20x6xf32> -> vector<20x128xf32>
    %cst_83 = arith.constant dense<0.000000e+00> : vector<120x128xf32>
    %153 = tpu.matmul %149, %152, %cst_83 {dimension_numbers = #tpu.dot_dimension_numbers<[1], [0], [0], [1], [0, 0, 1, 1], [], []>} : vector<120x20xf32>, vector<20x128xf32>, vector<120x128xf32> -> vector<120x128xf32>
    %154 = arith.addf %147, %153 : vector<120x128xf32>
    %c7 = arith.constant 7 : index
    %c0_84 = arith.constant 0 : index
    %c0_85 = arith.constant 0 : index
    %155 = vector.load %arg9[%c7, %c0_84, %c0_85] : memref<9x120x20xf32, #tpu.memory_space<vmem>>, vector<1x120x20xf32>
    %156 = vector.shape_cast %155 : vector<1x120x20xf32> to vector<120x20xf32>
    %cst_86 = arith.constant 0.000000e+00 : f32
    %157 = vector.broadcast %cst_86 : f32 to vector<20x7xf32>
    %158 = vector.extract_strided_slice %109 {offsets = [0, 7], sizes = [20, 121], strides = [1, 1]} : vector<20x128xf32> to vector<20x121xf32>
    %159 = tpu.concatenate %158, %157 in 1 : vector<20x121xf32>, vector<20x7xf32> -> vector<20x128xf32>
    %cst_87 = arith.constant dense<0.000000e+00> : vector<120x128xf32>
    %160 = tpu.matmul %156, %159, %cst_87 {dimension_numbers = #tpu.dot_dimension_numbers<[1], [0], [0], [1], [0, 0, 1, 1], [], []>} : vector<120x20xf32>, vector<20x128xf32>, vector<120x128xf32> -> vector<120x128xf32>
    %161 = arith.addf %154, %160 : vector<120x128xf32>
    %c8 = arith.constant 8 : index
    %c0_88 = arith.constant 0 : index
    %c0_89 = arith.constant 0 : index
    %162 = vector.load %arg9[%c8, %c0_88, %c0_89] : memref<9x120x20xf32, #tpu.memory_space<vmem>>, vector<1x120x20xf32>
    %163 = vector.shape_cast %162 : vector<1x120x20xf32> to vector<120x20xf32>
    %cst_90 = arith.constant 0.000000e+00 : f32
    %164 = vector.broadcast %cst_90 : f32 to vector<20x8xf32>
    %165 = vector.extract_strided_slice %109 {offsets = [0, 8], sizes = [20, 120], strides = [1, 1]} : vector<20x128xf32> to vector<20x120xf32>
    %166 = tpu.concatenate %165, %164 in 1 : vector<20x120xf32>, vector<20x8xf32> -> vector<20x128xf32>
    %cst_91 = arith.constant dense<0.000000e+00> : vector<120x128xf32>
    %167 = tpu.matmul %163, %166, %cst_91 {dimension_numbers = #tpu.dot_dimension_numbers<[1], [0], [0], [1], [0, 0, 1, 1], [], []>} : vector<120x20xf32>, vector<20x128xf32>, vector<120x128xf32> -> vector<120x128xf32>
    %168 = arith.addf %161, %167 : vector<120x128xf32>
    %c0_92 = arith.constant 0 : index
    %c0_93 = arith.constant 0 : index
    %169 = vector.load %arg10[%c0_92, %c0_93] : memref<128x128xf32, #tpu.memory_space<vmem>>, vector<128x128xf32>
    %cst_94 = arith.constant dense<0.000000e+00> : vector<120x128xf32>
    %170 = tpu.matmul %168, %169, %cst_94 {dimension_numbers = #tpu.dot_dimension_numbers<[1], [0], [0], [1], [0, 0, 1, 1], [], []>} : vector<120x128xf32>, vector<128x128xf32>, vector<120x128xf32> -> vector<120x128xf32>
    %c0_95 = arith.constant 0 : index
    %c0_96 = arith.constant 0 : index
    %171 = vector.load %arg11[%c0_95, %c0_96] : memref<120x1xf32, #tpu.memory_space<vmem>>, vector<120x1xf32>
    %172 = vector.broadcast %171 : vector<120x1xf32> to vector<120x128xf32>
    %173 = arith.addf %170, %172 : vector<120x128xf32>
    %cst_97 = arith.constant 0.000000e+00 : f32
    %174 = vector.broadcast %cst_97 : f32 to vector<120x128xf32>
    %175 = arith.maximumf %173, %174 : vector<120x128xf32>
    %c0_98 = arith.constant 0 : index
    %c0_99 = arith.constant 0 : index
    %176 = vector.load %arg12[%c0_98, %c0_99] : memref<84x120xf32, #tpu.memory_space<vmem>>, vector<84x120xf32>
    %cst_100 = arith.constant dense<0.000000e+00> : vector<84x128xf32>
    %177 = tpu.matmul %176, %175, %cst_100 {dimension_numbers = #tpu.dot_dimension_numbers<[1], [0], [0], [1], [0, 0, 1, 1], [], []>} : vector<84x120xf32>, vector<120x128xf32>, vector<84x128xf32> -> vector<84x128xf32>
    %c0_101 = arith.constant 0 : index
    %c0_102 = arith.constant 0 : index
    %178 = vector.load %arg13[%c0_101, %c0_102] : memref<84x1xf32, #tpu.memory_space<vmem>>, vector<84x1xf32>
    %179 = vector.broadcast %178 : vector<84x1xf32> to vector<84x128xf32>
    %180 = arith.addf %177, %179 : vector<84x128xf32>
    %cst_103 = arith.constant 0.000000e+00 : f32
    %181 = vector.broadcast %cst_103 : f32 to vector<84x128xf32>
    %182 = arith.maximumf %180, %181 : vector<84x128xf32>
    %c0_104 = arith.constant 0 : index
    %c0_105 = arith.constant 0 : index
    %183 = vector.load %arg14[%c0_104, %c0_105] : memref<16x84xf32, #tpu.memory_space<vmem>>, vector<16x84xf32>
    %cst_106 = arith.constant dense<0.000000e+00> : vector<16x128xf32>
    %184 = tpu.matmul %183, %182, %cst_106 {dimension_numbers = #tpu.dot_dimension_numbers<[1], [0], [0], [1], [0, 0, 1, 1], [], []>} : vector<16x84xf32>, vector<84x128xf32>, vector<16x128xf32> -> vector<16x128xf32>
    %c0_107 = arith.constant 0 : index
    %c0_108 = arith.constant 0 : index
    %185 = vector.load %arg15[%c0_107, %c0_108] : memref<16x1xf32, #tpu.memory_space<vmem>>, vector<16x1xf32>
    %186 = vector.broadcast %185 : vector<16x1xf32> to vector<16x128xf32>
    %187 = arith.addf %184, %186 : vector<16x128xf32>
    %c0_109 = arith.constant 0 : index
    %c0_110 = arith.constant 0 : index
    %188 = vector.load %arg16[%c0_109, %c0_110] : memref<16x128xf32, #tpu.memory_space<vmem>>, vector<16x128xf32>
    tpu.vector_store %arg16[%c0_109, %c0_110], %187 {strides = array<i32>} : memref<16x128xf32, #tpu.memory_space<vmem>>, vector<16x128xf32>,
    return
  }
}

</mosaic_0001>

<bundles_post_ra>
// kernel: net_forward.1
= control target key start
LH: loop header
LB: loop body
LE: loop exit
PB: predicated region body
PF: predicated region fallthrough
CT: control target
= control target key end

     0   :  { %vm122_vm0 = vcmask 1042432   ;;  %vm118_vm1 = vcmask 220160   ;;  %v4303_v58 = vmov 0   ;;  %vm590_vm2 = vcmask 1045504   ;;  %s4305_s20 = smov 126   ;;  %s4307_s21 = smov 112   ;;  %s6826_s0 = inlined_call_operand.vmem [shape: f32[27,2048], index: 0, kind: input, shape index: {}]   ;;  %s6827_s1 = inlined_call_operand.vmem [shape: f32[6,27], index: 1, kind: input, shape index: {}]   ;;  %s6828_s2 = inlined_call_operand.vmem [shape: f32[6,1], index: 2, kind: input, shape index: {}]   ;;  %s6829_s3 = inlined_call_operand.vmem [shape: f32[144,6], index: 3, kind: input, shape index: {}]   ;;  %s6830_s5 = inlined_call_operand.vmem [shape: f32[512,128], index: 5, kind: input, shape index: {}]   ;;  %s6831_s4 = inlined_call_operand.vmem [shape: f32[16,1], index: 4, kind: input, shape index: {}]   ;;  %s6832_s8 = inlined_call_operand.vmem [shape: f32[128,128], index: 8, kind: input, shape index: {}]   ;;  %s6833_s6 = inlined_call_operand.vmem [shape: f32[20,16], index: 6, kind: input, shape index: {}]   ;;  %s6834_s7 = inlined_call_operand.vmem [shape: f32[20,1], index: 7, kind: input, shape index: {}]   ;;  %s6835_s11 = inlined_call_operand.vmem [shape: f32[120,1], index: 11, kind: input, shape index: {}]   ;;  %s6836_s9 = inlined_call_operand.vmem [shape: f32[9,120,20], index: 9, kind: input, shape index: {}]   ;;  %s6837_s13 = inlined_call_operand.vmem [shape: f32[84,1], index: 13, kind: input, shape index: {}]   ;;  %s6838_s15 = inlined_call_operand.vmem [shape: f32[16,1], index: 15, kind: input, shape index: {}]   ;;  %s6839_s10 = inlined_call_operand.vmem [shape: f32[128,128], index: 10, kind: input, shape index: {}]   ;;  %s6840_s12 = inlined_call_operand.vmem [shape: f32[84,120], index: 12, kind: input, shape index: {}]   ;;  %s6841_s14 = inlined_call_operand.vmem [shape: f32[16,84], index: 14, kind: input, shape index: {}]   ;;  %s6842_s16 = inlined_call_operand.vmem [shape: f32[16,128], index: 16, kind: output, shape index: {}]  }
   0x1   :  { %6913 = sst [smem:[#allocation60_spill]] %s6826_s0  ;;  %v4458_v16 = vld [vmem:[%s6827_s1] sm:$0x3f]  ;;  %4255 = vset.pattern.permute.xlu0 %v4303_v58  ;;  %4301 = vset.pattern.permute.xlu2 %v4303_v58  ;;  %vm535_vm3 = vcmask 48128   ;;  %s4308_s22 = smov 111   ;;  %vm960_vm4 = vcmask 1031168  }
   0x2   :  { %s6914_s23 = sld [smem:[#allocation60_spill]]  ;;  %v503_v55 = vld [vmem:[%s6828_s2] sm:$0x3f]  ;;  %4302 = vset.pattern.permute.xlu1 %v4303_v58  ;;  %s4306_s2 = smov 113   ;;  %vm911_vm5 = vcmask 1039360   ;;  %vm1009_vm6 = vcmask 924672  }
   0x3   :  { %506 = vperm.xlu0 %4255, %v503_v55   ;;  %v532_v55 = vld [vmem:[%s6829_s3 + $0x78] sm:$0xff]  ;;  %s4309_s24 = smov 98   ;;  %s4310_s25 = smov 97   ;;  %vm1058_vm7 = vcmask 916480   ;;  %vm1107_vm8 = vcmask 908288   ;;  %vm1156_vm9 = vcmask 801792  }
   0x4   :  { %s4311_s26 = smov 96   ;;  %vm1205_vm10 = vcmask 793600   ;;  %vm1254_vm11 = vcmask 785408   ;;  %vm1840_vm12 = vcmask 130048   ;;  %vm1971_vm13 = vcmask 998400  }
   0x5   :  { %vm2013_vm14 = vcmask 990208   ;;  %vm2162_vm15 = vcmask 1043456  }
   0x8   :  { %v102_v0 = vld [vmem:[%s6914_s23 + $0x180] sm:$0x7]  ;;  %v104_v1 = vld [vmem:[%s6914_s23 + $0x190] sm:$0x7]  ;;  %v105_v2 = vld [vmem:[%s6914_s23 + $0x198] sm:$0x7] }
   0x9   :  { %3819 = vmatpush.msk.msra.mxu1 %vm122_vm0, %v102_v0  ;;  %3823 = vmatpush.msk.msra.mxu2 %vm122_vm0, %v104_v1  ;;  %v106_v3 = vld [vmem:[%s6914_s23 + $0x1a0] sm:$0x7]  ;;  %v88_v5 = vld [vmem:[%s6914_s23 + $0x110] sm:$0xff]  ;;  %v89_v6 = vld [vmem:[%s6914_s23 + $0x118] sm:$0xff] }
   0xa   :  { %v86_v4 = vld [vmem:[%s6914_s23 + $0x100] sm:$0xff]  ;;  %3825 = vmatpush.msk.msra.mxu3 %vm122_vm0, %v105_v2  ;;  %3827 = vmatpush.msk.msra.mxu0 %vm122_vm0, %v106_v3  ;;  %v72_v9 = vld [vmem:[%s6914_s23 + $0x90] sm:$0xff]  ;;  %v73_v10 = vld [vmem:[%s6914_s23 + $0x98] sm:$0xff] }
   0xb   :  { %v90_v7 = vld [vmem:[%s6914_s23 + $0x120] sm:$0xff]  ;;  %184 = vmatpush.msra.mxu1 %v86_v4  ;;  %224 = vmatpush.msra.mxu2 %v88_v5  ;;  %v56_v13 = vld [vmem:[%s6914_s23 + $0x10] sm:$0xff]  ;;  %v57_v14 = vld [vmem:[%s6914_s23 + $0x18] sm:$0xff] }
   0xc   :  { %v70_v8 = vld [vmem:[%s6914_s23 + $0x80] sm:$0xff]  ;;  %244 = vmatpush.msra.mxu3 %v89_v6  ;;  %264 = vmatpush.msra.mxu0 %v90_v7  ;;  %v103_v17 = vld [vmem:[%s6914_s23 + $0x188] sm:$0x7]  ;;  %v108_v18 = vld [vmem:[%s6914_s23 + $0x1b0] sm:$0x7] }
   0xd   :  { %v74_v11 = vld [vmem:[%s6914_s23 + $0xa0] sm:$0xff]  ;;  %185 = vmatpush.msra.mxu1 %v70_v8  ;;  %225 = vmatpush.msra.mxu2 %v72_v9  ;;  %v109_v19 = vld [vmem:[%s6914_s23 + $0x1b8] sm:$0x7]  ;;  %v87_v21 = vld [vmem:[%s6914_s23 + $0x108] sm:$0xff] }
   0xe   :  { %v54_v12 = vld [vmem:[%s6914_s23] sm:$0xff]  ;;  %245 = vmatpush.msra.mxu3 %v73_v10  ;;  %265 = vmatpush.msra.mxu0 %v74_v11  ;;  %v92_v22 = vld [vmem:[%s6914_s23 + $0x130] sm:$0xff]  ;;  %v93_v23 = vld [vmem:[%s6914_s23 + $0x138] sm:$0xff] }
   0xf   :  { %v58_v15 = vld [vmem:[%s6914_s23 + $0x20] sm:$0xff]  ;;  %186 = vmatpush.msra.mxu1 %v54_v12  ;;  %226 = vmatpush.msra.mxu2 %v56_v13  ;;  %v71_v25 = vld [vmem:[%s6914_s23 + $0x88] sm:$0xff]  ;;  %v76_v26 = vld [vmem:[%s6914_s23 + $0xb0] sm:$0xff] }
  0x10   :  { %246 = vmatpush.msra.mxu3 %v57_v14  ;;  %266 = vmatpush.msra.mxu0 %v58_v15  ;;  %v110_v20 = vld [vmem:[%s6914_s23 + $0x1c0] sm:$0x7]  ;;  %v77_v27 = vld [vmem:[%s6914_s23 + $0xb8] sm:$0xff]  ;;  %v55_v29 = vld [vmem:[%s6914_s23 + $0x8] sm:$0xff] }
  0x11   :  { %3820 = vmatmul.msk.f32.vlgmr.msra.gmra.mxu1 %vm118_vm1, %v4458_v16  ;;  %3824 = vmatmul.msk.f32.vlgmr.msra.gmra.mxu2 %vm118_vm1, %v4458_v16  ;;  %v94_v24 = vld [vmem:[%s6914_s23 + $0x140] sm:$0xff]  ;;  %v60_v30 = vld [vmem:[%s6914_s23 + $0x30] sm:$0xff]  ;;  %v61_v31 = vld [vmem:[%s6914_s23 + $0x38] sm:$0xff] }
  0x12   :  { %3826 = vmatmul.msk.f32.vlgmr.msra.gmra.mxu3 %vm118_vm1, %v4458_v16  ;;  %3828 = vmatmul.msk.f32.vlgmr.msra.gmra.mxu0 %vm118_vm1, %v4458_v16  ;;  %v78_v28 = vld [vmem:[%s6914_s23 + $0xc0] sm:$0xff]  ;;  %v107_v33 = vld [vmem:[%s6914_s23 + $0x1a8] sm:$0x7]  ;;  %v112_v34 = vld [vmem:[%s6914_s23 + $0x1d0] sm:$0x7] }
  0x13   :  { %3821 = vmatpush.msk.msrb.mxu1 %vm122_vm0, %v103_v17  ;;  %3831 = vmatpush.msk.msrb.mxu2 %vm122_vm0, %v108_v18  ;;  %v62_v32 = vld [vmem:[%s6914_s23 + $0x40] sm:$0xff]  ;;  %v113_v35 = vld [vmem:[%s6914_s23 + $0x1d8] sm:$0x7]  ;;  %v91_v37 = vld [vmem:[%s6914_s23 + $0x128] sm:$0xff] }
  0x14   :  { %3833 = vmatpush.msk.msrb.mxu3 %vm122_vm0, %v109_v19  ;;  %3835 = vmatpush.msk.msrb.mxu0 %vm122_vm0, %v110_v20  ;;  %v114_v36 = vld [vmem:[%s6914_s23 + $0x1e0] sm:$0x7]  ;;  %v96_v38 = vld [vmem:[%s6914_s23 + $0x150] sm:$0xff]  ;;  %v97_v39 = vld [vmem:[%s6914_s23 + $0x158] sm:$0xff] }
  0x15   :  { %204 = vmatpush.msrb.mxu1 %v87_v21  ;;  %304 = vmatpush.msrb.mxu2 %v92_v22  ;;  %v98_v40 = vld [vmem:[%s6914_s23 + $0x160] sm:$0xff]  ;;  %v75_v41 = vld [vmem:[%s6914_s23 + $0xa8] sm:$0xff]  ;;  %v80_v42 = vld [vmem:[%s6914_s23 + $0xd0] sm:$0xff] }
  0x16   :  { %324 = vmatpush.msrb.mxu3 %v93_v23  ;;  %344 = vmatpush.msrb.mxu0 %v94_v24  ;;  %v81_v43 = vld [vmem:[%s6914_s23 + $0xd8] sm:$0xff]  ;;  %v82_v44 = vld [vmem:[%s6914_s23 + $0xe0] sm:$0xff]  ;;  %v59_v45 = vld [vmem:[%s6914_s23 + $0x28] sm:$0xff] }
  0x17   :  { %205 = vmatpush.msrb.mxu1 %v71_v25  ;;  %305 = vmatpush.msrb.mxu2 %v76_v26  ;;  %v64_v46 = vld [vmem:[%s6914_s23 + $0x50] sm:$0xff]  ;;  %v65_v47 = vld [vmem:[%s6914_s23 + $0x58] sm:$0xff]  ;;  %v66_v48 = vld [vmem:[%s6914_s23 + $0x60] sm:$0xff] }
  0x18   :  { %325 = vmatpush.msrb.mxu3 %v77_v27  ;;  %345 = vmatpush.msrb.mxu0 %v78_v28  ;;  %v111_v49 = vld [vmem:[%s6914_s23 + $0x1c8] sm:$0x7]  ;;  %v116_v50 = vld [vmem:[%s6914_s23 + $0x1f0] sm:$0x7]  ;;  %v117_v51 = vld [vmem:[%s6914_s23 + $0x1f8] sm:$0x7] }
  0x19   :  { %206 = vmatpush.msrb.mxu1 %v55_v29  ;;  %306 = vmatpush.msrb.mxu2 %v60_v30  ;;  %v95_v52 = vld [vmem:[%s6914_s23 + $0x148] sm:$0xff]  ;;  %v100_v53 = vld [vmem:[%s6914_s23 + $0x170] sm:$0xff]  ;;  %v101_v54 = vld [vmem:[%s6914_s23 + $0x178] sm:$0xff] }
  0x1a   :  { %326 = vmatpush.msrb.mxu3 %v61_v31  ;;  %346 = vmatpush.msrb.mxu0 %v62_v32  ;;  %v79_v56 = vld [vmem:[%s6914_s23 + $0xc8] sm:$0xff]  ;;  %v84_v57 = vld [vmem:[%s6914_s23 + $0xf0] sm:$0xff]  ;;  %v85_v59 = vld [vmem:[%s6914_s23 + $0xf8] sm:$0xff] }
  0x1b   :  { %3822 = vmatmul.msk.f32.vlgmr.msrb.gmra.mxu1 %vm118_vm1, %v4458_v16  ;;  %3832 = vmatmul.msk.f32.vlgmr.msrb.gmra.mxu2 %vm118_vm1, %v4458_v16  ;;  %v63_v60 = vld [vmem:[%s6914_s23 + $0x48] sm:$0xff]  ;;  %v68_v61 = vld [vmem:[%s6914_s23 + $0x70] sm:$0xff]  ;;  %v69_v62 = vld [vmem:[%s6914_s23 + $0x78] sm:$0xff] }
  0x1c   :  { %3834 = vmatmul.msk.f32.vlgmr.msrb.gmra.mxu3 %vm118_vm1, %v4458_v16  ;;  %3836 = vmatmul.msk.f32.vlgmr.msrb.gmra.mxu0 %vm118_vm1, %v4458_v16  ;;  %v115_v63 = vld [vmem:[%s6914_s23 + $0x1e8] sm:$0x7] }
  0x1d   :  { %3829 = vmatpush.msk.msra.mxu1 %vm122_vm0, %v107_v33  ;;  %3839 = vmatpush.msk.msra.mxu2 %vm122_vm0, %v112_v34  ;;  %v99_v0 = vld [vmem:[%s6914_s23 + $0x168] sm:$0xff] }
  0x1e   :  { %3841 = vmatpush.msk.msra.mxu3 %vm122_vm0, %v113_v35  ;;  %3843 = vmatpush.msk.msra.mxu0 %vm122_vm0, %v114_v36  ;;  %v83_v1 = vld [vmem:[%s6914_s23 + $0xe8] sm:$0xff] }
  0x1f   :  { %284 = vmatpush.msra.mxu1 %v91_v37  ;;  %384 = vmatpush.msra.mxu2 %v96_v38  ;;  %v67_v2 = vld [vmem:[%s6914_s23 + $0x68] sm:$0xff] }
  0x20   :  { %404 = vmatpush.msra.mxu3 %v97_v39  ;;  %424 = vmatpush.msra.mxu0 %v98_v40  ;;  %v4662_v25 = vld [vmem:[%s6829_s3 + $0x8] sm:$0xff] }
  0x21   :  { %285 = vmatpush.msra.mxu1 %v75_v41  ;;  %385 = vmatpush.msra.mxu2 %v80_v42  ;;  %v521_v41 = vld [vmem:[%s6829_s3 + $0x20] sm:$0xff]  ;;  %v4672_v42 = vld [vmem:[%s6829_s3 + $0x10] sm:$0xff] }
  0x22   :  { %405 = vmatpush.msra.mxu3 %v81_v43  ;;  %425 = vmatpush.msra.mxu0 %v82_v44  ;;  %v522_v44 = vld [vmem:[%s6829_s3 + $0x28] sm:$0xff] }
  0x23   :  { %286 = vmatpush.msra.mxu1 %v59_v45  ;;  %386 = vmatpush.msra.mxu2 %v64_v46  ;;  %v4691_v45 = vld [vmem:[%s6829_s3 + $0x18] sm:$0xff]  ;;  %v523_v46 = vld [vmem:[%s6829_s3 + $0x30] sm:$0xff] }
  0x24   :  { %406 = vmatpush.msra.mxu3 %v65_v47  ;;  %426 = vmatpush.msra.mxu0 %v66_v48  ;;  %v524_v47 = vld [vmem:[%s6829_s3 + $0x38] sm:$0xff]  ;;  %v525_v48 = vld [vmem:[%s6829_s3 + $0x40] sm:$0xff] }
  0x25   :  { %3830 = vmatmul.msk.f32.vlgmr.msra.gmra.mxu1 %vm118_vm1, %v4458_v16  ;;  %3840 = vmatmul.msk.f32.vlgmr.msra.gmra.mxu2 %vm118_vm1, %v4458_v16 }
  0x26   :  { %3842 = vmatmul.msk.f32.vlgmr.msra.gmra.mxu3 %vm118_vm1, %v4458_v16  ;;  %3844 = vmatmul.msk.f32.vlgmr.msra.gmra.mxu0 %vm118_vm1, %v4458_v16 }
  0x27   :  { %3837 = vmatpush.msk.msrb.mxu1 %vm122_vm0, %v111_v49  ;;  %3847 = vmatpush.msk.msrb.mxu2 %vm122_vm0, %v116_v50  ;;  %v526_v49 = vld [vmem:[%s6829_s3 + $0x48] sm:$0xff]  ;;  %v527_v50 = vld [vmem:[%s6829_s3 + $0x50] sm:$0xff] }
  0x28   :  { %3849 = vmatpush.msk.msrb.mxu3 %vm122_vm0, %v117_v51  ;;  %v528_v51 = vld [vmem:[%s6829_s3 + $0x58] sm:$0xff] }
  0x29   :  { %364 = vmatpush.msrb.mxu1 %v95_v52  ;;  %464 = vmatpush.msrb.mxu2 %v100_v53  ;;  %v529_v52 = vld [vmem:[%s6829_s3 + $0x60] sm:$0xff]  ;;  %v530_v53 = vld [vmem:[%s6829_s3 + $0x68] sm:$0xff] }
  0x2a   :  { %484 = vmatpush.msrb.mxu3 %v101_v54  ;;  %v531_v54 = vld [vmem:[%s6829_s3 + $0x70] sm:$0xff] }
  0x2b   :  { %365 = vmatpush.msrb.mxu1 %v79_v56  ;;  %465 = vmatpush.msrb.mxu2 %v84_v57  ;;  %v533_v56 = vld [vmem:[%s6829_s3 + $0x80] sm:$0xff]  ;;  %v534_v57 = vld [vmem:[%s6829_s3 + $0x88] sm:$0xff] }
  0x2c   :  { %485 = vmatpush.msrb.mxu3 %v85_v59 }
  0x2d   :  { %366 = vmatpush.msrb.mxu1 %v63_v60  ;;  %466 = vmatpush.msrb.mxu2 %v68_v61 }
  0x2e   :  { %486 = vmatpush.msrb.mxu3 %v69_v62  ;;  %3838 = vmatmul.msk.f32.vlgmr.msrb.gmra.mxu1 %vm118_vm1, %v4458_v16 }
  0x2f   :  { %3848 = vmatmul.msk.f32.vlgmr.msrb.gmra.mxu2 %vm118_vm1, %v4458_v16  ;;  %3850 = vmatmul.msk.f32.vlgmr.msrb.gmra.mxu3 %vm118_vm1, %v4458_v16 }
  0x30   :  { %3845 = vmatpush.msk.msra.mxu1 %vm122_vm0, %v115_v63  ;;  %vm2116_vm0 = vcmask 162816  }
  0x32   :  { %444 = vmatpush.msra.mxu1 %v99_v0 }
  0x34   :  { %445 = vmatpush.msra.mxu1 %v83_v1 }
  0x36   :  { %446 = vmatpush.msra.mxu1 %v67_v2 }
  0x37   :  { %3846 = vmatmul.msk.f32.vlgmr.msra.gmra.mxu1 %vm118_vm1, %v4458_v16  ;;  %v4654_v16 = vld [vmem:[%s6829_s3] sm:$0xff]  ;;  %s4304_s3 = smov 127   ;;  %vm2669_vm1 = vcmask 1014784  }
  0x75   :  { %v507_v15 = vpop.permute.xlu0 %506 }
  0x8e   :  { %v188_v3 = vpop.f32.mrf.mxu1 }
  0x8f   :  { %v268_v4 = vpop.f32.mrf.mxu0 }
  0x90   :  { %v491_v13 = vmax.f32 %v188_v3, %v268_v4 }
  0x94   :  { %v228_v5 = vpop.f32.mrf.mxu2 }
  0x95   :  { %v248_v6 = vpop.f32.mrf.mxu3 }
  0x98   :  { %v208_v7 = vpop.f32.mrf.mxu1 }
  0x99   :  { %v348_v8 = vpop.f32.mrf.mxu0 }
  0x9e   :  { %v308_v9 = vpop.f32.mrf.mxu2 }
  0x9f   :  { %v328_v10 = vpop.f32.mrf.mxu3  ;;  %v493_v26 = vmax.f32 %v228_v5, %v308_v9 }
  0xa0   :  { %v494_v27 = vmax.f32 %v248_v6, %v328_v10 }
  0xa2   :  { %v288_v11 = vpop.f32.mrf.mxu1 }
  0xa3   :  { %v428_v12 = vpop.f32.mrf.mxu0  ;;  %v492_v31 = vmax.f32 %v208_v7, %v288_v11 }
  0xa4   :  { %v495_v14 = vmax.f32 %v348_v8, %v428_v12 }
  0xa6   :  { %v499_v17 = vmax.f32 %v491_v13, %v495_v14 }
  0xa8   :  { %v509_v18 = vadd.f32 %v507_v15, %v499_v17  ;;  %v388_v19 = vpop.f32.mrf.mxu2 }
  0xa9   :  { %v408_v20 = vpop.f32.mrf.mxu3 }
  0xaa   :  { %v513_v21 = vmax.f32 %v509_v18, 0.0 }
  0xab   :  { %v368_v22 = vpop.f32.mrf.mxu1 }
  0xac   :  { %3851 = vmatpush.msk.msrb.mxu0 %vm590_vm2, %v513_v21 }
  0xad   :  { %3852 = vmatmul.msk.f32.vlgmr.msrb.gmra.mxu0 %vm535_vm3, %v4654_v16 }
  0xb2   :  { %v468_v23 = vpop.f32.mrf.mxu2  ;;  %v488_v24 = vpop.f32.mrf.mxu3 }
  0xb3   :  { %v497_v28 = vmax.f32 %v388_v19, %v468_v23  ;;  %v498_v29 = vmax.f32 %v408_v20, %v488_v24 }
  0xb4   :  { %v448_v30 = vpop.f32.mrf.mxu1 }
  0xb5   :  { %v501_v32 = vmax.f32 %v493_v26, %v497_v28  ;;  %v502_v33 = vmax.f32 %v494_v27, %v498_v29  ;;  %v496_v34 = vmax.f32 %v368_v22, %v448_v30  ;;  %3853 = vmatmul.msk.f32.gmra.mxu0 %vm535_vm3, %v4662_v25 }
  0xb7   :  { %v511_v35 = vadd.f32 %v507_v15, %v501_v32  ;;  %v512_v36 = vadd.f32 %v507_v15, %v502_v33  ;;  %v500_v37 = vmax.f32 %v492_v31, %v496_v34 }
  0xb9   :  { %v515_v38 = vmax.f32 %v511_v35, 0.0  ;;  %v516_v39 = vmax.f32 %v512_v36, 0.0  ;;  %v510_v40 = vadd.f32 %v507_v15, %v500_v37 }
  0xbb   :  { %v514_v43 = vmax.f32 %v510_v40, 0.0  ;;  %3889 = vmatpush.msk.msra.mxu0 %vm590_vm2, %v515_v38  ;;  %4239 = vmatpush.msk.msra.mxu2 %vm590_vm2, %v515_v38 }
  0xbc   :  { %3908 = vmatpush.msk.msra.mxu3 %vm590_vm2, %v516_v39  ;;  %3894 = vmatmul.msk.f32.vlgmr.msra.gmra.mxu2 %vm535_vm3, %v521_v41 }
  0xbd   :  { %3870 = vmatpush.msk.msrb.mxu1 %vm590_vm2, %v514_v43  ;;  %3854 = vmatmul.msk.f32.gmra.mxu0 %vm535_vm3, %v4672_v42  ;;  %vm3283_vm2 = vcmask 982016  }
  0xbe   :  { %3871 = vmatmul.msk.f32.vlgmr.msrb.gmra.mxu1 %vm535_vm3, %v4654_v16  ;;  %3909 = vmatmul.msk.f32.vlgmr.msra.gmra.mxu3 %vm535_vm3, %v4654_v16 }
  0xc4   :  { %3895 = vmatmul.msk.f32.gmra.mxu2 %vm535_vm3, %v522_v44 }
  0xc5   :  { %3855 = vmatmul.msk.f32.gmra.mxu0 %vm535_vm3, %v4691_v45 }
  0xc6   :  { %3872 = vmatmul.msk.f32.gmra.mxu1 %vm535_vm3, %v4662_v25  ;;  %3910 = vmatmul.msk.f32.gmra.mxu3 %vm535_vm3, %v4662_v25 }
  0xcc   :  { %3896 = vmatmul.msk.f32.gmra.mxu2 %vm535_vm3, %v523_v46 }
  0xcd   :  { %3856 = vmatmul.msk.f32.gmra.mxu0 %vm535_vm3, %v521_v41 }
  0xce   :  { %3873 = vmatmul.msk.f32.gmra.mxu1 %vm535_vm3, %v4672_v42  ;;  %3911 = vmatmul.msk.f32.gmra.mxu3 %vm535_vm3, %v4672_v42 }
  0xd4   :  { %3897 = vmatmul.msk.f32.gmra.mxu2 %vm535_vm3, %v524_v47 }
  0xd5   :  { %3857 = vmatmul.msk.f32.gmra.mxu0 %vm535_vm3, %v522_v44 }
  0xd6   :  { %3874 = vmatmul.msk.f32.gmra.mxu1 %vm535_vm3, %v4691_v45  ;;  %3912 = vmatmul.msk.f32.gmra.mxu3 %vm535_vm3, %v4691_v45 }
  0xdc   :  { %3898 = vmatmul.msk.f32.gmra.mxu2 %vm535_vm3, %v525_v48 }
  0xdd   :  { %3858 = vmatmul.msk.f32.gmra.mxu0 %vm535_vm3, %v523_v46 }
  0xde   :  { %3875 = vmatmul.msk.f32.gmra.mxu1 %vm535_vm3, %v521_v41  ;;  %3913 = vmatmul.msk.f32.gmra.mxu3 %vm535_vm3, %v521_v41 }
  0xe4   :  { %3899 = vmatmul.msk.f32.gmra.mxu2 %vm535_vm3, %v526_v49 }
  0xe5   :  { %3859 = vmatmul.msk.f32.gmra.mxu0 %vm535_vm3, %v524_v47 }
  0xe6   :  { %3876 = vmatmul.msk.f32.gmra.mxu1 %vm535_vm3, %v522_v44  ;;  %3914 = vmatmul.msk.f32.gmra.mxu3 %vm535_vm3, %v522_v44 }
  0xec   :  { %3900 = vmatmul.msk.f32.gmra.mxu2 %vm535_vm3, %v527_v50 }
  0xed   :  { %3860 = vmatmul.msk.f32.gmra.mxu0 %vm535_vm3, %v525_v48 }
  0xee   :  { %3877 = vmatmul.msk.f32.gmra.mxu1 %vm535_vm3, %v523_v46  ;;  %3915 = vmatmul.msk.f32.gmra.mxu3 %vm535_vm3, %v523_v46 }
  0xf4   :  { %3901 = vmatmul.msk.f32.gmra.mxu2 %vm535_vm3, %v528_v51 }
  0xf5   :  { %3861 = vmatmul.msk.f32.gmra.mxu0 %vm535_vm3, %v526_v49 }
  0xf6   :  { %3878 = vmatmul.msk.f32.gmra.mxu1 %vm535_vm3, %v524_v47  ;;  %3916 = vmatmul.msk.f32.gmra.mxu3 %vm535_vm3, %v524_v47 }
  0xfc   :  { %3902 = vmatmul.msk.f32.gmra.mxu2 %vm535_vm3, %v529_v52 }
  0xfd   :  { %3862 = vmatmul.msk.f32.gmra.mxu0 %vm535_vm3, %v527_v50 }
  0xfe   :  { %3879 = vmatmul.msk.f32.gmra.mxu1 %vm535_vm3, %v525_v48  ;;  %3917 = vmatmul.msk.f32.gmra.mxu3 %vm535_vm3, %v525_v48 }
 0x104   :  { %3903 = vmatmul.msk.f32.gmra.mxu2 %vm535_vm3, %v530_v53 }
 0x105   :  { %3863 = vmatmul.msk.f32.gmra.mxu0 %vm535_vm3, %v528_v51 }
 0x106   :  { %3880 = vmatmul.msk.f32.gmra.mxu1 %vm535_vm3, %v526_v49  ;;  %3918 = vmatmul.msk.f32.gmra.mxu3 %vm535_vm3, %v526_v49 }
 0x10c   :  { %3904 = vmatmul.msk.f32.gmra.mxu2 %vm535_vm3, %v531_v54 }
 0x10d   :  { %3864 = vmatmul.msk.f32.gmra.mxu0 %vm535_vm3, %v529_v52 }
 0x10e   :  { %3881 = vmatmul.msk.f32.gmra.mxu1 %vm535_vm3, %v527_v50  ;;  %3919 = vmatmul.msk.f32.gmra.mxu3 %vm535_vm3, %v527_v50 }
 0x114   :  { %3905 = vmatmul.msk.f32.gmra.mxu2 %vm535_vm3, %v532_v55 }
 0x115   :  { %3865 = vmatmul.msk.f32.gmra.mxu0 %vm535_vm3, %v530_v53 }
 0x116   :  { %3882 = vmatmul.msk.f32.gmra.mxu1 %vm535_vm3, %v528_v51  ;;  %3920 = vmatmul.msk.f32.gmra.mxu3 %vm535_vm3, %v528_v51 }
 0x11c   :  { %3906 = vmatmul.msk.f32.gmra.mxu2 %vm535_vm3, %v533_v56 }
 0x11d   :  { %3866 = vmatmul.msk.f32.gmra.mxu0 %vm535_vm3, %v531_v54 }
 0x11e   :  { %3883 = vmatmul.msk.f32.gmra.mxu1 %vm535_vm3, %v529_v52  ;;  %3921 = vmatmul.msk.f32.gmra.mxu3 %vm535_vm3, %v529_v52 }
 0x124   :  { %3907 = vmatmul.msk.f32.gmra.mxu2 %vm535_vm3, %v534_v57 }
 0x125   :  { %3867 = vmatmul.msk.f32.gmra.mxu0 %vm535_vm3, %v532_v55 }
 0x126   :  { %3884 = vmatmul.msk.f32.gmra.mxu1 %vm535_vm3, %v530_v53  ;;  %3922 = vmatmul.msk.f32.gmra.mxu3 %vm535_vm3, %v530_v53 }
 0x12a   :  { %v4788_v58 = vpop.f32.mrf.mxu0 }
 0x12d   :  { %3868 = vmatmul.msk.f32.gmra.mxu0 %vm535_vm3, %v533_v56 }
 0x12e   :  { %3885 = vmatmul.msk.f32.gmra.mxu1 %vm535_vm3, %v531_v54  ;;  %3923 = vmatmul.msk.f32.gmra.mxu3 %vm535_vm3, %v531_v54 }
 0x132   :  { %v4793_v59 = vpop.f32.mrf.mxu0 }
 0x135   :  { %3869 = vmatmul.msk.f32.gmra.mxu0 %vm535_vm3, %v534_v57 }
 0x136   :  { %3886 = vmatmul.msk.f32.gmra.mxu1 %vm535_vm3, %v532_v55  ;;  %3924 = vmatmul.msk.f32.gmra.mxu3 %vm535_vm3, %v532_v55 }
 0x13a   :  { %v626_v60 = vpop.f32.mrf.mxu0 }
 0x13b   :  { %v4798_v61 = vpop.f32.mrf.mxu1  ;;  %895 = vrot.lane.b32.xlu2 %v626_v60, %s4304_s3 }
 0x13d   :  { %3890 = vmatmul.msk.f32.vlgmr.msra.gmra.mxu0 %vm535_vm3, %v4654_v16 }
 0x13e   :  { %3887 = vmatmul.msk.f32.gmra.mxu1 %vm535_vm3, %v533_v56  ;;  %3925 = vmatmul.msk.f32.gmra.mxu3 %vm535_vm3, %v533_v56 }
 0x13f   :  { %v774_v62 = vpop.f32.mrf.mxu2 }
 0x140   :  { %948 = vrot.lane.b32.xlu1 %v774_v62, %s4305_s20 }
 0x141   :  { %v4806_v63 = vpop.f32.mrf.mxu3 }
 0x142   :  { %v629_v0 = vpop.f32.mrf.mxu0 }
 0x143   :  { %v4808_v1 = vpop.f32.mrf.mxu1 }
 0x144   :  { %6915 = vst [vmem:[#allocation2_spill] sm:$0xff] %v4808_v1  ;;  %v5245_v1 = vld [vmem:[%s6830_s5 + $0xd8] sm:$0xff] }
 0x145   :  { %3891 = vmatmul.msk.f32.gmra.mxu0 %vm535_vm3, %v4662_v25 }
 0x146   :  { %3926 = vmatmul.msk.f32.gmra.mxu3 %vm535_vm3, %v534_v57  ;;  %3888 = vmatmul.msk.f32.gmra.mxu1 %vm535_vm3, %v534_v57 }
 0x147   :  { %v777_v3 = vpop.f32.mrf.mxu2 }
 0x148   :  { %903 = vrot.lane.b32.xlu1 %v629_v0, %s4304_s3 }
 0x149   :  { %v4815_v2 = vpop.f32.mrf.mxu3 }
 0x14a   :  { %v632_v4 = vpop.f32.mrf.mxu0 }
 0x14b   :  { %v697_v5 = vpop.f32.mrf.mxu1 }
 0x14c   :  { %897 = vrot.lane.b32.xlu0 %v697_v5, %s4304_s3 }
 0x14d   :  { %3892 = vmatmul.msk.f32.gmra.mxu0 %vm535_vm3, %v4672_v42 }
 0x14f   :  { %v780_v7 = vpop.f32.mrf.mxu2 }
 0x150   :  { %956 = vrot.lane.b32.xlu1 %v777_v3, %s4305_s20 }
 0x151   :  { %v839_v6 = vpop.f32.mrf.mxu3 }
 0x152   :  { %v635_v8 = vpop.f32.mrf.mxu0 }
 0x153   :  { %v700_v9 = vpop.f32.mrf.mxu1 }
 0x154   :  { %944 = vrot.lane.b32.xlu0 %v632_v4, %s4305_s20  ;;  %905 = vrot.lane.b32.xlu2 %v700_v9, %s4304_s3 }
 0x155   :  { %3893 = vmatmul.msk.f32.gmra.mxu0 %vm535_vm3, %v4691_v45  ;;  %vm2515_vm3 = vcmask 1022976  }
 0x157   :  { %v783_v13 = vpop.f32.mrf.mxu2 }
 0x158   :  { %901 = vrot.lane.b32.xlu1 %v839_v6, %s4304_s3 }
 0x159   :  { %v842_v10 = vpop.f32.mrf.mxu3 }
 0x15a   :  { %v638_v11 = vpop.f32.mrf.mxu0 }
 0x15b   :  { %v703_v12 = vpop.f32.mrf.mxu1 }
 0x15c   :  { %952 = vrot.lane.b32.xlu0 %v635_v8, %s4305_s20  ;;  %909 = vrot.lane.b32.xlu2 %v842_v10, %s4304_s3 }
 0x15f   :  { %v786_v18 = vpop.f32.mrf.mxu2 }
 0x160   :  { %997 = vrot.lane.b32.xlu1 %v780_v7, %s4306_s2 }
 0x161   :  { %v845_v14 = vpop.f32.mrf.mxu3 }
 0x162   :  { %v641_v15 = vpop.f32.mrf.mxu0 }
 0x163   :  { %v706_v17 = vpop.f32.mrf.mxu1 }
 0x164   :  { %1005 = vrot.lane.b32.xlu0 %v783_v13, %s4306_s2  ;;  %950 = vrot.lane.b32.xlu2 %v845_v14, %s4305_s20 }
 0x167   :  { %v789_v16 = vpop.f32.mrf.mxu2 }
 0x168   :  { %946 = vrot.lane.b32.xlu1 %v703_v12, %s4305_s20 }
 0x169   :  { %v848_v19 = vpop.f32.mrf.mxu3 }
 0x16a   :  { %v644_v20 = vpop.f32.mrf.mxu0 }
 0x16b   :  { %v709_v21 = vpop.f32.mrf.mxu1 }
 0x16c   :  { %993 = vrot.lane.b32.xlu0 %v638_v11, %s4306_s2  ;;  %1046 = vrot.lane.b32.xlu2 %v786_v18, %s4307_s21 }
 0x16f   :  { %v792_v25 = vpop.f32.mrf.mxu2 }
 0x170   :  { %954 = vrot.lane.b32.xlu1 %v706_v17, %s4305_s20 }
 0x171   :  { %v851_v22 = vpop.f32.mrf.mxu3 }
 0x172   :  { %v647_v23 = vpop.f32.mrf.mxu0 }
 0x173   :  { %v712_v24 = vpop.f32.mrf.mxu1 }
 0x174   :  { %1042 = vrot.lane.b32.xlu0 %v644_v20, %s4307_s21  ;;  %1001 = vrot.lane.b32.xlu2 %v641_v15, %s4306_s2 }
 0x177   :  { %v795_v30 = vpop.f32.mrf.mxu2 }
 0x178   :  { %995 = vrot.lane.b32.xlu1 %v709_v21, %s4306_s2 }
 0x179   :  { %v854_v26 = vpop.f32.mrf.mxu3 }
 0x17a   :  { %v650_v27 = vpop.f32.mrf.mxu0 }
 0x17b   :  { %v715_v28 = vpop.f32.mrf.mxu1 }
 0x17c   :  { %958 = vrot.lane.b32.xlu2 %v848_v19, %s4305_s20  ;;  %1003 = vrot.lane.b32.xlu0 %v712_v24, %s4306_s2 }
 0x17f   :  { %v798_v36 = vpop.f32.mrf.mxu2 }
 0x180   :  { %1007 = vrot.lane.b32.xlu1 %v854_v26, %s4306_s2 }
 0x181   :  { %v857_v29 = vpop.f32.mrf.mxu3 }
 0x182   :  { %v653_v31 = vpop.f32.mrf.mxu0 }
 0x183   :  { %v718_v32 = vpop.f32.mrf.mxu1 }
 0x184   :  { %1054 = vrot.lane.b32.xlu2 %v789_v16, %s4307_s21  ;;  %1048 = vrot.lane.b32.xlu0 %v857_v29, %s4307_s21 }
 0x187   :  { %v801_v40 = vpop.f32.mrf.mxu2 }
 0x188   :  { %1103 = vrot.lane.b32.xlu1 %v795_v30, %s4308_s22 }
 0x189   :  { %v860_v33 = vpop.f32.mrf.mxu3 }
 0x18a   :  { %v656_v34 = vpop.f32.mrf.mxu0 }
 0x18b   :  { %v721_v35 = vpop.f32.mrf.mxu1 }
 0x18c   :  { %999 = vrot.lane.b32.xlu2 %v851_v22, %s4306_s2  ;;  %1052 = vrot.lane.b32.xlu0 %v718_v32, %s4307_s21 }
 0x18f   :  { %v804_v47 = vpop.f32.mrf.mxu2 }
 0x190   :  { %1044 = vrot.lane.b32.xlu1 %v715_v28, %s4307_s21 }
 0x191   :  { %v863_v37 = vpop.f32.mrf.mxu3 }
 0x192   :  { %v4847_v38 = vpop.f32.mrf.mxu0 }
 0x193   :  { %v4849_v39 = vpop.f32.mrf.mxu1 }
 0x194   :  { %1095 = vrot.lane.b32.xlu2 %v792_v25, %s4308_s22  ;;  %1056 = vrot.lane.b32.xlu0 %v860_v33, %s4307_s21 }
 0x195   :  { %v896_v48 = vpop.permute.xlu2 %895 }
 0x197   :  { %v807_v53 = vpop.f32.mrf.mxu2 }
 0x198   :  { %1152 = vrot.lane.b32.xlu1 %v801_v40, %s4309_s24 }
 0x199   :  { %v866_v41 = vpop.f32.mrf.mxu3 }
 0x19a   :  { %v662_v42 = vpop.f32.mrf.mxu0 }
 0x19b   :  { %v727_v43 = vpop.f32.mrf.mxu1 }
 0x19c   :  { %1050 = vrot.lane.b32.xlu2 %v647_v23, %s4307_s21  ;;  %1093 = vrot.lane.b32.xlu0 %v721_v35, %s4308_s22 }
 0x19f   :  { %v810_v62 = vpop.f32.mrf.mxu2 }
 0x1a0   :  { %1140 = vrot.lane.b32.xlu1 %v656_v34, %s4309_s24 }
 0x1a1   :  { %v869_v44 = vpop.f32.mrf.mxu3 }
 0x1a2   :  { %v4857_v45 = vpop.f32.mrf.mxu0 }
 0x1a3   :  { %v4859_v46 = vpop.f32.mrf.mxu1 }
 0x1a4   :  { %1091 = vrot.lane.b32.xlu2 %v650_v27, %s4308_s22  ;;  %1097 = vrot.lane.b32.xlu0 %v863_v37, %s4308_s22 }
 0x1a7   :  { %v813_v32 = vpop.f32.mrf.mxu2 }
 0x1a8   :  { %1193 = vrot.lane.b32.xlu1 %v804_v47, %s4310_s25 }
 0x1a9   :  { %v872_v49 = vpop.f32.mrf.mxu3 }
 0x1aa   :  { %v668_v50 = vpop.f32.mrf.mxu0 }
 0x1ab   :  { %v733_v51 = vpop.f32.mrf.mxu1 }
 0x1ac   :  { %1144 = vrot.lane.b32.xlu2 %v798_v36, %s4309_s24  ;;  %1189 = vrot.lane.b32.xlu0 %v662_v42, %s4310_s25 }
 0x1ae   :  { %v4866_v52 = vpop.permute.xlu2 %905 }
 0x1af   :  { %6916 = vst [vmem:[#allocation3_spill] sm:$0xff] %v4866_v52 }
 0x1b0   :  { %1191 = vrot.lane.b32.xlu1 %v733_v51, %s4310_s25 }
 0x1b1   :  { %v875_v54 = vpop.f32.mrf.mxu3 }
 0x1b2   :  { %v949_v55 = vpop.permute.xlu1 %948  ;;  %v4869_v56 = vpop.f32.mrf.mxu0 }
 0x1b3   :  { %v4871_v57 = vpop.f32.mrf.mxu1 }
 0x1b4   :  { %1099 = vrot.lane.b32.xlu2 %v653_v31, %s4308_s22  ;;  %1146 = vrot.lane.b32.xlu0 %v869_v44, %s4309_s24 }
 0x1b6   :  { %v4875_v60 = vpop.permute.xlu2 %909 }
 0x1b7   :  { %6917 = vst [vmem:[#allocation4_spill] sm:$0xff] %v4875_v60 }
 0x1b9   :  { %v878_v0 = vpop.f32.mrf.mxu3 }
 0x1ba   :  { %v904_v3 = vpop.permute.xlu1 %903  ;;  %v4877_v4 = vpop.f32.mrf.mxu0 }
 0x1bb   :  { %v739_v5 = vpop.f32.mrf.mxu1 }
 0x1bc   :  { %1105 = vrot.lane.b32.xlu2 %v866_v41, %s4308_s22  ;;  %1242 = vrot.lane.b32.xlu0 %v810_v62, %s4311_s26 }
 0x1bd   :  { %1240 = vrot.lane.b32.xlu1 %v739_v5, %s4311_s26 }
 0x1be   :  { %v4882_v6 = vpop.permute.xlu0 %897  ;;  %v951_v7 = vpop.permute.xlu2 %950 }
 0x1bf   :  { %v4885_v8 = vsel %vm960_vm4, %v949_v55, %v951_v7  ;;  %v912_v22 = vsel %vm911_vm5, %v896_v48, %v4882_v6  ;;  %v975_v40 = vsel %vm960_vm4, %v951_v7, 0.0 }
 0x1c0   :  { %6918 = vst [vmem:[#allocation5_spill] sm:$0xff] %v4885_v8  ;;  %v928_v24 = vadd.f32 %v912_v22, %v4788_v58  ;;  %v915_v58 = vsel %vm911_vm5, %v904_v3, %v4866_v52  ;;  %v5257_v52 = vld [vmem:[%s6830_s5 + $0x180] sm:$0xff]  ;;  %v5316_v8 = vld [vmem:[%s6830_s5 + $0x138] sm:$0xff] }
 0x1c1   :  { %v881_v9 = vpop.f32.mrf.mxu3  ;;  %v932_v34 = vadd.f32 %v915_v58, %v4793_v59  ;;  %v5026_v58 = vld [vmem:[%s6830_s5 + $0x1e0] sm:$0xff] }
 0x1c2   :  { %v957_v10 = vpop.permute.xlu1 %956  ;;  %v4887_v11 = vpop.f32.mrf.mxu0  ;;  %6939 = vst [vmem:[#allocation26_spill] sm:$0xff] %v5026_v58 }
 0x1c3   :  { %6919 = vst [vmem:[#allocation6_spill] sm:$0xff] %v4887_v11  ;;  %v742_v47 = vpop.f32.mrf.mxu1  ;;  %v5240_v11 = vld [vmem:[%s6830_s5] sm:$0xff] }
 0x1c4   :  { %1238 = vrot.lane.b32.xlu0 %v668_v50, %s4311_s26  ;;  %1142 = vrot.lane.b32.xlu2 %v727_v43, %s4309_s24  ;;  %6959 = vst [vmem:[#allocation46_spill] sm:$0xff] %v5240_v11 }
 0x1c5   :  { %1244 = vrot.lane.b32.xlu1 %v881_v9, %s4311_s26 }
 0x1c6   :  { %v945_v12 = vpop.permute.xlu0 %944  ;;  %v4892_v13 = vpop.permute.xlu2 %1046 }
 0x1c7   :  { %6920 = vst [vmem:[#allocation7_spill] sm:$0xff] %v4892_v13 }
 0x1c9   :  { %v884_v33 = vpop.f32.mrf.mxu3 }
 0x1ca   :  { %v4894_v14 = vpop.permute.xlu1 %901  ;;  %v768_v15 = vpop.f32.mrf.mxu0 }
 0x1cb   :  { %v926_v31 = vsel %vm911_vm5, %v4894_v14, 0.0 }
 0x1cc   :  { %899 = vrot.lane.b32.xlu0 %v768_v15, %s4304_s3  ;;  %1154 = vrot.lane.b32.xlu2 %v872_v49, %s4309_s24  ;;  %v931_v35 = vadd.f32 %v926_v31, %v4806_v63 }
 0x1cd   :  { %1201 = vrot.lane.b32.xlu1 %v807_v53, %s4310_s25 }
 0x1ce   :  { %v953_v17 = vpop.permute.xlu0 %952  ;;  %v1002_v18 = vpop.permute.xlu2 %1001  ;;  %v980_v41 = vadd.f32 %v975_v40, %v931_v35 }
 0x1d2   :  { %v998_v19 = vpop.permute.xlu1 %997  ;;  %v771_v20 = vpop.f32.mrf.mxu0 }
 0x1d4   :  { %1101 = vrot.lane.b32.xlu0 %v4849_v39, %s4308_s22  ;;  %1195 = vrot.lane.b32.xlu2 %v875_v54, %s4310_s25  ;;  %s4315_s22 = smov 124  }
 0x1d5   :  { %907 = vrot.lane.b32.xlu1 %v771_v20, %s4304_s3  ;;  %v4993_v20 = vld [vmem:[%s6830_s5 + $0x1f0] sm:$0xff] }
 0x1d6   :  { %v1006_v21 = vpop.permute.xlu0 %1005  ;;  %v959_v16 = vpop.permute.xlu2 %958  ;;  %6933 = vst [vmem:[#allocation20_spill] sm:$0xff] %v4993_v20 }
 0x1d7   :  { %v4906_v23 = vsel %vm960_vm4, %v957_v10, %v959_v16  ;;  %v976_v54 = vsel %vm960_vm4, %v959_v16, 0.0 }
 0x1d8   :  { %6921 = vst [vmem:[#allocation8_spill] sm:$0xff] %v4906_v23  ;;  %v5221_v23 = vld [vmem:[%s6830_s5 + $0xe0] sm:$0xff] }
 0x1da   :  { %v947_v25 = vpop.permute.xlu1 %946 }
 0x1db   :  { %v961_v26 = vsel %vm960_vm4, %v945_v12, %v947_v25  ;;  %v4911_v27 = vsel %vm960_vm4, %v947_v25, %v949_v55  ;;  %v5007_v25 = vld [vmem:[%s6830_s5 + $0x68] sm:$0xff] }
 0x1dc   :  { %v977_v28 = vadd.f32 %v961_v26, %v928_v24  ;;  %1148 = vrot.lane.b32.xlu0 %v4847_v38, %s4309_s24  ;;  %1203 = vrot.lane.b32.xlu2 %v878_v0, %s4310_s25  ;;  %6935 = vst [vmem:[#allocation22_spill] sm:$0xff] %v5007_v25  ;;  %v5012_v26 = vld [vmem:[%s6830_s5 + $0x1e8] sm:$0xff] }
 0x1dd   :  { %1150 = vrot.lane.b32.xlu1 %v4859_v46, %s4309_s24  ;;  %6936 = vst [vmem:[#allocation23_spill] sm:$0xff] %v5012_v26  ;;  %s4316_s24 = smov 123  }
 0x1de   :  { %v994_v29 = vpop.permute.xlu0 %993  ;;  %v4918_v30 = vpop.permute.xlu2 %1054 }
 0x1e2   :  { %v955_v36 = vpop.permute.xlu1 %954 }
 0x1e3   :  { %v964_v37 = vsel %vm960_vm4, %v953_v17, %v955_v36  ;;  %v4928_v38 = vsel %vm960_vm4, %v955_v36, %v957_v10  ;;  %v5051_v36 = vld [vmem:[%s6830_s5 + $0x50] sm:$0xff] }
 0x1e4   :  { %6922 = vst [vmem:[#allocation9_spill] sm:$0xff] %v4928_v38  ;;  %v981_v39 = vadd.f32 %v964_v37, %v932_v34  ;;  %1252 = vrot.lane.b32.xlu0 %v884_v33, %s4311_s26  ;;  %1250 = vrot.lane.b32.xlu2 %v813_v32, %s4311_s26  ;;  %v5037_v33 = vld [vmem:[%s6830_s5 + $0x58] sm:$0xff]  ;;  %v5056_v37 = vld [vmem:[%s6830_s5 + $0x1d0] sm:$0xff] }
 0x1e5   :  { %1197 = vrot.lane.b32.xlu1 %v4857_v45, %s4310_s25  ;;  %v927_v45 = vsel %vm911_vm5, %v4875_v60, 0.0  ;;  %6941 = vst [vmem:[#allocation28_spill] sm:$0xff] %v5037_v33  ;;  %v5042_v34 = vld [vmem:[%s6830_s5 + $0x1d8] sm:$0xff]  ;;  %v5233_v38 = vld [vmem:[%s6830_s5 + $0x188] sm:$0xff] }
 0x1e6   :  { %v1043_v59 = vpop.permute.xlu0 %1042  ;;  %v1000_v63 = vpop.permute.xlu2 %999  ;;  %6942 = vst [vmem:[#allocation29_spill] sm:$0xff] %v5042_v34  ;;  %v5250_v60 = vld [vmem:[%s6830_s5 + $0x158] sm:$0xff] }
 0x1e7   :  { %v4936_v42 = vsel %vm1009_vm6, %v998_v19, %v1000_v63  ;;  %v1024_v43 = vsel %vm1009_vm6, %v1000_v63, 0.0  ;;  %6943 = vst [vmem:[#allocation30_spill] sm:$0xff] %v5051_v36  ;;  %v5070_v63 = vld [vmem:[%s6830_s5 + $0x48] sm:$0xff] }
 0x1e8   :  { %6923 = vst [vmem:[#allocation10_spill] sm:$0xff] %v4936_v42  ;;  %v4939_v44 = vadd.f32 %v1024_v43, %v980_v41  ;;  %v5075_v43 = vld [vmem:[%s6830_s5 + $0x1c8] sm:$0xff]  ;;  %v5297_v42 = vld [vmem:[%s6830_s5 + $0xc0] sm:$0xff] }
 0x1e9   :  { %6944 = vst [vmem:[#allocation31_spill] sm:$0xff] %v5056_v37 }
 0x1ea   :  { %v996_v46 = vpop.permute.xlu1 %995  ;;  %6947 = vst [vmem:[#allocation34_spill] sm:$0xff] %v5070_v63 }
 0x1eb   :  { %v1010_v48 = vsel %vm1009_vm6, %v994_v29, %v996_v46  ;;  %v4943_v49 = vsel %vm1009_vm6, %v996_v46, %v998_v19  ;;  %v4986_v19 = vld [vmem:[%s6830_s5 + $0x70] sm:$0xff]  ;;  %v5021_v29 = vld [vmem:[%s6830_s5 + $0x60] sm:$0xff]  ;;  %6948 = vst [vmem:[#allocation35_spill] sm:$0xff] %v5075_v43 }
 0x1ec   :  { %6924 = vst [vmem:[#allocation11_spill] sm:$0xff] %v4943_v49  ;;  %v1026_v50 = vadd.f32 %v1010_v48, %v977_v28  ;;  %1246 = vrot.lane.b32.xlu0 %v4869_v56, %s4311_s26  ;;  %1199 = vrot.lane.b32.xlu2 %v4871_v57, %s4310_s25  ;;  %v935_v56 = vadd.f32 %v927_v45, %v4815_v2  ;;  %v4976_v2 = vld [vmem:[%s6830_s5 + $0x78] sm:$0xff] }
 0x1ed   :  { %1248 = vrot.lane.b32.xlu1 %v742_v47, %s4311_s26  ;;  %6930 = vst [vmem:[#allocation17_spill] sm:$0xff] %v4976_v2  ;;  %1343 = vmatpush.msrb.mxu0 %v4976_v2  ;;  %v5089_v47 = vld [vmem:[%s6830_s5 + $0x1c0] sm:$0xff]  ;;  %v5094_v48 = vld [vmem:[%s6830_s5 + $0x38] sm:$0xff] }
 0x1ee   :  { %v4952_v51 = vpop.permute.xlu2 %1095  ;;  %v1004_v53 = vpop.permute.xlu0 %1003  ;;  %v984_v3 = vadd.f32 %v976_v54, %v935_v56  ;;  %6932 = vst [vmem:[#allocation19_spill] sm:$0xff] %v4986_v19  ;;  %v5113_v54 = vld [vmem:[%s6830_s5 + $0x1b0] sm:$0xff]  ;;  %v5311_v49 = vld [vmem:[%s6830_s5 + $0xb8] sm:$0xff] }
 0x1ef   :  { %6925 = vst [vmem:[#allocation12_spill] sm:$0xff] %v4952_v51  ;;  %v1013_v55 = vsel %vm1009_vm6, %v1002_v18, %v1004_v53  ;;  %v4957_v62 = vsel %vm1009_vm6, %v1004_v53, %v1006_v21  ;;  %v4981_v18 = vld [vmem:[%s6830_s5 + $0x1f8] sm:$0xff]  ;;  %1344 = vmatpush.msrb.mxu0 %v4986_v19  ;;  %v5108_v53 = vld [vmem:[%s6830_s5 + $0x30] sm:$0xff] }
 0x1f0   :  { %6926 = vst [vmem:[#allocation13_spill] sm:$0xff] %v4957_v62  ;;  %v1030_v0 = vadd.f32 %v1013_v55, %v981_v39  ;;  %1412 = vmatpush.msrb.mxu3 %v4981_v18  ;;  %v5216_v62 = vld [vmem:[%s6830_s5 + $0x8] sm:$0xff] }
 0x1f1   :  { %6931 = vst [vmem:[#allocation18_spill] sm:$0xff] %v4981_v18  ;;  %1345 = vmatpush.msrb.mxu0 %v5007_v25 }
 0x1f2   :  { %v1008_v57 = vpop.permute.xlu1 %1007  ;;  %1413 = vmatpush.msrb.mxu3 %v4993_v20  ;;  %6938 = vst [vmem:[#allocation25_spill] sm:$0xff] %v5021_v29 }
 0x1f3   :  { %v4961_v5 = vsel %vm1009_vm6, %v1006_v21, %v1008_v57  ;;  %v1025_v7 = vsel %vm1009_vm6, %v1008_v57, 0.0  ;;  %1346 = vmatpush.msrb.mxu0 %v5021_v29  ;;  %6951 = vst [vmem:[#allocation38_spill] sm:$0xff] %v5089_v47  ;;  %v5138_v57 = vld [vmem:[%s6830_s5 + $0x20] sm:$0xff] }
 0x1f4   :  { %6927 = vst [vmem:[#allocation14_spill] sm:$0xff] %v4961_v5  ;;  %v1033_v9 = vadd.f32 %v1025_v7, %v984_v3  ;;  %1414 = vmatpush.msrb.mxu3 %v5012_v26  ;;  %v5131_v3 = vld [vmem:[%s6830_s5 + $0x1a8] sm:$0xff]  ;;  %v5143_v7 = vld [vmem:[%s6830_s5 + $0xf8] sm:$0xff] }
 0x1f5   :  { %1347 = vmatpush.msrb.mxu0 %v5037_v33  ;;  %6952 = vst [vmem:[#allocation39_spill] sm:$0xff] %v5094_v48  ;;  %1366 = vmatpush.msra.mxu1 %v5143_v7 }
 0x1f6   :  { %v1051_v10 = vpop.permute.xlu2 %1050  ;;  %v4964_v12 = vpop.permute.xlu0 %1048  ;;  %1415 = vmatpush.msrb.mxu3 %v5026_v58  ;;  %6955 = vst [vmem:[#allocation42_spill] sm:$0xff] %v5113_v54 }
 0x1f7   :  { %v4969_v15 = vsel %vm1058_vm7, %v4892_v13, %v4964_v12  ;;  %1348 = vmatpush.msrb.mxu0 %v5051_v36  ;;  %6958 = vst [vmem:[#allocation45_spill] sm:$0xff] %v5216_v62 }
 0x1f8   :  { %6928 = vst [vmem:[#allocation15_spill] sm:$0xff] %v4969_v15  ;;  %1416 = vmatpush.msrb.mxu3 %v5042_v34  ;;  %v5280_v15 = vld [vmem:[%s6830_s5 + $0x148] sm:$0xff] }
 0x1f9   :  { %1349 = vmatpush.msrb.mxu0 %v5070_v63  ;;  %6961 = vst [vmem:[#allocation48_spill] sm:$0xff] %v5297_v42 }
 0x1fa   :  { %v4971_v17 = vpop.permute.xlu1 %1103  ;;  %1417 = vmatpush.msrb.mxu3 %v5056_v37  ;;  %6962 = vst [vmem:[#allocation49_spill] sm:$0xff] %v5311_v49 }
 0x1fb   :  { %6929 = vst [vmem:[#allocation16_spill] sm:$0xff] %v4971_v17 }
 0x1fc   :  { %1418 = vmatpush.msrb.mxu3 %v5075_v43 }
 0x1fe   :  { %v4997_v21 = vpop.permute.xlu2 %1091  ;;  %v1053_v16 = vpop.permute.xlu0 %1052  ;;  %1419 = vmatpush.msrb.mxu3 %v5089_v47 }
 0x1ff   :  { %v1062_v22 = vsel %vm1058_vm7, %v1051_v10, %v1053_v16  ;;  %v5002_v24 = vsel %vm1058_vm7, %v1053_v16, %v4918_v30  ;;  %v5155_v10 = vld [vmem:[%s6830_s5 + $0x1a0] sm:$0xff]  ;;  %v5160_v16 = vld [vmem:[%s6830_s5 + $0x18] sm:$0xff] }
 0x200   :  { %6934 = vst [vmem:[#allocation21_spill] sm:$0xff] %v5002_v24  ;;  %v5014_v28 = vadd.f32 %v1062_v22, %v1030_v0  ;;  %v5126_v0 = vld [vmem:[%s6830_s5 + $0x28] sm:$0xff]  ;;  %v5165_v22 = vld [vmem:[%s6830_s5 + $0xf0] sm:$0xff] }
 0x201   :  { %1367 = vmatpush.msra.mxu1 %v5165_v22  ;;  %v5201_v24 = vld [vmem:[%s6830_s5 + $0x190] sm:$0xff] }
 0x202   :  { %6937 = vst [vmem:[#allocation24_spill] sm:$0xff] %v5014_v28  ;;  %v5028_v31 = vpop.permute.xlu1 %1044  ;;  %v5264_v28 = vld [vmem:[%s6830_s5 + $0xd0] sm:$0xff] }
 0x203   :  { %6940 = vst [vmem:[#allocation27_spill] sm:$0xff] %v5028_v31  ;;  %v1059_v32 = vsel %vm1058_vm7, %v1043_v59, %v5028_v31 }
 0x204   :  { %v5044_v35 = vadd.f32 %v1059_v32, %v1026_v50  ;;  %v5099_v50 = vld [vmem:[%s6830_s5 + $0x1b8] sm:$0xff]  ;;  %v5172_v32 = vld [vmem:[%s6830_s5 + $0x170] sm:$0xff] }
 0x205   :  { %6953 = vst [vmem:[#allocation40_spill] sm:$0xff] %v5099_v50  ;;  %1420 = vmatpush.msrb.mxu3 %v5099_v50 }
 0x206   :  { %v5058_v39 = vpop.permute.xlu2 %1144  ;;  %v1057_v40 = vpop.permute.xlu0 %1056 }
 0x207   :  { %6945 = vst [vmem:[#allocation32_spill] sm:$0xff] %v5058_v39  ;;  %v5064_v59 = vsel %vm1058_vm7, %v4918_v30, %v1057_v40  ;;  %v1074_v41 = vsel %vm1058_vm7, %v1057_v40, 0.0  ;;  %v5084_v30 = vld [vmem:[%s6830_s5 + $0x40] sm:$0xff]  ;;  %1421 = vmatpush.msrb.mxu3 %v5113_v54  ;;  %v5177_v40 = vld [vmem:[%s6830_s5 + $0x198] sm:$0xff]  ;;  %v5274_v39 = vld [vmem:[%s6830_s5 + $0xc8] sm:$0xff] }
 0x208   :  { %6946 = vst [vmem:[#allocation33_spill] sm:$0xff] %v5064_v59  ;;  %v5077_v46 = vadd.f32 %v1074_v41, %v1033_v9  ;;  %1350 = vmatpush.msrb.mxu0 %v5084_v30  ;;  %v5148_v9 = vld [vmem:[%s6830_s5 + $0x178] sm:$0xff]  ;;  %v5182_v41 = vld [vmem:[%s6830_s5 + $0x10] sm:$0xff]  ;;  %v5191_v59 = vld [vmem:[%s6830_s5 + $0xe8] sm:$0xff] }
 0x209   :  { %6950 = vst [vmem:[#allocation37_spill] sm:$0xff] %v5084_v30  ;;  %1422 = vmatpush.msrb.mxu3 %v5131_v3  ;;  %1389 = vmatpush.msrb.mxu2 %v5148_v9 }
 0x20a   :  { %6949 = vst [vmem:[#allocation36_spill] sm:$0xff] %v5077_v46  ;;  %v5101_v45 = vpop.permute.xlu1 %1152  ;;  %1351 = vmatpush.msrb.mxu0 %v5094_v48  ;;  %v5196_v46 = vld [vmem:[%s6830_s5 + $0x168] sm:$0xff]  ;;  %1368 = vmatpush.msra.mxu1 %v5191_v59 }
 0x20b   :  { %6954 = vst [vmem:[#allocation41_spill] sm:$0xff] %v5101_v45  ;;  %1423 = vmatpush.msrb.mxu3 %v5155_v10  ;;  %1390 = vmatpush.msrb.mxu2 %v5172_v32 }
 0x20c   :  { %1352 = vmatpush.msrb.mxu0 %v5108_v53  ;;  %1369 = vmatpush.msra.mxu1 %v5221_v23 }
 0x20d   :  { %1424 = vmatpush.msrb.mxu3 %v5177_v40  ;;  %1391 = vmatpush.msrb.mxu2 %v5196_v46 }
 0x20e   :  { %v5117_v55 = vpop.permute.xlu2 %1099  ;;  %v5119_v56 = vpop.permute.xlu0 %1093  ;;  %1353 = vmatpush.msrb.mxu0 %v5126_v0  ;;  %1370 = vmatpush.msra.mxu1 %v5245_v1 }
 0x20f   :  { %6956 = vst [vmem:[#allocation43_spill] sm:$0xff] %v5117_v55  ;;  %1425 = vmatpush.msrb.mxu3 %v5201_v24  ;;  %v5269_v55 = vld [vmem:[%s6830_s5 + $0x150] sm:$0xff] }
 0x210   :  { %1354 = vmatpush.msrb.mxu0 %v5138_v57  ;;  %1371 = vmatpush.msra.mxu1 %v5264_v28 }
 0x211   :  { %1426 = vmatpush.msrb.mxu3 %v5233_v38 }
 0x212   :  { %v5184_v45 = vpop.permute.xlu1 %1140  ;;  %1355 = vmatpush.msrb.mxu0 %v5160_v16  ;;  %1372 = vmatpush.msra.mxu1 %v5274_v39 }
 0x213   :  { %1427 = vmatpush.msrb.mxu3 %v5257_v52 }
 0x214   :  { %1356 = vmatpush.msrb.mxu0 %v5182_v41  ;;  %1373 = vmatpush.msra.mxu1 %v5297_v42  ;;  %v5330_v42 = vld [vmem:[%s6830_s5 + $0x130] sm:$0xff] }
 0x215   :  { %1544 = vmatpush.msra.mxu3 %v4981_v18 }
 0x216   :  { %v5207_v17 = vpop.permute.xlu2 %1105  ;;  %v5209_v5 = vpop.permute.xlu0 %1097  ;;  %1357 = vmatpush.msrb.mxu0 %v5216_v62  ;;  %1374 = vmatpush.msra.mxu1 %v5311_v49  ;;  %v5344_v49 = vld [vmem:[%s6830_s5 + $0x128] sm:$0xff] }
 0x217   :  { %6957 = vst [vmem:[#allocation44_spill] sm:$0xff] %v5207_v17  ;;  %v5226_v17 = vld [vmem:[%s6830_s5 + $0x160] sm:$0xff]  ;;  %1545 = vmatpush.msra.mxu3 %v4993_v20 }
 0x218   :  { %1392 = vmatpush.msrb.mxu2 %v5226_v17  ;;  %1358 = vmatpush.msrb.mxu0 %v5240_v11  ;;  %6964 = vst [vmem:[#allocation51_spill] sm:$0xff] %v5344_v49 }
 0x219   :  { %1546 = vmatpush.msra.mxu3 %v5012_v26 }
 0x21a   :  { %1393 = vmatpush.msrb.mxu2 %v5250_v60  ;;  %v5283_v51 = vpop.permute.xlu1 %1193  ;;  %1475 = vmatpush.msra.mxu0 %v4976_v2 }
 0x21b   :  { %6960 = vst [vmem:[#allocation47_spill] sm:$0xff] %v5283_v51  ;;  %v5302_v51 = vld [vmem:[%s6830_s5 + $0x140] sm:$0xff]  ;;  %1547 = vmatpush.msra.mxu3 %v5026_v58 }
 0x21c   :  { %1394 = vmatpush.msrb.mxu2 %v5269_v55  ;;  %1476 = vmatpush.msra.mxu0 %v4986_v19  ;;  %v5325_v19 = vld [vmem:[%s6830_s5 + $0xb0] sm:$0xff] }
 0x21d   :  { %6963 = vst [vmem:[#allocation50_spill] sm:$0xff] %v5325_v19  ;;  %1375 = vmatpush.msra.mxu1 %v5325_v19  ;;  %1548 = vmatpush.msra.mxu3 %v5042_v34  ;;  %v5360_v34 = vld [vmem:[%s6830_s5 + $0xa0] sm:$0xff] }
 0x21e   :  { %v5287_v31 = vpop.permute.xlu0 %1189  ;;  %v5289_v13 = vpop.permute.xlu2 %1142  ;;  %1395 = vmatpush.msrb.mxu2 %v5280_v15  ;;  %1477 = vmatpush.msra.mxu0 %v5007_v25  ;;  %v5339_v25 = vld [vmem:[%s6830_s5 + $0xa8] sm:$0xff]  ;;  %6966 = vst [vmem:[#allocation53_spill] sm:$0xff] %v5360_v34 }
 0x21f   :  { %1376 = vmatpush.msra.mxu1 %v5339_v25  ;;  %1549 = vmatpush.msra.mxu3 %v5056_v37 }
 0x220   :  { %1396 = vmatpush.msrb.mxu2 %v5302_v51  ;;  %1478 = vmatpush.msra.mxu0 %v5021_v29 }
 0x221   :  { %1550 = vmatpush.msra.mxu3 %v5075_v43  ;;  %1377 = vmatpush.msra.mxu1 %v5360_v34  ;;  %v5387_v34 = vld [vmem:[%s6830_s5 + $0x90] sm:$0xff] }
 0x222   :  { %1397 = vmatpush.msrb.mxu2 %v5316_v8  ;;  %1479 = vmatpush.msra.mxu0 %v5037_v33  ;;  %v5351_v29 = vpop.permute.xlu1 %1191  ;;  %v5365_v33 = vld [vmem:[%s6830_s5 + $0x120] sm:$0xff]  ;;  %6968 = vst [vmem:[#allocation55_spill] sm:$0xff] %v5387_v34  ;;  %v5392_v43 = vld [vmem:[%s6830_s5 + $0x110] sm:$0xff] }
 0x223   :  { %1551 = vmatpush.msra.mxu3 %v5089_v47  ;;  %6969 = vst [vmem:[#allocation56_spill] sm:$0xff] %v5392_v43  ;;  %v5405_v47 = vld [vmem:[%s6830_s5 + $0x88] sm:$0xff] }
 0x224   :  { %1398 = vmatpush.msrb.mxu2 %v5330_v42  ;;  %1480 = vmatpush.msra.mxu0 %v5051_v36  ;;  %v5378_v36 = vld [vmem:[%s6830_s5 + $0x118] sm:$0xff]  ;;  %6971 = vst [vmem:[#allocation58_spill] sm:$0xff] %v5405_v47 }
 0x225   :  { %1552 = vmatpush.msra.mxu3 %v5099_v50  ;;  %v5410_v50 = vld [vmem:[%s6830_s5 + $0x108] sm:$0xff] }
 0x226   :  { %v5347_v58 = vpop.permute.xlu0 %1146  ;;  %v5353_v19 = vpop.permute.xlu2 %1154  ;;  %1399 = vmatpush.msrb.mxu2 %v5344_v49  ;;  %1481 = vmatpush.msra.mxu0 %v5070_v63  ;;  %v1073_v63 = vsel %vm1058_vm7, %v4964_v12, 0.0  ;;  %6972 = vst [vmem:[#allocation59_spill] sm:$0xff] %v5410_v50  ;;  %v1108_v12 = vsel %vm1107_vm8, %v4997_v21, %v5119_v56 }
 0x227   :  { %6965 = vst [vmem:[#allocation52_spill] sm:$0xff] %v5353_v19  ;;  %v5373_v19 = vld [vmem:[%s6830_s5 + $0x98] sm:$0xff]  ;;  %1553 = vmatpush.msra.mxu3 %v5113_v54  ;;  %v5426_v54 = vld [vmem:[%s6830_s5 + $0x80] sm:$0xff]  ;;  %v1078_v21 = vadd.f32 %v1073_v63, %v4939_v44  ;;  %v1206_v63 = vsel %vm1205_vm10, %v5287_v31, %v5351_v29 }
 0x228   :  { %1400 = vmatpush.msrb.mxu2 %v5365_v33  ;;  %6967 = vst [vmem:[#allocation54_spill] sm:$0xff] %v5373_v19  ;;  %1378 = vmatpush.msra.mxu1 %v5373_v19 }
 0x229   :  { %1482 = vmatpush.msra.mxu0 %v5084_v30  ;;  %1554 = vmatpush.msra.mxu3 %v5131_v3 }
 0x22a   :  { %1401 = vmatpush.msrb.mxu2 %v5378_v36  ;;  %1379 = vmatpush.msra.mxu1 %v5387_v34  ;;  %v1122_v34 = vsel %vm1107_vm8, %v5209_v5, 0.0 }
 0x22b   :  { %1483 = vmatpush.msra.mxu0 %v5094_v48  ;;  %v5431_v48 = vld [vmem:[%s6830_s5 + $0x100] sm:$0xff]  ;;  %v1127_v44 = vadd.f32 %v1122_v34, %v1078_v21  ;;  %1555 = vmatpush.msra.mxu3 %v5155_v10 }
 0x22c   :  { %1402 = vmatpush.msrb.mxu2 %v5392_v43  ;;  %1380 = vmatpush.msra.mxu1 %v5405_v47  ;;  %v1157_v47 = vsel %vm1156_vm9, %v5184_v45, %v5289_v13  ;;  %v1171_v43 = vsel %vm1156_vm9, %v5347_v58, 0.0 }
 0x22d   :  { %1484 = vmatpush.msra.mxu0 %v5108_v53  ;;  %1556 = vmatpush.msra.mxu3 %v5177_v40 }
 0x22e   :  { %v5400_v19 = vpop.permute.xlu0 %1242  ;;  %1403 = vmatpush.msrb.mxu2 %v5410_v50  ;;  %v5439_v50 = vpop.permute.xlu2 %1195  ;;  %1381 = vmatpush.msra.mxu1 %v5426_v54 }
 0x22f   :  { %6970 = vst [vmem:[#allocation57_spill] sm:$0xff] %v5400_v19  ;;  %v5417_v30 = vpop.permute.xlu1 %1240  ;;  %v1124_v19 = vadd.f32 %v1108_v12, %v5044_v35  ;;  %1485 = vmatpush.msra.mxu0 %v5126_v0  ;;  %v1220_v35 = vsel %vm1205_vm10, %v5439_v50, 0.0  ;;  %v1176_v12 = vadd.f32 %v1171_v43, %v1127_v44  ;;  %1557 = vmatpush.msra.mxu3 %v5201_v24 }
 0x230   :  { %1404 = vmatpush.msrb.mxu2 %v5431_v48  ;;  %1498 = vmatpush.msrb.mxu1 %v5143_v7 }
 0x231   :  { %v1173_v45 = vadd.f32 %v1157_v47, %v1124_v19  ;;  %1486 = vmatpush.msra.mxu0 %v5138_v57  ;;  %v1225_v19 = vadd.f32 %v1220_v35, %v1176_v12  ;;  %1558 = vmatpush.msra.mxu3 %v5233_v38 }
 0x232   :  { %1521 = vmatpush.msra.mxu2 %v5148_v9  ;;  %1499 = vmatpush.msrb.mxu1 %v5165_v22 }
 0x233   :  { %v1222_v34 = vadd.f32 %v1206_v63, %v1173_v45  ;;  %1487 = vmatpush.msra.mxu0 %v5160_v16  ;;  %1559 = vmatpush.msra.mxu3 %v5257_v52 }
 0x234   :  { %1522 = vmatpush.msra.mxu2 %v5172_v32  ;;  %1500 = vmatpush.msrb.mxu1 %v5191_v59 }
 0x235   :  { %1488 = vmatpush.msra.mxu0 %v5182_v41 }
 0x236   :  { %v1239_v31 = vpop.permute.xlu0 %1238  ;;  %1523 = vmatpush.msra.mxu2 %v5196_v46  ;;  %1501 = vmatpush.msrb.mxu1 %v5221_v23 }
 0x237   :  { %v1255_v47 = vsel %vm1254_vm11, %v1239_v31, %v5417_v30  ;;  %v5463_v21 = vpop.permute.xlu1 %1244  ;;  %1489 = vmatpush.msra.mxu0 %v5216_v62 }
 0x238   :  { %v5467_v43 = vadd.f32 %v1255_v47, %v1222_v34  ;;  %v1269_v44 = vsel %vm1254_vm11, %v5463_v21, 0.0  ;;  %1524 = vmatpush.msra.mxu2 %v5226_v17  ;;  %1502 = vmatpush.msrb.mxu1 %v5245_v1 }
 0x239   :  { %v5473_v63 = vadd.f32 %v1269_v44, %v1225_v19  ;;  %1490 = vmatpush.msra.mxu0 %v5240_v11  ;;  %v6974_v44 = vld [vmem:[#allocation48_spill] sm:$0xff]  ;;  %v6987_v11 = vld [vmem:[#allocation43_spill] sm:$0xff] }
 0x23a   :  { %1359 = vmatmul.f32.vlgmr.msrb.gmra.mxu0 %v5467_v43  ;;  %1525 = vmatpush.msra.mxu2 %v5250_v60 }
 0x23b   :  { %1449 = vrot.lane.b32.xlu0 %v5473_v63, %s4304_s3  ;;  %1428 = vmatmul.f32.vlgmr.msrb.gmra.mxu3 %v5473_v63 }
 0x23c   :  { %1526 = vmatpush.msra.mxu2 %v5269_v55  ;;  %1670 = vmatpush.msrb.mxu3 %v4981_v18 }
 0x23d   :  { %1503 = vmatpush.msrb.mxu1 %v5264_v28  ;;  %1601 = vmatpush.msrb.mxu0 %v4976_v2  ;;  %v6979_v2 = vld [vmem:[#allocation7_spill] sm:$0xff] }
 0x23e   :  { %v900_v45 = vpop.permute.xlu0 %899  ;;  %1527 = vmatpush.msra.mxu2 %v5280_v15  ;;  %1671 = vmatpush.msrb.mxu3 %v4993_v20  ;;  %v6978_v20 = vld [vmem:[#allocation26_spill] sm:$0xff] }
 0x23f   :  { %v913_v35 = vsel %vm911_vm5, %v4882_v6, %v900_v45  ;;  %v914_v12 = vsel %vm911_vm5, %v900_v45, %v4894_v14  ;;  %v5492_v34 = vpop.permute.xlu1 %1201  ;;  %1504 = vmatpush.msrb.mxu1 %v5274_v39  ;;  %v6973_v14 = vld [vmem:[#allocation5_spill] sm:$0xff] }
 0x240   :  { %v929_v31 = vadd.f32 %v913_v35, %v4798_v61  ;;  %v930_v19 = vadd.f32 %v914_v12, %v4877_v4  ;;  %1528 = vmatpush.msra.mxu2 %v5302_v51  ;;  %1672 = vmatpush.msrb.mxu3 %v5012_v26  ;;  %v6975_v61 = vld [vmem:[#allocation19_spill] sm:$0xff]  ;;  %v6977_v35 = vld [vmem:[#allocation10_spill] sm:$0xff]  ;;  %v6983_v26 = vld [vmem:[#allocation12_spill] sm:$0xff] }
 0x241   :  { %1505 = vmatpush.msrb.mxu1 %v6974_v44  ;;  %1602 = vmatpush.msrb.mxu0 %v6975_v61  ;;  %v6976_v4 = vld [vmem:[#allocation11_spill] sm:$0xff]  ;;  %v1109_v61 = vsel %vm1107_vm8, %v5119_v56, %v6983_v26 }
 0x242   :  { %v978_v6 = vadd.f32 %v4911_v27, %v929_v31  ;;  %v979_v47 = vadd.f32 %v6973_v14, %v930_v19  ;;  %1529 = vmatpush.msra.mxu2 %v5316_v8  ;;  %1673 = vmatpush.msrb.mxu3 %v6978_v20  ;;  %v6980_v27 = vld [vmem:[#allocation27_spill] sm:$0xff]  ;;  %v6981_v19 = vld [vmem:[#allocation49_spill] sm:$0xff]  ;;  %v6982_v14 = vld [vmem:[#allocation22_spill] sm:$0xff]  ;;  %v5529_v20 = vpop.permute.xlu2 %1203 }
 0x243   :  { %v1060_v31 = vsel %vm1058_vm7, %v6980_v27, %v6979_v2  ;;  %1506 = vmatpush.msrb.mxu1 %v6981_v19  ;;  %1603 = vmatpush.msrb.mxu0 %v6982_v14  ;;  %v1110_v2 = vsel %vm1107_vm8, %v6983_v26, %v5209_v5  ;;  %v6986_v27 = vld [vmem:[#allocation32_spill] sm:$0xff]  ;;  %v6991_v5 = vld [vmem:[#allocation3_spill] sm:$0xff] }
 0x244   :  { %v1027_v45 = vadd.f32 %v6976_v4, %v978_v6  ;;  %v1028_v12 = vadd.f32 %v6977_v35, %v979_v47  ;;  %1530 = vmatpush.msra.mxu2 %v5330_v42  ;;  %v6984_v6 = vld [vmem:[#allocation15_spill] sm:$0xff]  ;;  %v6985_v35 = vld [vmem:[#allocation29_spill] sm:$0xff]  ;;  %v1158_v14 = vsel %vm1156_vm9, %v5289_v13, %v6986_v27  ;;  %v6990_v19 = vld [vmem:[#allocation24_spill] sm:$0xff]  ;;  %v1159_v13 = vsel %vm1156_vm9, %v6986_v27, %v5347_v58 }
 0x245   :  { %1674 = vmatpush.msrb.mxu3 %v6985_v35 }
 0x246   :  { %v1076_v18 = vadd.f32 %v1060_v31, %v1027_v45  ;;  %v1077_v4 = vadd.f32 %v6984_v6, %v1028_v12  ;;  %v1102_v47 = vpop.permute.xlu0 %1101  ;;  %1531 = vmatpush.msra.mxu2 %v5344_v49  ;;  %v6988_v12 = vld [vmem:[#allocation50_spill] sm:$0xff]  ;;  %v6989_v31 = vld [vmem:[#allocation25_spill] sm:$0xff] }
 0x247   :  { %v1111_v56 = vsel %vm1107_vm8, %v6987_v11, %v1102_v47  ;;  %v908_v45 = vpop.permute.xlu1 %907  ;;  %1507 = vmatpush.msrb.mxu1 %v6988_v12  ;;  %1604 = vmatpush.msrb.mxu0 %v6989_v31  ;;  %v6992_v11 = vld [vmem:[#allocation4_spill] sm:$0xff]  ;;  %v6993_v12 = vld [vmem:[#allocation2_spill] sm:$0xff]  ;;  %v7009_v31 = vld [vmem:[#allocation59_spill] sm:$0xff] }
 0x248   :  { %v1125_v6 = vadd.f32 %v1109_v61, %v1076_v18  ;;  %v1126_v35 = vadd.f32 %v1110_v2, %v1077_v4  ;;  %v5536_v49 = vadd.f32 %v1111_v56, %v6990_v19  ;;  %v916_v26 = vsel %vm911_vm5, %v6991_v5, %v908_v45  ;;  %1532 = vmatpush.msra.mxu2 %v5365_v33  ;;  %v6994_v18 = vld [vmem:[#allocation6_spill] sm:$0xff]  ;;  %v6995_v2 = vld [vmem:[#allocation28_spill] sm:$0xff]  ;;  %v6996_v56 = vld [vmem:[#allocation47_spill] sm:$0xff] }
 0x249   :  { %v917_v62 = vsel %vm911_vm5, %v908_v45, %v6992_v11  ;;  %v933_v44 = vadd.f32 %v916_v26, %v6993_v12  ;;  %1675 = vmatpush.msrb.mxu3 %v5056_v37  ;;  %1508 = vmatpush.msrb.mxu1 %v5339_v25  ;;  %v1207_v58 = vsel %vm1205_vm10, %v5351_v29, %v6996_v56  ;;  %v6997_v45 = vld [vmem:[#allocation9_spill] sm:$0xff]  ;;  %v6998_v5 = vld [vmem:[#allocation35_spill] sm:$0xff]  ;;  %v7002_v11 = vld [vmem:[#allocation30_spill] sm:$0xff] }
 0x24a   :  { %v934_v61 = vadd.f32 %v917_v62, %v6994_v18  ;;  %v1174_v19 = vadd.f32 %v1158_v14, %v1125_v6  ;;  %v1175_v4 = vadd.f32 %v1159_v13, %v1126_v35  ;;  %1533 = vmatpush.msra.mxu2 %v5378_v36  ;;  %1605 = vmatpush.msrb.mxu0 %v6995_v2  ;;  %v6999_v26 = vld [vmem:[#allocation53_spill] sm:$0xff]  ;;  %v7000_v62 = vld [vmem:[#allocation8_spill] sm:$0xff] }
 0x24b   :  { %v1208_v27 = vsel %vm1205_vm10, %v6996_v56, %v5439_v50  ;;  %v982_v12 = vadd.f32 %v6997_v45, %v933_v44  ;;  %1676 = vmatpush.msrb.mxu3 %v6998_v5  ;;  %1509 = vmatpush.msrb.mxu1 %v6999_v26  ;;  %v7001_v13 = vld [vmem:[#allocation56_spill] sm:$0xff]  ;;  %v7004_v2 = vld [vmem:[#allocation57_spill] sm:$0xff]  ;;  %v7010_v5 = vld [vmem:[#allocation34_spill] sm:$0xff] }
 0x24c   :  { %v983_v14 = vadd.f32 %v7000_v62, %v934_v61  ;;  %v1223_v35 = vadd.f32 %v1207_v58, %v1174_v19  ;;  %v1224_v6 = vadd.f32 %v1208_v27, %v1175_v4  ;;  %1534 = vmatpush.msra.mxu2 %v7001_v13  ;;  %1606 = vmatpush.msrb.mxu0 %v7002_v11  ;;  %v7003_v18 = vld [vmem:[#allocation44_spill] sm:$0xff]  ;;  %v7005_v56 = vld [vmem:[#allocation13_spill] sm:$0xff]  ;;  %v7006_v61 = vld [vmem:[#allocation38_spill] sm:$0xff] }
 0x24d   :  { %v1123_v29 = vsel %vm1107_vm8, %v7003_v18, 0.0  ;;  %v1256_v50 = vsel %vm1254_vm11, %v5417_v30, %v7004_v2  ;;  %v1257_v44 = vsel %vm1254_vm11, %v7004_v2, %v5463_v21  ;;  %v1031_v45 = vadd.f32 %v7005_v56, %v982_v12  ;;  %1677 = vmatpush.msrb.mxu3 %v7006_v61  ;;  %v7007_v19 = vld [vmem:[#allocation54_spill] sm:$0xff]  ;;  %v7011_v30 = vld [vmem:[#allocation16_spill] sm:$0xff]  ;;  %v7012_v21 = vld [vmem:[#allocation21_spill] sm:$0xff] }
 0x24e   :  { %1510 = vmatpush.msrb.mxu1 %v7007_v19  ;;  %v7008_v4 = vld [vmem:[#allocation14_spill] sm:$0xff]  ;;  %v1149_v27 = vpop.permute.xlu0 %1148  ;;  %v1272_v62 = vadd.f32 %v1256_v50, %v1223_v35  ;;  %v1273_v11 = vadd.f32 %v1257_v44, %v1224_v6  ;;  %1535 = vmatpush.msra.mxu2 %v7009_v31  ;;  %v1113_v37 = vsel %vm1107_vm8, %v7011_v30, %v7003_v18  ;;  %v7013_v56 = vld [vmem:[#allocation40_spill] sm:$0xff]  ;;  %v7014_v61 = vld [vmem:[#allocation55_spill] sm:$0xff]  ;;  %v1251_v18 = vpop.permute.xlu2 %1250 }
 0x24f   :  { %v1032_v58 = vadd.f32 %v7008_v4, %v983_v14  ;;  %1607 = vmatpush.msrb.mxu0 %v7010_v5  ;;  %v1080_v2 = vadd.f32 %v7012_v21, %v1031_v45  ;;  %v1151_v12 = vpop.permute.xlu1 %1150  ;;  %1678 = vmatpush.msrb.mxu3 %v7013_v56  ;;  %v7015_v19 = vld [vmem:[#allocation36_spill] sm:$0xff]  ;;  %v1112_v35 = vsel %vm1107_vm8, %v1102_v47, %v7011_v30  ;;  %v7016_v6 = vld [vmem:[#allocation33_spill] sm:$0xff]  ;;  %v7019_v47 = vld [vmem:[#allocation42_spill] sm:$0xff]  ;;  %v1221_v30 = vsel %vm1205_vm10, %v5529_v20, 0.0 }
 0x250   :  { %1511 = vmatpush.msrb.mxu1 %v7014_v61  ;;  %v1131_v14 = vadd.f32 %v1123_v29, %v7015_v19  ;;  %1405 = vmatmul.f32.vlgmr.msrb.gmra.mxu2 %v1273_v11  ;;  %v7017_v44 = vld [vmem:[#allocation52_spill] sm:$0xff]  ;;  %v5591_v45 = vpack.i.bf16 %v5467_v43, %v1273_v11  ;;  %v7018_v21 = vld [vmem:[#allocation41_spill] sm:$0xff]  ;;  %v7020_v43 = vld [vmem:[#allocation58_spill] sm:$0xff] }
 0x251   :  { %v1081_v50 = vadd.f32 %v7016_v6, %v1032_v58  ;;  %1382 = vmatmul.f32.vlgmr.msra.gmra.mxu1 %v1272_v62  ;;  %v1172_v4 = vsel %vm1156_vm9, %v7017_v44, 0.0  ;;  %v1129_v5 = vadd.f32 %v1112_v35, %v1080_v2  ;;  %1536 = vmatpush.msra.mxu2 %v5431_v48  ;;  %v1161_v29 = vsel %vm1156_vm9, %v1151_v12, %v7018_v21  ;;  %v7021_v6 = vld [vmem:[#allocation37_spill] sm:$0xff] }
 0x252   :  { %1679 = vmatpush.msrb.mxu3 %v7019_v47  ;;  %v1162_v58 = vsel %vm1156_vm9, %v7018_v21, %v7017_v44  ;;  %4257 = vrot.lane.b32.xlu2 %v5591_v45, %s4304_s3  ;;  %v1180_v11 = vadd.f32 %v1172_v4, %v1131_v14 }
 0x253   :  { %v1130_v19 = vadd.f32 %v1113_v37, %v1081_v50  ;;  %1647 = vmatpush.msrb.mxu2 %v5148_v9  ;;  %v1178_v2 = vadd.f32 %v1161_v29, %v1129_v5  ;;  %1512 = vmatpush.msrb.mxu1 %v7020_v43  ;;  %v1211_v37 = vsel %vm1205_vm10, %v5492_v34, %v5529_v20  ;;  %v7022_v29 = vld [vmem:[#allocation39_spill] sm:$0xff] }
 0x254   :  { %1680 = vmatpush.msrb.mxu3 %v5131_v3  ;;  %1608 = vmatpush.msrb.mxu0 %v7021_v6  ;;  %v1229_v5 = vadd.f32 %v1221_v30, %v1180_v11 }
 0x255   :  { %v1179_v35 = vadd.f32 %v1162_v58, %v1130_v19  ;;  %1648 = vmatpush.msrb.mxu2 %v5172_v32  ;;  %1513 = vmatpush.msrb.mxu1 %v5426_v54  ;;  %v1160_v58 = vsel %vm1156_vm9, %v1149_v27, %v1151_v12 }
 0x256   :  { %v1253_v50 = vpop.permute.xlu0 %1252  ;;  %1681 = vmatpush.msrb.mxu3 %v5155_v10  ;;  %1609 = vmatpush.msrb.mxu0 %v7022_v29  ;;  %v1200_v11 = vpop.permute.xlu2 %1199  ;;  %v1177_v27 = vadd.f32 %v1160_v58, %v5536_v49  ;;  %v7027_v58 = vld [vmem:[#allocation46_spill] sm:$0xff] }
 0x257   :  { %v1228_v44 = vadd.f32 %v1211_v37, %v1179_v35  ;;  %1649 = vmatpush.msrb.mxu2 %v5196_v46  ;;  %1624 = vmatpush.msra.mxu1 %v5143_v7  ;;  %v1260_v14 = vsel %vm1254_vm11, %v1251_v18, %v1253_v50  ;;  %v1270_v4 = vsel %vm1254_vm11, %v1253_v50, 0.0  ;;  %v1198_v21 = vpop.permute.xlu1 %1197 }
 0x258   :  { %v5619_v19 = vadd.f32 %v1270_v4, %v1229_v5  ;;  %1682 = vmatpush.msrb.mxu3 %v5177_v40  ;;  %1610 = vmatpush.msrb.mxu0 %v5108_v53  ;;  %v1209_v35 = vsel %vm1205_vm10, %v1198_v21, %v1200_v11  ;;  %v7024_v4 = vld [vmem:[#allocation45_spill] sm:$0xff]  ;;  %v7025_v21 = vld [vmem:[#allocation51_spill] sm:$0xff] }
 0x259   :  { %v1277_v20 = vadd.f32 %v1260_v14, %v1228_v44  ;;  %1650 = vmatpush.msrb.mxu2 %v5226_v17  ;;  %1625 = vmatpush.msra.mxu1 %v5165_v22  ;;  %v1226_v37 = vadd.f32 %v1209_v35, %v1177_v27  ;;  %v7029_v35 = vld [vmem:[#allocation54_spill] sm:$0xff] }
 0x25a   :  { %1431 = vmatmul.f32.gmra.mxu3 %v5619_v19  ;;  %1457 = vrot.lane.b32.xlu2 %v5619_v19, %s4304_s3 }
 0x25b   :  { %1408 = vmatmul.f32.gmra.mxu2 %v1277_v20  ;;  %v4261_v30 = vpack.i.bf16 %v1277_v20, %v1272_v62  ;;  %1626 = vmatpush.msra.mxu1 %v5191_v59  ;;  %v1210_v62 = vsel %vm1205_vm10, %v1200_v11, %v5492_v34  ;;  %v7026_v20 = vld [vmem:[#allocation49_spill] sm:$0xff]  ;;  %v7028_v11 = vld [vmem:[#allocation50_spill] sm:$0xff] }
 0x25c   :  { %1651 = vmatpush.msrb.mxu2 %v5250_v60  ;;  %1683 = vmatpush.msrb.mxu3 %v5201_v24  ;;  %v1227_v5 = vadd.f32 %v1210_v62, %v1178_v2 }
 0x25d   :  { %4262 = vrot.lane.b32.xlu1 %v4261_v30, %s4304_s3  ;;  %1627 = vmatpush.msra.mxu1 %v5221_v23 }
 0x25e   :  { %1652 = vmatpush.msrb.mxu2 %v5269_v55  ;;  %v1247_v12 = vpop.permute.xlu0 %1246  ;;  %1611 = vmatpush.msrb.mxu0 %v5126_v0 }
 0x25f   :  { %v1249_v50 = vpop.permute.xlu1 %1248  ;;  %1684 = vmatpush.msrb.mxu3 %v5233_v38  ;;  %1628 = vmatpush.msra.mxu1 %v5245_v1 }
 0x260   :  { %1653 = vmatpush.msrb.mxu2 %v5280_v15  ;;  %v1258_v49 = vsel %vm1254_vm11, %v1247_v12, %v1249_v50  ;;  %v1259_v44 = vsel %vm1254_vm11, %v1249_v50, %v1251_v18  ;;  %1612 = vmatpush.msrb.mxu0 %v5138_v57  ;;  %v7023_v18 = vld [vmem:[#allocation48_spill] sm:$0xff]  ;;  %v7033_v50 = vld [vmem:[#allocation26_spill] sm:$0xff] }
 0x261   :  { %v1275_v34 = vadd.f32 %v1258_v49, %v1226_v37  ;;  %v1276_v14 = vadd.f32 %v1259_v44, %v1227_v5  ;;  %1685 = vmatpush.msrb.mxu3 %v5257_v52  ;;  %1629 = vmatpush.msra.mxu1 %v5264_v28  ;;  %v7031_v37 = vld [vmem:[#allocation20_spill] sm:$0xff]  ;;  %v7034_v49 = vld [vmem:[#allocation29_spill] sm:$0xff]  ;;  %v7035_v44 = vld [vmem:[#allocation31_spill] sm:$0xff] }
 0x262   :  { %1654 = vmatpush.msrb.mxu2 %v5302_v51  ;;  %1613 = vmatpush.msrb.mxu0 %v5160_v16 }
 0x263   :  { %1575 = vrot.lane.b32.xlu2 %v5473_v63, %s4306_s2  ;;  %1362 = vmatmul.f32.gmra.mxu0 %v1275_v34  ;;  %v4271_v2 = vpack.i.bf16 %v1276_v14, %v1275_v34  ;;  %v7037_v34 = vld [vmem:[#allocation38_spill] sm:$0xff] }
 0x264   :  { %1385 = vmatmul.f32.gmra.mxu1 %v1276_v14  ;;  %1655 = vmatpush.msrb.mxu2 %v5316_v8 }
 0x265   :  { %4267 = vrot.lane.b32.xlu1 %v5591_v45, %s4306_s2  ;;  %4272 = vrot.lane.b32.xlu0 %v4271_v2, %s4304_s3 }
 0x266   :  { %1630 = vmatpush.msra.mxu1 %v5274_v39  ;;  %1614 = vmatpush.msrb.mxu0 %v5182_v41 }
 0x267   :  { %1656 = vmatpush.msrb.mxu2 %v5330_v42 }
 0x268   :  { %1631 = vmatpush.msra.mxu1 %v7023_v18  ;;  %1615 = vmatpush.msrb.mxu0 %v7024_v4 }
 0x269   :  { %1657 = vmatpush.msrb.mxu2 %v7025_v21 }
 0x26a   :  { %1632 = vmatpush.msra.mxu1 %v7026_v20  ;;  %1616 = vmatpush.msrb.mxu0 %v7027_v58 }
 0x26b   :  { %4287 = vrot.lane.b32.xlu2 %v4271_v2, %s4306_s2  ;;  %1658 = vmatpush.msrb.mxu2 %v5365_v33 }
 0x26c   :  { %1633 = vmatpush.msra.mxu1 %v7028_v11 }
 0x26d   :  { %1583 = vrot.lane.b32.xlu1 %v5619_v19, %s4306_s2  ;;  %4277 = vrot.lane.b32.xlu0 %v4261_v30, %s4306_s2 }
 0x26e   :  { %1659 = vmatpush.msrb.mxu2 %v5378_v36  ;;  %1634 = vmatpush.msra.mxu1 %v5339_v25 }
 0x270   :  { %1660 = vmatpush.msrb.mxu2 %v7001_v13  ;;  %1635 = vmatpush.msra.mxu1 %v6999_v26 }
 0x272   :  { %1661 = vmatpush.msrb.mxu2 %v7009_v31  ;;  %1636 = vmatpush.msra.mxu1 %v7029_v35 }
 0x273   :  { %4292 = vrot.lane.b32.xlu2 %v4261_v30, %s4307_s21  ;;  %v1821_v30 = vld [vmem:[%s6831_s4] sm:$0xff] }
 0x274   :  { %1662 = vmatpush.msrb.mxu2 %v5431_v48  ;;  %1637 = vmatpush.msra.mxu1 %v7014_v61 }
 0x275   :  { %1701 = vrot.lane.b32.xlu1 %v5473_v63, %s4307_s21  ;;  %4282 = vrot.lane.b32.xlu0 %v5591_v45, %s4307_s21  ;;  %v7030_v45 = vld [vmem:[#allocation18_spill] sm:$0xff] }
 0x276   :  { %1638 = vmatpush.msra.mxu1 %v7020_v43 }
 0x278   :  { %1639 = vmatpush.msra.mxu1 %v5426_v54 }
 0x27d   :  { %4297 = vrot.lane.b32.xlu1 %v4271_v2, %s4307_s21  ;;  %1709 = vrot.lane.b32.xlu0 %v5619_v19, %s4307_s21  ;;  %v7032_v19 = vld [vmem:[#allocation23_spill] sm:$0xff] }
 0x285   :  { %1825 = vperm.xlu0 %4255, %v1821_v30  }
 0x2ac   :  { %v4258_v27 = vpop.permute.xlu2 %4257 }
 0x2ad   :  { %v1450_v63 = vpop.permute.xlu0 %1449  ;;  %v4259_v62 = vunpack.i.l.bf16 %v4258_v27 }
 0x2ae   :  { %3927 = vmatmul.msk.f32.vlgmr.msra.gmra.mxu3 %vm911_vm5, %v1450_v63 }
 0x2af   :  { %1796 = vmatpush.msra.mxu3 %v7030_v45  ;;  %v1461_v12 = vsel %vm911_vm5, %v4259_v62, %v1450_v63 }
 0x2b0   :  { %1537 = vmatmul.f32.vlgmr.msra.gmra.mxu2 %v1461_v12 }
 0x2b1   :  { %1797 = vmatpush.msra.mxu3 %v7031_v37  ;;  %1773 = vmatpush.msra.mxu2 %v5148_v9  ;;  %v7036_v9 = vld [vmem:[#allocation35_spill] sm:$0xff] }
 0x2b3   :  { %1798 = vmatpush.msra.mxu3 %v7032_v19  ;;  %1774 = vmatpush.msra.mxu2 %v5172_v32 }
 0x2b4   :  { %v1458_v5 = vpop.permute.xlu2 %1457 }
 0x2b5   :  { %1799 = vmatpush.msra.mxu3 %v7033_v50  ;;  %1775 = vmatpush.msra.mxu2 %v5196_v46 }
 0x2b6   :  { %3928 = vmatmul.msk.f32.gmra.mxu3 %vm911_vm5, %v1458_v5 }
 0x2b7   :  { %1800 = vmatpush.msra.mxu3 %v7034_v49  ;;  %1776 = vmatpush.msra.mxu2 %v5226_v17  ;;  %v1360_v19 = vpop.f32.mrf.mxu0 }
 0x2b9   :  { %1801 = vmatpush.msra.mxu3 %v7035_v44  ;;  %1777 = vmatpush.msra.mxu2 %v5250_v60 }
 0x2bb   :  { %1802 = vmatpush.msra.mxu3 %v7036_v9  ;;  %1778 = vmatpush.msra.mxu2 %v5269_v55 }
 0x2bd   :  { %v1576_v32 = vpop.permute.xlu2 %1575  ;;  %1803 = vmatpush.msra.mxu3 %v7037_v34  ;;  %1779 = vmatpush.msra.mxu2 %v5280_v15 }
 0x2be   :  { %3929 = vmatmul.msk.f32.vlgmr.msrb.gmra.mxu3 %vm1009_vm6, %v1576_v32 }
 0x2bf   :  { %1804 = vmatpush.msra.mxu3 %v7013_v56  ;;  %1780 = vmatpush.msra.mxu2 %v5302_v51 }
 0x2c1   :  { %1805 = vmatpush.msra.mxu3 %v7019_v47  ;;  %1781 = vmatpush.msra.mxu2 %v5316_v8  ;;  %v4260_v8 = vunpack.i.h.bf16 %v4258_v27 }
 0x2c3   :  { %1806 = vmatpush.msra.mxu3 %v5131_v3  ;;  %1782 = vmatpush.msra.mxu2 %v5330_v42 }
 0x2c5   :  { %1807 = vmatpush.msra.mxu3 %v5155_v10  ;;  %1783 = vmatpush.msra.mxu2 %v7025_v21  ;;  %v7041_v10 = vld [vmem:[#allocation25_spill] sm:$0xff]  ;;  %v7044_v21 = vld [vmem:[#allocation34_spill] sm:$0xff] }
 0x2c7   :  { %1808 = vmatpush.msra.mxu3 %v5177_v40  ;;  %1784 = vmatpush.msra.mxu2 %v5365_v33 }
 0x2c9   :  { %1809 = vmatpush.msra.mxu3 %v5201_v24  ;;  %1785 = vmatpush.msra.mxu2 %v5378_v36 }
 0x2cb   :  { %1810 = vmatpush.msra.mxu3 %v5233_v38  ;;  %1786 = vmatpush.msra.mxu2 %v7001_v13  ;;  %v7038_v38 = vld [vmem:[#allocation17_spill] sm:$0xff]  ;;  %v7043_v13 = vld [vmem:[#allocation30_spill] sm:$0xff] }
 0x2cd   :  { %1811 = vmatpush.msra.mxu3 %v5257_v52  ;;  %1787 = vmatpush.msra.mxu2 %v7009_v31  ;;  %v7039_v52 = vld [vmem:[#allocation19_spill] sm:$0xff] }
 0x2cf   :  { %v4263_v60 = vpop.permute.xlu1 %4262  ;;  %1788 = vmatpush.msra.mxu2 %v5431_v48  ;;  %v7040_v48 = vld [vmem:[#allocation22_spill] sm:$0xff] }
 0x2d0   :  { %v4265_v42 = vunpack.i.h.bf16 %v4263_v60  ;;  %v4264_v51 = vunpack.i.l.bf16 %v4263_v60 }
 0x2d2   :  { %v1459_v15 = vsel %vm911_vm5, %v4260_v8, %v4264_v51  ;;  %v1460_v17 = vsel %vm911_vm5, %v4264_v51, %v4259_v62  ;;  %v1464_v24 = vsel %vm911_vm5, %v4265_v42, %v1458_v5  ;;  %v1383_v5 = vpop.f32.mrf.mxu1 }
 0x2d3   :  { %1491 = vmatmul.f32.vlgmr.msra.gmra.mxu0 %v1459_v15  ;;  %1514 = vmatmul.f32.vlgmr.msrb.gmra.mxu1 %v1460_v17  ;;  %v1406_v37 = vpop.f32.mrf.mxu2 }
 0x2d4   :  { %1540 = vmatmul.f32.gmra.mxu2 %v1464_v24  ;;  %1727 = vmatpush.msra.mxu0 %v7038_v38 }
 0x2d5   :  { %1750 = vmatpush.msrb.mxu1 %v5143_v7 }
 0x2d6   :  { %1728 = vmatpush.msra.mxu0 %v7039_v52 }
 0x2d7   :  { %1751 = vmatpush.msrb.mxu1 %v5165_v22  ;;  %v4268_v33 = vpop.permute.xlu1 %4267  ;;  %v4273_v36 = vpop.permute.xlu0 %4272  ;;  %v7042_v22 = vld [vmem:[#allocation28_spill] sm:$0xff] }
 0x2d8   :  { %v4269_v46 = vunpack.i.l.bf16 %v4268_v33  ;;  %1729 = vmatpush.msra.mxu0 %v7040_v48  ;;  %v4275_v55 = vunpack.i.h.bf16 %v4273_v36  ;;  %v4274_v3 = vunpack.i.l.bf16 %v4273_v36  ;;  %v4270_v47 = vunpack.i.h.bf16 %v4268_v33 }
 0x2d9   :  { %1752 = vmatpush.msrb.mxu1 %v5191_v59  ;;  %v1822_v59 = vld [vmem:[%s6831_s4 + $0x8] sm:$0xff] }
 0x2da   :  { %1730 = vmatpush.msra.mxu0 %v7041_v10  ;;  %v1587_v40 = vsel %vm1009_vm6, %v4269_v46, %v1576_v32  ;;  %v1462_v7 = vsel %vm911_vm5, %v4274_v3, %v4275_v55  ;;  %v1463_v31 = vsel %vm911_vm5, %v4275_v55, %v4265_v42  ;;  %1830 = vperm.xlu2 %4301, %v1822_v59  }
 0x2db   :  { %1753 = vmatpush.msrb.mxu1 %v5221_v23  ;;  %1494 = vmatmul.f32.gmra.mxu0 %v1462_v7  ;;  %v1384_v7 = vadd.f32 %v1383_v5, %v1360_v19 }
 0x2dc   :  { %1517 = vmatmul.f32.gmra.mxu1 %v1463_v31  ;;  %1663 = vmatmul.f32.vlgmr.msrb.gmra.mxu2 %v1587_v40 }
 0x2dd   :  { %1731 = vmatpush.msra.mxu0 %v7042_v22  ;;  %1754 = vmatpush.msrb.mxu1 %v5245_v1 }
 0x2de   :  { %v1409_v50 = vpop.f32.mrf.mxu2 }
 0x2df   :  { %1732 = vmatpush.msra.mxu0 %v7043_v13  ;;  %v1584_v56 = vpop.permute.xlu1 %1583  ;;  %1755 = vmatpush.msrb.mxu1 %v5264_v28  ;;  %v4278_v23 = vpop.permute.xlu0 %4277 }
 0x2e0   :  { %3930 = vmatmul.msk.f32.gmra.mxu3 %vm1009_vm6, %v1584_v56  ;;  %v4280_v14 = vunpack.i.h.bf16 %v4278_v23  ;;  %v4279_v2 = vunpack.i.l.bf16 %v4278_v23  ;;  %v4288_v28 = vpop.permute.xlu2 %4287  ;;  %v1363_v49 = vpop.f32.mrf.mxu0 }
 0x2e1   :  { %1733 = vmatpush.msra.mxu0 %v7044_v21  ;;  %1756 = vmatpush.msrb.mxu1 %v5274_v39  ;;  %v4290_v39 = vunpack.i.h.bf16 %v4288_v28  ;;  %v4289_v62 = vunpack.i.l.bf16 %v4288_v28  ;;  %v1386_v44 = vpop.f32.mrf.mxu1 }
 0x2e2   :  { %v1585_v1 = vsel %vm1009_vm6, %v4270_v47, %v4279_v2  ;;  %v1586_v30 = vsel %vm1009_vm6, %v4279_v2, %v4269_v46  ;;  %v1590_v63 = vsel %vm1009_vm6, %v4280_v14, %v1584_v56  ;;  %v1387_v31 = vadd.f32 %v1386_v44, %v1363_v49  ;;  %v5820_v44 = vld [vmem:[%s6832_s8 + $0x50] sm:$0xff] }
 0x2e3   :  { %1734 = vmatpush.msra.mxu0 %v7021_v6  ;;  %1757 = vmatpush.msrb.mxu1 %v7023_v18  ;;  %v1407_v47 = vadd.f32 %v1406_v37, %v1384_v7  ;;  %v5806_v37 = vld [vmem:[%s6832_s8 + $0x60] sm:$0xff] }
 0x2e4   :  { %1617 = vmatmul.f32.vlgmr.msrb.gmra.mxu0 %v1585_v1  ;;  %1640 = vmatmul.f32.vlgmr.msra.gmra.mxu1 %v1586_v30  ;;  %v1410_v1 = vadd.f32 %v1409_v50, %v1387_v31 }
 0x2e5   :  { %1666 = vmatmul.f32.gmra.mxu2 %v1590_v63  ;;  %1735 = vmatpush.msra.mxu0 %v7022_v29  ;;  %v1588_v29 = vsel %vm1009_vm6, %v4289_v62, %v4290_v39 }
 0x2e6   :  { %1758 = vmatpush.msrb.mxu1 %v7026_v20 }
 0x2e7   :  { %v1702_v27 = vpop.permute.xlu1 %1701  ;;  %1736 = vmatpush.msra.mxu0 %v5108_v53  ;;  %v4283_v6 = vpop.permute.xlu0 %4282  ;;  %v1589_v53 = vsel %vm1009_vm6, %v4290_v39, %v4280_v14 }
 0x2e8   :  { %1759 = vmatpush.msrb.mxu1 %v7028_v11  ;;  %v4284_v45 = vunpack.i.l.bf16 %v4283_v6  ;;  %3931 = vmatmul.msk.f32.vlgmr.msra.gmra.mxu3 %vm1058_vm7, %v1702_v27  ;;  %v4293_v20 = vpop.permute.xlu2 %4292 }
 0x2e9   :  { %1737 = vmatpush.msra.mxu0 %v5126_v0  ;;  %v4285_v0 = vunpack.i.h.bf16 %v4283_v6 }
 0x2ea   :  { %1760 = vmatpush.msrb.mxu1 %v5339_v25  ;;  %v1713_v18 = vsel %vm1058_vm7, %v4284_v45, %v1702_v27 }
 0x2eb   :  { %1738 = vmatpush.msra.mxu0 %v5138_v57  ;;  %v4294_v57 = vunpack.i.l.bf16 %v4293_v20 }
 0x2ec   :  { %1761 = vmatpush.msrb.mxu1 %v6999_v26  ;;  %1620 = vmatmul.f32.gmra.mxu0 %v1588_v29  ;;  %v4295_v26 = vunpack.i.h.bf16 %v4293_v20 }
 0x2ed   :  { %1643 = vmatmul.f32.gmra.mxu1 %v1589_v53  ;;  %1789 = vmatmul.f32.vlgmr.msra.gmra.mxu2 %v1713_v18  ;;  %v5785_v53 = vld [vmem:[%s6832_s8 + $0x78] sm:$0xff] }
 0x2ee   :  { %1739 = vmatpush.msra.mxu0 %v5160_v16  ;;  %1762 = vmatpush.msrb.mxu1 %v7029_v35  ;;  %v1711_v16 = vsel %vm1058_vm7, %v4285_v0, %v4294_v57 }
 0x2ef   :  { %v1710_v25 = vpop.permute.xlu0 %1709  ;;  %v4298_v11 = vpop.permute.xlu1 %4297  ;;  %1975 = vmatpush.msrb.mxu3 %v5785_v53  ;;  %1933 = vmatpush.msrb.mxu2 %v5785_v53 }
 0x2f0   :  { %1740 = vmatpush.msra.mxu0 %v5182_v41  ;;  %1763 = vmatpush.msrb.mxu1 %v7014_v61  ;;  %v1712_v41 = vsel %vm1058_vm7, %v4294_v57, %v4284_v45  ;;  %v1716_v61 = vsel %vm1058_vm7, %v4295_v26, %v1710_v25  ;;  %v4300_v35 = vunpack.i.h.bf16 %v4298_v11  ;;  %v4299_v12 = vunpack.i.l.bf16 %v4298_v11 }
 0x2f1   :  { %3932 = vmatmul.msk.f32.gmra.mxu3 %vm1058_vm7, %v1710_v25 }
 0x2f2   :  { %1741 = vmatpush.msra.mxu0 %v7024_v4  ;;  %1764 = vmatpush.msrb.mxu1 %v7020_v43  ;;  %v1714_v4 = vsel %vm1058_vm7, %v4299_v12, %v4300_v35  ;;  %v1715_v43 = vsel %vm1058_vm7, %v4300_v35, %v4295_v26  ;;  %v5792_v26 = vld [vmem:[%s6832_s8 + $0x70] sm:$0xff]  ;;  %v5799_v35 = vld [vmem:[%s6832_s8 + $0x68] sm:$0xff] }
 0x2f3   :  { %1976 = vmatpush.msrb.mxu3 %v5792_v26  ;;  %1934 = vmatpush.msrb.mxu2 %v5792_v26 }
 0x2f4   :  { %1742 = vmatpush.msra.mxu0 %v7027_v58  ;;  %1765 = vmatpush.msrb.mxu1 %v5426_v54  ;;  %v1429_v58 = vpop.f32.mrf.mxu3 }
 0x2f5   :  { %1743 = vmatmul.f32.vlgmr.msra.gmra.mxu0 %v1711_v16  ;;  %1766 = vmatmul.f32.vlgmr.msrb.gmra.mxu1 %v1712_v41  ;;  %v1430_v27 = vadd.f32 %v1429_v58, %v1407_v47 }
 0x2f6   :  { %1792 = vmatmul.f32.gmra.mxu2 %v1716_v61  ;;  %1977 = vmatpush.msrb.mxu3 %v5799_v35 }
 0x2f7   :  { %1935 = vmatpush.msrb.mxu2 %v5799_v35  ;;  %v1826_v5 = vpop.permute.xlu0 %1825 }
 0x2f8   :  { %1978 = vmatpush.msrb.mxu3 %v5806_v37 }
 0x2f9   :  { %1936 = vmatpush.msrb.mxu2 %v5806_v37 }
 0x2fc   :  { %v1432_v54 = vpop.f32.mrf.mxu3 }
 0x2fd   :  { %1746 = vmatmul.f32.gmra.mxu0 %v1714_v4  ;;  %1769 = vmatmul.f32.gmra.mxu1 %v1715_v43  ;;  %v1433_v45 = vadd.f32 %v1432_v54, %v1410_v1  ;;  %v5813_v54 = vld [vmem:[%s6832_s8 + $0x58] sm:$0xff] }
 0x2fe   :  { %1979 = vmatpush.msrb.mxu3 %v5813_v54  ;;  %1937 = vmatpush.msrb.mxu2 %v5813_v54 }
 0x300   :  { %1980 = vmatpush.msrb.mxu3 %v5820_v44  ;;  %1938 = vmatpush.msrb.mxu2 %v5820_v44 }
 0x331   :  { %v1561_v9 = vpop.f32.mrf.mxu3 }
 0x333   :  { %v1538_v32 = vpop.f32.mrf.mxu2 }
 0x334   :  { %v1831_v58 = vpop.permute.xlu2 %1830 }
 0x339   :  { %v1564_v42 = vpop.f32.mrf.mxu3 }
 0x341   :  { %v1687_v52 = vpop.f32.mrf.mxu3 }
 0x350   :  { %v1492_v34 = vpop.f32.mrf.mxu0  ;;  %v1515_v60 = vpop.f32.mrf.mxu1 }
 0x351   :  { %v1516_v55 = vadd.f32 %v1515_v60, %v1492_v34  ;;  %v1837_v60 = vld [vmem:[%s6833_s6] sm:$0xff] }
 0x353   :  { %v1539_v22 = vadd.f32 %v1538_v32, %v1516_v55  ;;  %v1885_v32 = vld [vmem:[%s6832_s8 + $0x48] sm:$0xff] }
 0x354   :  { %1981 = vmatpush.msrb.mxu3 %v1885_v32  ;;  %1939 = vmatpush.msrb.mxu2 %v1885_v32 }
 0x355   :  { %v1562_v30 = vadd.f32 %v1561_v9, %v1539_v22 }
 0x357   :  { %v1541_v8 = vpop.f32.mrf.mxu2  ;;  %v1567_v18 = vmax.f32 %v1430_v27, %v1562_v30 }
 0x358   :  { %v1495_v51 = vpop.f32.mrf.mxu0 }
 0x359   :  { %v1518_v15 = vpop.f32.mrf.mxu1 }
 0x35a   :  { %v1519_v3 = vadd.f32 %v1518_v15, %v1495_v51  ;;  %v1882_v51 = vld [vmem:[%s6832_s8 + $0x30] sm:$0xff]  ;;  %v1881_v15 = vld [vmem:[%s6832_s8 + $0x28] sm:$0xff] }
 0x35c   :  { %v1542_v2 = vadd.f32 %v1541_v8, %v1519_v3  ;;  %v1884_v8 = vld [vmem:[%s6832_s8 + $0x40] sm:$0xff] }
 0x35d   :  { %1982 = vmatpush.msrb.mxu3 %v1884_v8  ;;  %1940 = vmatpush.msrb.mxu2 %v1884_v8 }
 0x35e   :  { %v1565_v39 = vadd.f32 %v1564_v42, %v1542_v2  ;;  %v1883_v42 = vld [vmem:[%s6832_s8 + $0x38] sm:$0xff] }
 0x35f   :  { %v1664_v17 = vpop.f32.mrf.mxu2  ;;  %1983 = vmatpush.msrb.mxu3 %v1883_v42  ;;  %1941 = vmatpush.msrb.mxu2 %v1883_v42 }
 0x360   :  { %v1568_v41 = vmax.f32 %v1433_v45, %v1565_v39 }
 0x361   :  { %v1618_v24 = vpop.f32.mrf.mxu0  ;;  %v1641_v38 = vpop.f32.mrf.mxu1  ;;  %1984 = vmatpush.msrb.mxu3 %v1882_v51  ;;  %1942 = vmatpush.msrb.mxu2 %v1882_v51 }
 0x362   :  { %v1642_v10 = vadd.f32 %v1641_v38, %v1618_v24  ;;  %v1880_v24 = vld [vmem:[%s6832_s8 + $0x20] sm:$0xff]  ;;  %v1879_v38 = vld [vmem:[%s6832_s8 + $0x18] sm:$0xff] }
 0x363   :  { %v1690_v48 = vpop.f32.mrf.mxu3  ;;  %1985 = vmatpush.msrb.mxu3 %v1881_v15  ;;  %1943 = vmatpush.msrb.mxu2 %v1881_v15 }
 0x364   :  { %v1665_v21 = vadd.f32 %v1664_v17, %v1642_v10  ;;  %v1838_v17 = vld [vmem:[%s6833_s6 + $0x8] sm:$0xff] }
 0x365   :  { %1986 = vmatpush.msrb.mxu3 %v1880_v24  ;;  %1944 = vmatpush.msrb.mxu2 %v1880_v24  ;;  %v2047_v10 = vld [vmem:[%s6834_s7 + $0x8] sm:$0xff] }
 0x366   :  { %v1688_v62 = vadd.f32 %v1687_v52, %v1665_v21  ;;  %v1878_v52 = vld [vmem:[%s6832_s8 + $0x10] sm:$0xff] }
 0x367   :  { %1987 = vmatpush.msrb.mxu3 %v1879_v38  ;;  %1945 = vmatpush.msrb.mxu2 %v1879_v38 }
 0x368   :  { %v1667_v33 = vpop.f32.mrf.mxu2  ;;  %v1693_v16 = vmax.f32 %v1567_v18, %v1688_v62 }
 0x369   :  { %v1621_v36 = vpop.f32.mrf.mxu0  ;;  %1988 = vmatpush.msrb.mxu3 %v1878_v52  ;;  %1946 = vmatpush.msrb.mxu2 %v1878_v52 }
 0x36a   :  { %v1644_v46 = vpop.f32.mrf.mxu1 }
 0x36b   :  { %v1645_v56 = vadd.f32 %v1644_v46, %v1621_v36  ;;  %v1813_v14 = vpop.f32.mrf.mxu3  ;;  %v1839_v36 = vld [vmem:[%s6833_s6 + $0x10] sm:$0xf]  ;;  %v1876_v46 = vld [vmem:[%s6832_s8] sm:$0xff]  ;;  %s4312_s6 = smov 122  }
 0x36d   :  { %v1668_v63 = vadd.f32 %v1667_v33, %v1645_v56  ;;  %v1877_v33 = vld [vmem:[%s6832_s8 + $0x8] sm:$0xff]  ;;  %s4313_s8 = smov 121  }
 0x36e   :  { %1989 = vmatpush.msrb.mxu3 %v1877_v33  ;;  %1947 = vmatpush.msrb.mxu2 %v1877_v33 }
 0x36f   :  { %v1691_v20 = vadd.f32 %v1690_v48, %v1668_v63 }
 0x370   :  { %v1790_v59 = vpop.f32.mrf.mxu2  ;;  %1990 = vmatpush.msrb.mxu3 %v1876_v46  ;;  %1948 = vmatpush.msrb.mxu2 %v1876_v46 }
 0x371   :  { %v1694_v12 = vmax.f32 %v1568_v41, %v1691_v20 }
 0x372   :  { %v1744_v40 = vpop.f32.mrf.mxu0  ;;  %v1767_v13 = vpop.f32.mrf.mxu1 }
 0x373   :  { %v1768_v23 = vadd.f32 %v1767_v13, %v1744_v40  ;;  %v2046_v40 = vld [vmem:[%s6834_s7] sm:$0xff]  ;;  %v2048_v13 = vld [vmem:[%s6834_s7 + $0x10] sm:$0xf]  ;;  %s4314_s7 = smov 125  }
 0x374   :  { %v1816_v61 = vpop.f32.mrf.mxu3 }
 0x375   :  { %v1791_v28 = vadd.f32 %v1790_v59, %v1768_v23 }
 0x377   :  { %v1814_v0 = vadd.f32 %v1813_v14, %v1791_v28 }
 0x379   :  { %v1793_v57 = vpop.f32.mrf.mxu2  ;;  %v1819_v43 = vmax.f32 %v1693_v16, %v1814_v0 }
 0x37a   :  { %v1747_v6 = vpop.f32.mrf.mxu0  ;;  %v1770_v29 = vpop.f32.mrf.mxu1 }
 0x37b   :  { %v1771_v25 = vadd.f32 %v1770_v29, %v1747_v6  ;;  %v1833_v49 = vadd.f32 %v1826_v5, %v1819_v43 }
 0x37d   :  { %v1794_v11 = vadd.f32 %v1793_v57, %v1771_v25  ;;  %v1835_v34 = vmax.f32 %v1833_v49, 0.0  ;;  %v3441_v49 = vld [vmem:[%s6835_s11 + $0x68] sm:$0xff] }
 0x37f   :  { %v1817_v4 = vadd.f32 %v1816_v61, %v1794_v11 }
 0x381   :  { %v1820_v19 = vmax.f32 %v1694_v12, %v1817_v4 }
 0x383   :  { %v1834_v50 = vadd.f32 %v1831_v58, %v1820_v19 }
 0x385   :  { %v1836_v9 = vmax.f32 %v1834_v50, 0.0  ;;  %v3437_v50 = vld [vmem:[%s6835_s11 + $0x48] sm:$0xff] }
 0x387   :  { %1864 = vmatpush.msrb.mxu0 %v1836_v9  ;;  %v3438_v9 = vld [vmem:[%s6835_s11 + $0x50] sm:$0xff] }
 0x389   :  { %1865 = vmatpush.msrb.mxu0 %v1835_v34  ;;  %v3431_v34 = vld [vmem:[%s6835_s11 + $0x18] sm:$0xff] }
 0x38a   :  { %3933 = vmatmul.msk.f32.vlgmr.msrb.gmra.mxu0 %vm1840_vm12, %v1837_v60  ;;  %v3435_v60 = vld [vmem:[%s6835_s11 + $0x38] sm:$0xff] }
 0x38b   :  { %1892 = vmatpush.msra.mxu0 %v5785_v53 }
 0x38d   :  { %1893 = vmatpush.msra.mxu0 %v5792_v26 }
 0x38f   :  { %1894 = vmatpush.msra.mxu0 %v5799_v35 }
 0x391   :  { %1895 = vmatpush.msra.mxu0 %v5806_v37 }
 0x392   :  { %3934 = vmatmul.msk.f32.gmra.mxu0 %vm1840_vm12, %v1838_v17 }
 0x393   :  { %1896 = vmatpush.msra.mxu0 %v5813_v54 }
 0x395   :  { %1897 = vmatpush.msra.mxu0 %v5820_v44 }
 0x397   :  { %1898 = vmatpush.msra.mxu0 %v1885_v32 }
 0x399   :  { %1899 = vmatpush.msra.mxu0 %v1884_v8 }
 0x39a   :  { %3935 = vmatmul.msk.f32.gmra.mxu0 %vm1840_vm12, %v1839_v36 }
 0x39b   :  { %1900 = vmatpush.msra.mxu0 %v1883_v42 }
 0x39d   :  { %1901 = vmatpush.msra.mxu0 %v1882_v51 }
 0x39f   :  { %1902 = vmatpush.msra.mxu0 %v1881_v15 }
 0x3a1   :  { %1903 = vmatpush.msra.mxu0 %v1880_v24 }
 0x3a3   :  { %1904 = vmatpush.msra.mxu0 %v1879_v38 }
 0x3a5   :  { %1905 = vmatpush.msra.mxu0 %v1878_v52 }
 0x3a7   :  { %1906 = vmatpush.msra.mxu0 %v1877_v33 }
 0x3a9   :  { %1907 = vmatpush.msra.mxu0 %v1876_v46 }
 0x3ab   :  { %2017 = vmatpush.msrb.mxu0 %v5785_v53 }
 0x3ad   :  { %2018 = vmatpush.msrb.mxu0 %v5792_v26 }
 0x3af   :  { %2019 = vmatpush.msrb.mxu0 %v5799_v35 }
 0x3b1   :  { %2020 = vmatpush.msrb.mxu0 %v5806_v37 }
 0x3b3   :  { %2021 = vmatpush.msrb.mxu0 %v5813_v54  ;;  %v3440_v54 = vld [vmem:[%s6835_s11 + $0x60] sm:$0xff] }
 0x3b5   :  { %2022 = vmatpush.msrb.mxu0 %v5820_v44  ;;  %v3434_v44 = vld [vmem:[%s6835_s11 + $0x30] sm:$0xff] }
 0x3b7   :  { %2023 = vmatpush.msrb.mxu0 %v1885_v32  ;;  %v3442_v32 = vld [vmem:[%s6835_s11 + $0x70] sm:$0xff] }
 0x3b9   :  { %2024 = vmatpush.msrb.mxu0 %v1884_v8  ;;  %v3439_v8 = vld [vmem:[%s6835_s11 + $0x58] sm:$0xff] }
 0x3bb   :  { %2025 = vmatpush.msrb.mxu0 %v1883_v42  ;;  %v3428_v42 = vld [vmem:[%s6835_s11] sm:$0xff] }
 0x3bd   :  { %2026 = vmatpush.msrb.mxu0 %v1882_v51  ;;  %v3432_v51 = vld [vmem:[%s6835_s11 + $0x20] sm:$0xff] }
 0x3bf   :  { %2027 = vmatpush.msrb.mxu0 %v1881_v15  ;;  %v3436_v15 = vld [vmem:[%s6835_s11 + $0x40] sm:$0xff] }
 0x3c1   :  { %2028 = vmatpush.msrb.mxu0 %v1880_v24  ;;  %v2070_v24 = vld [vmem:[%s6836_s9] sm:$0xff] }
 0x3c3   :  { %2029 = vmatpush.msrb.mxu0 %v1879_v38  ;;  %v3614_v38 = vld [vmem:[%s6837_s13 + $0x40] sm:$0xff] }
 0x3c5   :  { %2030 = vmatpush.msrb.mxu0 %v1878_v52  ;;  %v3429_v52 = vld [vmem:[%s6835_s11 + $0x8] sm:$0xff] }
 0x3c7   :  { %2031 = vmatpush.msrb.mxu0 %v1877_v33  ;;  %v3433_v33 = vld [vmem:[%s6835_s11 + $0x28] sm:$0xff] }
 0x3c9   :  { %2032 = vmatpush.msrb.mxu0 %v1876_v46  ;;  %v2071_v46 = vld [vmem:[%s6836_s9 + $0x8] sm:$0xff] }
 0x407   :  { %v1867_v48 = vpop.f32.mrf.mxu0 }
 0x408   :  { %1962 = vrot.lane.b32.xlu2 %v1867_v48, %s4312_s6  ;;  %1921 = vrot.lane.b32.xlu1 %v1867_v48, %s4304_s3 }
 0x409   :  { %1908 = vmatmul.f32.vlgmr.msra.gmra.mxu0 %v1867_v48 }
 0x40f   :  { %v1870_v55 = vpop.f32.mrf.mxu0 }
 0x410   :  { %2004 = vrot.lane.b32.xlu2 %v1867_v48, %s4313_s8  ;;  %1964 = vrot.lane.b32.xlu1 %v1870_v55, %s4312_s6  ;;  %v3611_v48 = vld [vmem:[%s6837_s13 + $0x28] sm:$0xff] }
 0x411   :  { %1923 = vrot.lane.b32.xlu0 %v1870_v55, %s4304_s3  ;;  %1911 = vmatmul.f32.gmra.mxu0 %v1870_v55 }
 0x417   :  { %v1873_v3 = vpop.f32.mrf.mxu0 }
 0x418   :  { %2006 = vrot.lane.b32.xlu2 %v1870_v55, %s4313_s8  ;;  %1966 = vrot.lane.b32.xlu1 %v1873_v3, %s4312_s6  ;;  %v3615_v55 = vld [vmem:[%s6837_s13 + $0x48] sm:$0xff] }
 0x419   :  { %1925 = vrot.lane.b32.xlu0 %v1873_v3, %s4304_s3  ;;  %1914 = vmatmul.f32.gmra.mxu0 %v1873_v3 }
 0x420   :  { %2056 = vperm.xlu2 %4301, %v2047_v10   ;;  %2061 = vperm.xlu1 %4302, %v2048_v13  }
 0x421   :  { %2008 = vrot.lane.b32.xlu0 %v1873_v3, %s4313_s8  ;;  %v3430_v3 = vld [vmem:[%s6835_s11 + $0x10] sm:$0xff] }
 0x429   :  { %2051 = vperm.xlu0 %4255, %v2046_v40  }
 0x462   :  { %v1963_v7 = vpop.permute.xlu2 %1962 }
 0x463   :  { %3939 = vmatmul.msk.f32.vlgmr.msrb.gmra.mxu3 %vm1971_vm13, %v1963_v7  ;;  %v2072_v7 = vld [vmem:[%s6836_s9 + $0x10] sm:$0xff] }
 0x46a   :  { %v2005_v31 = vpop.permute.xlu2 %2004 }
 0x46b   :  { %3942 = vmatmul.msk.f32.vlgmr.msrb.gmra.mxu0 %vm2013_vm14, %v2005_v31  ;;  %v3608_v31 = vld [vmem:[%s6837_s13 + $0x10] sm:$0xff] }
 0x472   :  { %v2007_v22 = vpop.permute.xlu2 %2006 }
 0x473   :  { %3943 = vmatmul.msk.f32.gmra.mxu0 %vm2013_vm14, %v2007_v22  ;;  %v3612_v22 = vld [vmem:[%s6837_s13 + $0x30] sm:$0xff] }
 0x47a   :  { %v1922_v59 = vpop.permute.xlu1 %1921  ;;  %v2057_v16 = vpop.permute.xlu2 %2056 }
 0x47b   :  { %3936 = vmatmul.msk.f32.vlgmr.msrb.gmra.mxu2 %vm911_vm5, %v1922_v59  ;;  %v3616_v59 = vld [vmem:[%s6837_s13 + $0x50] sm:$0xf] }
 0x482   :  { %v1965_v56 = vpop.permute.xlu1 %1964 }
 0x483   :  { %v1924_v23 = vpop.permute.xlu0 %1923  ;;  %3940 = vmatmul.msk.f32.gmra.mxu3 %vm1971_vm13, %v1965_v56 }
 0x484   :  { %3937 = vmatmul.msk.f32.gmra.mxu2 %vm911_vm5, %v1924_v23  ;;  %v2073_v23 = vld [vmem:[%s6836_s9 + $0x18] sm:$0xff] }
 0x486   :  { %v1909_v21 = vpop.f32.mrf.mxu0 }
 0x48a   :  { %v1967_v47 = vpop.permute.xlu1 %1966 }
 0x48b   :  { %v1926_v14 = vpop.permute.xlu0 %1925  ;;  %3941 = vmatmul.msk.f32.gmra.mxu3 %vm1971_vm13, %v1967_v47  ;;  %v3768_v47 = vld [vmem:[%s6838_s15] sm:$0xff] }
 0x48c   :  { %3938 = vmatmul.msk.f32.gmra.mxu2 %vm911_vm5, %v1926_v14  ;;  %v3609_v14 = vld [vmem:[%s6837_s13 + $0x18] sm:$0xff] }
 0x48e   :  { %v1912_v1 = vpop.f32.mrf.mxu0 }
 0x492   :  { %v2062_v58 = vpop.permute.xlu1 %2061 }
 0x493   :  { %v2009_v2 = vpop.permute.xlu0 %2008 }
 0x494   :  { %3944 = vmatmul.msk.f32.gmra.mxu0 %vm2013_vm14, %v2009_v2  ;;  %v3613_v2 = vld [vmem:[%s6837_s13 + $0x38] sm:$0xff] }
 0x496   :  { %v1915_v30 = vpop.f32.mrf.mxu0 }
 0x49b   :  { %v2052_v45 = vpop.permute.xlu0 %2051 }
 0x4e6   :  { %v1992_v28 = vpop.f32.mrf.mxu3 }
 0x4e8   :  { %v2034_v39 = vpop.f32.mrf.mxu0 }
 0x4f0   :  { %v2037_v57 = vpop.f32.mrf.mxu0 }
 0x4fe   :  { %v1950_v63 = vpop.f32.mrf.mxu2 }
 0x4ff   :  { %v1959_v27 = vmax.f32 %v1909_v21, %v1950_v63  ;;  %v2074_v63 = vld [vmem:[%s6836_s9 + $0x20] sm:$0xff] }
 0x501   :  { %v2001_v62 = vmax.f32 %v1959_v27, %v1992_v28  ;;  %v3606_v27 = vld [vmem:[%s6837_s13] sm:$0xff] }
 0x503   :  { %v2043_v6 = vmax.f32 %v2001_v62, %v2034_v39  ;;  %v3610_v39 = vld [vmem:[%s6837_s13 + $0x20] sm:$0xff]  ;;  %v3945_v62 = vld [vmem:[%s6836_s9 + $0x78] sm:$0xff] }
 0x505   :  { %v2064_v18 = vadd.f32 %v2052_v45, %v2043_v6 }
 0x506   :  { %v1995_v20 = vpop.f32.mrf.mxu3 }
 0x507   :  { %v2067_v29 = vmax.f32 %v2064_v18, 0.0  ;;  %v1953_v53 = vpop.f32.mrf.mxu2 }
 0x508   :  { %v1960_v0 = vmax.f32 %v1912_v1, %v1953_v53 }
 0x509   :  { %2104 = vrot.lane.b32.xlu0 %v2067_v29, %s4304_s3 }
 0x50a   :  { %v2002_v25 = vmax.f32 %v1960_v0, %v1995_v20  ;;  %v2075_v20 = vld [vmem:[%s6836_s9 + $0x28] sm:$0xff] }
 0x50b   :  { %v3607_v0 = vld [vmem:[%s6837_s13 + $0x8] sm:$0xff] }
 0x50c   :  { %v2044_v26 = vmax.f32 %v2002_v25, %v2037_v57  ;;  %v3994_v25 = vld [vmem:[%s6836_s9 + $0xf0] sm:$0xff]  ;;  %v3946_v57 = vld [vmem:[%s6836_s9 + $0x80] sm:$0xff] }
 0x50e   :  { %v2065_v11 = vadd.f32 %v2057_v16, %v2044_v26  ;;  %v1998_v12 = vpop.f32.mrf.mxu3 }
 0x50f   :  { %v1956_v41 = vpop.f32.mrf.mxu2 }
 0x510   :  { %v2068_v61 = vmax.f32 %v2065_v11, 0.0  ;;  %v1961_v35 = vmax.f32 %v1915_v30, %v1956_v41 }
 0x511   :  { %2353 = vrot.lane.b32.xlu0 %v2067_v29, %s4305_s20  ;;  %v2040_v43 = vpop.f32.mrf.mxu0 }
 0x512   :  { %v2003_v4 = vmax.f32 %v1961_v35, %v1998_v12  ;;  %2106 = vrot.lane.b32.xlu2 %v2068_v61, %s4304_s3  ;;  %v2076_v12 = vld [vmem:[%s6836_s9 + $0x30] sm:$0xff] }
 0x514   :  { %v2045_v37 = vmax.f32 %v2003_v4, %v2040_v43  ;;  %v3769_v4 = vld [vmem:[%s6838_s15 + $0x8] sm:$0xff]  ;;  %v3995_v43 = vld [vmem:[%s6836_s9 + $0xf8] sm:$0xff] }
 0x516   :  { %v2066_v19 = vadd.f32 %v2062_v58, %v2045_v37  ;;  %v3947_v58 = vld [vmem:[%s6836_s9 + $0x88] sm:$0xff] }
 0x518   :  { %v2069_v5 = vmax.f32 %v2066_v19, 0.0  ;;  %v4027_v19 = vld [vmem:[%s6836_s9 + $0x168] sm:$0xff] }
 0x519   :  { %2508 = vrot.lane.b32.xlu0 %v2068_v61, %s4314_s7 }
 0x51a   :  { %2355 = vrot.lane.b32.xlu2 %v2068_v61, %s4305_s20  ;;  %2108 = vrot.lane.b32.xlu1 %v2069_v5, %s4304_s3  ;;  %s4317_s3 = smov 120  }
 0x51b   :  { %3978 = vmatpush.msk.msra.mxu2 %vm2162_vm15, %v2069_v5 }
 0x51d   :  { %2289 = vmatpush.msra.mxu2 %v2068_v61 }
 0x51f   :  { %2290 = vmatpush.msra.mxu2 %v2067_v29 }
 0x520   :  { %3979 = vmatmul.msk.f32.vlgmr.msra.gmra.mxu2 %vm2116_vm0, %v2070_v24  ;;  %v2079_v24 = vld [vmem:[%s6836_s9 + $0x48] sm:$0xff] }
 0x521   :  { %2660 = vrot.lane.b32.xlu0 %v2067_v29, %s4315_s22 }
 0x522   :  { %2664 = vrot.lane.b32.xlu2 %v2069_v5, %s4315_s22  ;;  %2357 = vrot.lane.b32.xlu1 %v2069_v5, %s4305_s20 }
 0x528   :  { %3980 = vmatmul.msk.f32.gmra.mxu2 %vm2116_vm0, %v2071_v46 }
 0x529   :  { %2816 = vrot.lane.b32.xlu0 %v2068_v61, %s4316_s24 }
 0x52a   :  { %2662 = vrot.lane.b32.xlu2 %v2068_v61, %s4315_s22  ;;  %2510 = vrot.lane.b32.xlu1 %v2069_v5, %s4314_s7 }
 0x530   :  { %3981 = vmatmul.msk.f32.gmra.mxu2 %vm2116_vm0, %v2072_v7 }
 0x531   :  { %2968 = vrot.lane.b32.xlu0 %v2067_v29, %s4312_s6 }
 0x532   :  { %2970 = vrot.lane.b32.xlu2 %v2068_v61, %s4312_s6  ;;  %2506 = vrot.lane.b32.xlu1 %v2067_v29, %s4314_s7 }
 0x538   :  { %3982 = vmatmul.msk.f32.gmra.mxu2 %vm2116_vm0, %v2073_v23  ;;  %v4001_v23 = vld [vmem:[%s6836_s9 + $0x128] sm:$0xff] }
 0x539   :  { %3123 = vrot.lane.b32.xlu0 %v2068_v61, %s4313_s8 }
 0x53a   :  { %2972 = vrot.lane.b32.xlu2 %v2069_v5, %s4312_s6  ;;  %2814 = vrot.lane.b32.xlu1 %v2067_v29, %s4316_s24 }
 0x540   :  { %3983 = vmatmul.msk.f32.gmra.mxu2 %vm2116_vm0, %v2074_v63  ;;  %v2084_v63 = vld [vmem:[%s6836_s9 + $0x70] sm:$0xff] }
 0x541   :  { %3274 = vrot.lane.b32.xlu0 %v2067_v29, %s4317_s3 }
 0x542   :  { %3278 = vrot.lane.b32.xlu2 %v2069_v5, %s4317_s3  ;;  %2818 = vrot.lane.b32.xlu1 %v2069_v5, %s4316_s24 }
 0x548   :  { %3984 = vmatmul.msk.f32.gmra.mxu2 %vm2116_vm0, %v2075_v20  ;;  %v3957_v20 = vld [vmem:[%s6836_s9 + $0xd8] sm:$0xff] }
 0x549   :  { %3505 = vperm.xlu0 %4255, %v3440_v54  }
 0x54a   :  { %3276 = vrot.lane.b32.xlu2 %v2068_v61, %s4317_s3  ;;  %3125 = vrot.lane.b32.xlu1 %v2069_v5, %s4313_s8 }
 0x550   :  { %3985 = vmatmul.msk.f32.gmra.mxu2 %vm2116_vm0, %v2076_v12  ;;  %v4097_v12 = vld [vmem:[%s6836_s9 + $0x278] sm:$0xff] }
 0x551   :  { %3490 = vperm.xlu0 %4255, %v3437_v50   ;;  %v2077_v50 = vld [vmem:[%s6836_s9 + $0x38] sm:$0xff] }
 0x552   :  { %3510 = vperm.xlu2 %4301, %v3441_v49   ;;  %3121 = vrot.lane.b32.xlu1 %v2067_v29, %s4313_s8  ;;  %v3996_v49 = vld [vmem:[%s6836_s9 + $0x100] sm:$0xff] }
 0x558   :  { %3986 = vmatmul.msk.f32.gmra.mxu2 %vm2116_vm0, %v2077_v50  ;;  %v4061_v50 = vld [vmem:[%s6836_s9 + $0x1e8] sm:$0xff] }
 0x559   :  { %3475 = vperm.xlu0 %4255, %v3434_v44   ;;  %v3948_v44 = vld [vmem:[%s6836_s9 + $0x90] sm:$0xff] }
 0x55a   :  { %3495 = vperm.xlu2 %4301, %v3438_v9   ;;  %3515 = vperm.xlu1 %4302, %v3442_v32   ;;  %v4028_v32 = vld [vmem:[%s6836_s9 + $0x170] sm:$0xff] }
 0x561   :  { %3460 = vperm.xlu0 %4255, %v3431_v34  }
 0x562   :  { %3480 = vperm.xlu2 %4301, %v3435_v60   ;;  %3500 = vperm.xlu1 %4302, %v3439_v8   ;;  %v2078_v60 = vld [vmem:[%s6836_s9 + $0x40] sm:$0xff]  ;;  %v3997_v8 = vld [vmem:[%s6836_s9 + $0x108] sm:$0xff] }
 0x563   :  { %3987 = vmatmul.msk.f32.gmra.mxu2 %vm2116_vm0, %v2078_v60 }
 0x569   :  { %3445 = vperm.xlu0 %4255, %v3428_v42   ;;  %v3949_v42 = vld [vmem:[%s6836_s9 + $0x98] sm:$0xff] }
 0x56a   :  { %3465 = vperm.xlu2 %4301, %v3432_v51   ;;  %3485 = vperm.xlu1 %4302, %v3436_v15   ;;  %v4029_v15 = vld [vmem:[%s6836_s9 + $0x178] sm:$0xff] }
 0x56b   :  { %3988 = vmatmul.msk.f32.gmra.mxu2 %vm2116_vm0, %v2079_v24  ;;  %v4128_v24 = vld [vmem:[%s6836_s9 + $0x2e0] sm:$0xff] }
 0x56c   :  { %v2107_v17 = vpop.permute.xlu2 %2106 }
 0x571   :  { %3659 = vperm.xlu0 %4255, %v3614_v38  }
 0x572   :  { %3450 = vperm.xlu2 %4301, %v3429_v52   ;;  %3470 = vperm.xlu1 %4302, %v3433_v33   ;;  %v3998_v52 = vld [vmem:[%s6836_s9 + $0x110] sm:$0xff]  ;;  %v3950_v33 = vld [vmem:[%s6836_s9 + $0xa0] sm:$0xff] }
 0x574   :  { %v2356_v36 = vpop.permute.xlu2 %2355 }
 0x579   :  { %3644 = vperm.xlu0 %4255, %v3611_v48   ;;  %v2080_v48 = vld [vmem:[%s6836_s9 + $0x50] sm:$0xff] }
 0x57a   :  { %3664 = vperm.xlu2 %4301, %v3615_v55   ;;  %3455 = vperm.xlu1 %4302, %v3430_v3   ;;  %v3999_v3 = vld [vmem:[%s6836_s9 + $0x118] sm:$0xff] }
 0x57b   :  { %v2105_v10 = vpop.permute.xlu0 %2104  ;;  %3989 = vmatmul.msk.f32.gmra.mxu2 %vm2116_vm0, %v2080_v48 }
 0x57c   :  { %v2665_v40 = vpop.permute.xlu2 %2664 }
 0x57d   :  { %v2672_v45 = vsel %vm2669_vm1, %v2665_v40, 0.0  ;;  %v4031_v40 = vld [vmem:[%s6836_s9 + $0x188] sm:$0xff] }
 0x581   :  { %3629 = vperm.xlu0 %4255, %v3608_v31   ;;  %v2081_v31 = vld [vmem:[%s6836_s9 + $0x58] sm:$0xff] }
 0x582   :  { %3649 = vperm.xlu2 %4301, %v3612_v22   ;;  %3669 = vperm.xlu1 %4302, %v3616_v59   ;;  %v4000_v22 = vld [vmem:[%s6836_s9 + $0x120] sm:$0xff]  ;;  %v3952_v59 = vld [vmem:[%s6836_s9 + $0xb0] sm:$0xff] }
 0x583   :  { %v2354_v13 = vpop.permute.xlu0 %2353  ;;  %3990 = vmatmul.msk.f32.gmra.mxu2 %vm2116_vm0, %v2081_v31  ;;  %v4161_v31 = vld [vmem:[%s6836_s9 + $0x358] sm:$0xff] }
 0x584   :  { %v2663_v56 = vpop.permute.xlu2 %2662 }
 0x589   :  { %3772 = vperm.xlu0 %4255, %v3768_v47   ;;  %v3953_v47 = vld [vmem:[%s6836_s9 + $0xb8] sm:$0xff] }
 0x58a   :  { %3634 = vperm.xlu2 %4301, %v3609_v14   ;;  %3654 = vperm.xlu1 %4302, %v3613_v2   ;;  %v4033_v14 = vld [vmem:[%s6836_s9 + $0x198] sm:$0xff]  ;;  %v2083_v2 = vld [vmem:[%s6836_s9 + $0x68] sm:$0xff] }
 0x58b   :  { %v2509_v21 = vpop.permute.xlu0 %2508 }
 0x58c   :  { %v2971_v1 = vpop.permute.xlu2 %2970  ;;  %v2109_v30 = vpop.permute.xlu1 %2108 }
 0x58d   :  { %v2115_v28 = vsel %vm911_vm5, %v2109_v30, 0.0  ;;  %v4034_v30 = vld [vmem:[%s6836_s9 + $0x1a0] sm:$0xff] }
 0x58e   :  { %3960 = vmatpush.msk.msra.mxu1 %vm2162_vm15, %v2115_v28  ;;  %v4003_v28 = vld [vmem:[%s6836_s9 + $0x138] sm:$0xff] }
 0x590   :  { %3961 = vmatpush.msk.msra.mxu1 %vm911_vm5, %v2107_v17 }
 0x592   :  { %3619 = vperm.xlu2 %4301, %v3606_v27   ;;  %3639 = vperm.xlu1 %4302, %v3610_v39   ;;  %v3955_v27 = vld [vmem:[%s6836_s9 + $0xc8] sm:$0xff] }
 0x593   :  { %3962 = vmatpush.msk.msra.mxu1 %vm911_vm5, %v2105_v10  ;;  %v2661_v6 = vpop.permute.xlu0 %2660  ;;  %v3951_v10 = vld [vmem:[%s6836_s9 + $0xa8] sm:$0xff]  ;;  %vm3780_vm5 = vcmask 687104  }
 0x594   :  { %3963 = vmatmul.msk.f32.vlgmr.msra.gmra.mxu1 %vm2116_vm0, %v3945_v62  ;;  %v2973_v18 = vpop.permute.xlu2 %2972  ;;  %v2358_v29 = vpop.permute.xlu1 %2357  ;;  %v4035_v39 = vld [vmem:[%s6836_s9 + $0x1a8] sm:$0xff]  ;;  %v4093_v62 = vld [vmem:[%s6836_s9 + $0x258] sm:$0xff] }
 0x595   :  { %4075 = vmatpush.msk.msrb.mxu1 %vm2162_vm15, %v2672_v45  ;;  %v2364_v53 = vsel %vm960_vm4, %v2358_v29, 0.0  ;;  %v2979_v26 = vsel %vm1971_vm13, %v2973_v18, 0.0  ;;  %v3956_v45 = vld [vmem:[%s6836_s9 + $0xd0] sm:$0xff]  ;;  %v4094_v29 = vld [vmem:[%s6836_s9 + $0x260] sm:$0xff] }
 0x596   :  { %4009 = vmatpush.msk.msra.mxu3 %vm2162_vm15, %v2364_v53  ;;  %v4036_v18 = vld [vmem:[%s6836_s9 + $0x1b0] sm:$0xff]  ;;  %v4005_v53 = vld [vmem:[%s6836_s9 + $0x148] sm:$0xff] }
 0x597   :  { %4076 = vmatpush.msk.msrb.mxu1 %vm2669_vm1, %v2663_v56  ;;  %v2082_v56 = vld [vmem:[%s6836_s9 + $0x60] sm:$0xff] }
 0x598   :  { %4010 = vmatpush.msk.msra.mxu3 %vm960_vm4, %v2356_v36  ;;  %v4030_v36 = vld [vmem:[%s6836_s9 + $0x180] sm:$0xff]  ;;  %3991 = vmatmul.msk.f32.gmra.mxu2 %vm2116_vm0, %v2082_v56 }
 0x599   :  { %4077 = vmatpush.msk.msrb.mxu1 %vm2669_vm1, %v2661_v6  ;;  %v4004_v6 = vld [vmem:[%s6836_s9 + $0x140] sm:$0xff] }
 0x59a   :  { %3624 = vperm.xlu1 %4302, %v3607_v0   ;;  %4011 = vmatpush.msk.msra.mxu3 %vm960_vm4, %v2354_v13  ;;  %vm2823_vm4 = vcmask 1006592   ;;  %v4032_v13 = vld [vmem:[%s6836_s9 + $0x190] sm:$0xff]  ;;  %v4037_v0 = vld [vmem:[%s6836_s9 + $0x1b8] sm:$0xff] }
 0x59b   :  { %4012 = vmatmul.msk.f32.vlgmr.msra.gmra.mxu3 %vm2116_vm0, %v3994_v25  ;;  %v2817_v16 = vpop.permute.xlu0 %2816  ;;  %v4095_v25 = vld [vmem:[%s6836_s9 + $0x268] sm:$0xff] }
 0x59c   :  { %3964 = vmatmul.msk.f32.gmra.mxu1 %vm2116_vm0, %v3946_v57  ;;  %4141 = vmatpush.msk.msrb.mxu3 %vm2162_vm15, %v2979_v26  ;;  %v3279_v11 = vpop.permute.xlu2 %3278  ;;  %v2511_v41 = vpop.permute.xlu1 %2510  ;;  %v4006_v57 = vld [vmem:[%s6836_s9 + $0x150] sm:$0xff]  ;;  %v3958_v26 = vld [vmem:[%s6836_s9 + $0xe0] sm:$0xff] }
 0x59d   :  { %v3286_v61 = vsel %vm3283_vm2, %v3279_v11, 0.0  ;;  %v2518_v35 = vsel %vm2515_vm3, %v2511_v41, 0.0  ;;  %v4096_v11 = vld [vmem:[%s6836_s9 + $0x270] sm:$0xff]  ;;  %v4007_v41 = vld [vmem:[%s6836_s9 + $0x158] sm:$0xff] }
 0x59e   :  { %4142 = vmatpush.msk.msrb.mxu3 %vm1971_vm13, %v2971_v1  ;;  %4042 = vmatpush.msk.msra.mxu0 %vm2162_vm15, %v2518_v35  ;;  %v3954_v1 = vld [vmem:[%s6836_s9 + $0xc0] sm:$0xff]  ;;  %v4039_v35 = vld [vmem:[%s6836_s9 + $0x1c8] sm:$0xff] }
 0x59f   :  { %4207 = vmatpush.msk.msra.mxu1 %vm2162_vm15, %v3286_v61  ;;  %v3959_v61 = vld [vmem:[%s6836_s9 + $0xe8] sm:$0xff] }
 0x5a0   :  { %4043 = vmatpush.msk.msra.mxu0 %vm2515_vm3, %v2509_v21  ;;  %3992 = vmatmul.msk.f32.gmra.mxu2 %vm2116_vm0, %v2083_v2  ;;  %v4002_v21 = vld [vmem:[%s6836_s9 + $0x130] sm:$0xff]  ;;  %v4065_v2 = vld [vmem:[%s6836_s9 + $0x208] sm:$0xff] }
 0x5a2   :  { %3777 = vperm.xlu1 %4302, %v3769_v4   ;;  %v4008_v4 = vld [vmem:[%s6836_s9 + $0x160] sm:$0xff] }
 0x5a3   :  { %4013 = vmatmul.msk.f32.gmra.mxu3 %vm2116_vm0, %v3995_v43  ;;  %v2969_v37 = vpop.permute.xlu0 %2968  ;;  %v4060_v43 = vld [vmem:[%s6836_s9 + $0x1e0] sm:$0xff] }
 0x5a4   :  { %3965 = vmatmul.msk.f32.gmra.mxu1 %vm2116_vm0, %v3947_v58  ;;  %v3277_v5 = vpop.permute.xlu2 %3276  ;;  %v2507_v54 = vpop.permute.xlu1 %2506  ;;  %4143 = vmatpush.msk.msrb.mxu3 %vm1971_vm13, %v2969_v37  ;;  %v4040_v58 = vld [vmem:[%s6836_s9 + $0x1d0] sm:$0xff]  ;;  %v4098_v37 = vld [vmem:[%s6836_s9 + $0x280] sm:$0xff] }
 0x5a5   :  { %4044 = vmatpush.msk.msra.mxu0 %vm2515_vm3, %v2507_v54  ;;  %4208 = vmatpush.msk.msra.mxu1 %vm3283_vm2, %v3277_v5  ;;  %v4126_v5 = vld [vmem:[%s6836_s9 + $0x2d0] sm:$0xff] }
 0x5a6   :  { %4045 = vmatmul.msk.f32.vlgmr.msra.gmra.mxu0 %vm2116_vm0, %v4027_v19  ;;  %v2292_v19 = vpop.f32.mrf.mxu2 }
 0x5a8   :  { %3993 = vmatmul.msk.f32.gmra.mxu2 %vm2116_vm0, %v2084_v63 }
 0x5ab   :  { %4014 = vmatmul.msk.f32.gmra.mxu3 %vm2116_vm0, %v3996_v49  ;;  %v3124_v9 = vpop.permute.xlu0 %3123  ;;  %v4041_v49 = vld [vmem:[%s6836_s9 + $0x1d8] sm:$0xff] }
 0x5ac   :  { %3966 = vmatmul.msk.f32.gmra.mxu1 %vm2116_vm0, %v3948_v44  ;;  %v2815_v34 = vpop.permute.xlu1 %2814  ;;  %v4099_v44 = vld [vmem:[%s6836_s9 + $0x288] sm:$0xff] }
 0x5ae   :  { %4046 = vmatmul.msk.f32.gmra.mxu0 %vm2116_vm0, %v4028_v32  ;;  %v2295_v60 = vpop.f32.mrf.mxu2 }
 0x5b3   :  { %4015 = vmatmul.msk.f32.gmra.mxu3 %vm2116_vm0, %v3997_v8  ;;  %v3275_v51 = vpop.permute.xlu0 %3274  ;;  %v4159_v8 = vld [vmem:[%s6836_s9 + $0x348] sm:$0xff] }
 0x5b4   :  { %3967 = vmatmul.msk.f32.gmra.mxu1 %vm2116_vm0, %v3949_v42  ;;  %v2819_v17 = vpop.permute.xlu1 %2818 }
 0x5b5   :  { %v2826_v38 = vsel %vm2823_vm4, %v2819_v17, 0.0  ;;  %4209 = vmatpush.msk.msra.mxu1 %vm3283_vm2, %v3275_v51  ;;  %v4100_v17 = vld [vmem:[%s6836_s9 + $0x290] sm:$0xff] }
 0x5b6   :  { %4047 = vmatmul.msk.f32.gmra.mxu0 %vm2116_vm0, %v4029_v15  ;;  %4108 = vmatpush.msk.msrb.mxu2 %vm2162_vm15, %v2826_v38 }
 0x5b8   :  { %4109 = vmatpush.msk.msrb.mxu2 %vm2823_vm4, %v2817_v16  ;;  %v4038_v16 = vld [vmem:[%s6836_s9 + $0x1c0] sm:$0xff] }
 0x5ba   :  { %4110 = vmatpush.msk.msrb.mxu2 %vm2823_vm4, %v2815_v34  ;;  %v4062_v34 = vld [vmem:[%s6836_s9 + $0x1f0] sm:$0xff] }
 0x5bb   :  { %4016 = vmatmul.msk.f32.gmra.mxu3 %vm2116_vm0, %v3998_v52  ;;  %4111 = vmatmul.msk.f32.vlgmr.msrb.gmra.mxu2 %vm2116_vm0, %v4093_v62  ;;  %v4063_v52 = vld [vmem:[%s6836_s9 + $0x1f8] sm:$0xff] }
 0x5bc   :  { %3968 = vmatmul.msk.f32.gmra.mxu1 %vm2116_vm0, %v3950_v33  ;;  %v3126_v46 = vpop.permute.xlu1 %3125  ;;  %v4160_v33 = vld [vmem:[%s6836_s9 + $0x350] sm:$0xff] }
 0x5bd   :  { %v3132_v55 = vsel %vm2013_vm14, %v3126_v46, 0.0 }
 0x5be   :  { %4048 = vmatmul.msk.f32.gmra.mxu0 %vm2116_vm0, %v4030_v36  ;;  %v2298_v36 = vpop.f32.mrf.mxu2 }
 0x5bf   :  { %4174 = vmatpush.msk.msrb.mxu0 %vm2162_vm15, %v3132_v55 }
 0x5c1   :  { %4175 = vmatpush.msk.msrb.mxu0 %vm2013_vm14, %v3124_v9  ;;  %v4127_v9 = vld [vmem:[%s6836_s9 + $0x2d8] sm:$0xff] }
 0x5c3   :  { %4017 = vmatmul.msk.f32.gmra.mxu3 %vm2116_vm0, %v3999_v3  ;;  %4112 = vmatmul.msk.f32.gmra.mxu2 %vm2116_vm0, %v4094_v29  ;;  %v4101_v3 = vld [vmem:[%s6836_s9 + $0x298] sm:$0xff] }
 0x5c4   :  { %3969 = vmatmul.msk.f32.gmra.mxu1 %vm2116_vm0, %v3951_v10  ;;  %v3122_v7 = vpop.permute.xlu1 %3121  ;;  %v4129_v10 = vld [vmem:[%s6836_s9 + $0x2e8] sm:$0xff] }
 0x5c5   :  { %4176 = vmatpush.msk.msrb.mxu0 %vm2013_vm14, %v3122_v7  ;;  %v4064_v7 = vld [vmem:[%s6836_s9 + $0x200] sm:$0xff] }
 0x5c6   :  { %4049 = vmatmul.msk.f32.gmra.mxu0 %vm2116_vm0, %v4031_v40 }
 0x5cb   :  { %4018 = vmatmul.msk.f32.gmra.mxu3 %vm2116_vm0, %v4000_v22  ;;  %4113 = vmatmul.msk.f32.gmra.mxu2 %vm2116_vm0, %v4095_v25 }
 0x5cc   :  { %3970 = vmatmul.msk.f32.gmra.mxu1 %vm2116_vm0, %v3952_v59  ;;  %v2301_v59 = vpop.f32.mrf.mxu2 }
 0x5ce   :  { %4050 = vmatmul.msk.f32.gmra.mxu0 %vm2116_vm0, %v4032_v13 }
 0x5d3   :  { %4019 = vmatmul.msk.f32.gmra.mxu3 %vm2116_vm0, %v4001_v23  ;;  %4114 = vmatmul.msk.f32.gmra.mxu2 %vm2116_vm0, %v4096_v11  ;;  %v4102_v23 = vld [vmem:[%s6836_s9 + $0x2a0] sm:$0xff] }
 0x5d4   :  { %3971 = vmatmul.msk.f32.gmra.mxu1 %vm2116_vm0, %v3953_v47  ;;  %v4130_v47 = vld [vmem:[%s6836_s9 + $0x2f0] sm:$0xff] }
 0x5d6   :  { %4051 = vmatmul.msk.f32.gmra.mxu0 %vm2116_vm0, %v4033_v14 }
 0x5db   :  { %4020 = vmatmul.msk.f32.gmra.mxu3 %vm2116_vm0, %v4002_v21  ;;  %4115 = vmatmul.msk.f32.gmra.mxu2 %vm2116_vm0, %v4097_v12  ;;  %v4162_v21 = vld [vmem:[%s6836_s9 + $0x360] sm:$0xff]  ;;  %v4133_v12 = vld [vmem:[%s6836_s9 + $0x308] sm:$0xff] }
 0x5dc   :  { %3972 = vmatmul.msk.f32.gmra.mxu1 %vm2116_vm0, %v3954_v1 }
 0x5de   :  { %4052 = vmatmul.msk.f32.gmra.mxu0 %vm2116_vm0, %v4034_v30 }
 0x5e3   :  { %4021 = vmatmul.msk.f32.gmra.mxu3 %vm2116_vm0, %v4003_v28  ;;  %4116 = vmatmul.msk.f32.gmra.mxu2 %vm2116_vm0, %v4098_v37  ;;  %v4103_v28 = vld [vmem:[%s6836_s9 + $0x2a8] sm:$0xff]  ;;  %v4165_v37 = vld [vmem:[%s6836_s9 + $0x378] sm:$0xff] }
 0x5e4   :  { %3973 = vmatmul.msk.f32.gmra.mxu1 %vm2116_vm0, %v3955_v27  ;;  %v2304_v27 = vpop.f32.mrf.mxu2 }
 0x5e6   :  { %4053 = vmatmul.msk.f32.gmra.mxu0 %vm2116_vm0, %v4035_v39  ;;  %v4131_v39 = vld [vmem:[%s6836_s9 + $0x2f8] sm:$0xff] }
 0x5eb   :  { %4022 = vmatmul.msk.f32.gmra.mxu3 %vm2116_vm0, %v4004_v6  ;;  %4117 = vmatmul.msk.f32.gmra.mxu2 %vm2116_vm0, %v4099_v44  ;;  %v4066_v6 = vld [vmem:[%s6836_s9 + $0x210] sm:$0xff] }
 0x5ec   :  { %3974 = vmatmul.msk.f32.gmra.mxu1 %vm2116_vm0, %v3956_v45  ;;  %v4163_v45 = vld [vmem:[%s6836_s9 + $0x368] sm:$0xff] }
 0x5ee   :  { %4054 = vmatmul.msk.f32.gmra.mxu0 %vm2116_vm0, %v4036_v18 }
 0x5f3   :  { %4023 = vmatmul.msk.f32.gmra.mxu3 %vm2116_vm0, %v4005_v53  ;;  %4118 = vmatmul.msk.f32.gmra.mxu2 %vm2116_vm0, %v4100_v17 }
 0x5f4   :  { %3975 = vmatmul.msk.f32.gmra.mxu1 %vm2116_vm0, %v3957_v20  ;;  %v4104_v20 = vld [vmem:[%s6836_s9 + $0x2b0] sm:$0xff] }
 0x5f6   :  { %4055 = vmatmul.msk.f32.gmra.mxu0 %vm2116_vm0, %v4037_v0  ;;  %v4132_v0 = vld [vmem:[%s6836_s9 + $0x300] sm:$0xff] }
 0x5fb   :  { %4024 = vmatmul.msk.f32.gmra.mxu3 %vm2116_vm0, %v4006_v57  ;;  %4119 = vmatmul.msk.f32.gmra.mxu2 %vm2116_vm0, %v4101_v3  ;;  %v4067_v57 = vld [vmem:[%s6836_s9 + $0x218] sm:$0xff]  ;;  %v4138_v3 = vld [vmem:[%s6836_s9 + $0x330] sm:$0xff] }
 0x5fc   :  { %3976 = vmatmul.msk.f32.gmra.mxu1 %vm2116_vm0, %v3958_v26  ;;  %v2307_v26 = vpop.f32.mrf.mxu2 }
 0x5fe   :  { %4056 = vmatmul.msk.f32.gmra.mxu0 %vm2116_vm0, %v4038_v16  ;;  %v4164_v16 = vld [vmem:[%s6836_s9 + $0x370] sm:$0xff] }
 0x603   :  { %4025 = vmatmul.msk.f32.gmra.mxu3 %vm2116_vm0, %v4007_v41  ;;  %4120 = vmatmul.msk.f32.gmra.mxu2 %vm2116_vm0, %v4102_v23  ;;  %v4171_v23 = vld [vmem:[%s6836_s9 + $0x3a8] sm:$0xff] }
 0x604   :  { %3977 = vmatmul.msk.f32.gmra.mxu1 %vm2116_vm0, %v3959_v61 }
 0x606   :  { %4057 = vmatmul.msk.f32.gmra.mxu0 %vm2116_vm0, %v4039_v35  ;;  %v4105_v35 = vld [vmem:[%s6836_s9 + $0x2b8] sm:$0xff] }
 0x60b   :  { %4026 = vmatmul.msk.f32.gmra.mxu3 %vm2116_vm0, %v4008_v4  ;;  %4121 = vmatmul.msk.f32.gmra.mxu2 %vm2116_vm0, %v4103_v28 }
 0x60c   :  { %4078 = vmatmul.msk.f32.vlgmr.msrb.gmra.mxu1 %vm2116_vm0, %v4060_v43  ;;  %v4068_v43 = vld [vmem:[%s6836_s9 + $0x220] sm:$0xff] }
 0x60e   :  { %4058 = vmatmul.msk.f32.gmra.mxu0 %vm2116_vm0, %v4040_v58 }
 0x611   :  { %v2183_v54 = vpop.f32.mrf.mxu1 }
 0x612   :  { %v2293_v42 = vadd.f32 %v2292_v19, %v2183_v54  ;;  %v4106_v19 = vld [vmem:[%s6836_s9 + $0x2c0] sm:$0xff] }
 0x613   :  { %4144 = vmatmul.msk.f32.vlgmr.msrb.gmra.mxu3 %vm2116_vm0, %v4126_v5  ;;  %4122 = vmatmul.msk.f32.gmra.mxu2 %vm2116_vm0, %v4104_v20  ;;  %v4134_v5 = vld [vmem:[%s6836_s9 + $0x310] sm:$0xff] }
 0x614   :  { %4079 = vmatmul.msk.f32.gmra.mxu1 %vm2116_vm0, %v4061_v50  ;;  %v4069_v50 = vld [vmem:[%s6836_s9 + $0x228] sm:$0xff] }
 0x616   :  { %4059 = vmatmul.msk.f32.gmra.mxu0 %vm2116_vm0, %v4041_v49  ;;  %v4166_v49 = vld [vmem:[%s6836_s9 + $0x380] sm:$0xff] }
 0x619   :  { %v2186_v32 = vpop.f32.mrf.mxu1 }
 0x61a   :  { %v2296_v46 = vadd.f32 %v2295_v60, %v2186_v32  ;;  %v4135_v32 = vld [vmem:[%s6836_s9 + $0x318] sm:$0xff]  ;;  %v4070_v60 = vld [vmem:[%s6836_s9 + $0x230] sm:$0xff] }
 0x61b   :  { %4145 = vmatmul.msk.f32.gmra.mxu3 %vm2116_vm0, %v4127_v9  ;;  %4123 = vmatmul.msk.f32.gmra.mxu2 %vm2116_vm0, %v4105_v35  ;;  %v4107_v9 = vld [vmem:[%s6836_s9 + $0x2c8] sm:$0xff] }
 0x61c   :  { %4080 = vmatmul.msk.f32.gmra.mxu1 %vm2116_vm0, %v4062_v34 }
 0x61e   :  { %v2430_v51 = vpop.f32.mrf.mxu3  ;;  %4177 = vmatmul.msk.f32.vlgmr.msrb.gmra.mxu0 %vm2116_vm0, %v4159_v8  ;;  %v4167_v8 = vld [vmem:[%s6836_s9 + $0x388] sm:$0xff] }
 0x61f   :  { %v6323_v15 = vadd.f32 %v2430_v51, %v2293_v42  ;;  %v4136_v51 = vld [vmem:[%s6836_s9 + $0x320] sm:$0xff] }
 0x621   :  { %v2189_v38 = vpop.f32.mrf.mxu1 }
 0x622   :  { %v2299_v22 = vadd.f32 %v2298_v36, %v2189_v38  ;;  %v4168_v38 = vld [vmem:[%s6836_s9 + $0x390] sm:$0xff] }
 0x623   :  { %4146 = vmatmul.msk.f32.gmra.mxu3 %vm2116_vm0, %v4128_v24  ;;  %v6429_v58 = vpop.f32.mrf.mxu0  ;;  %4124 = vmatmul.msk.f32.gmra.mxu2 %vm2116_vm0, %v4106_v19  ;;  %v4071_v24 = vld [vmem:[%s6836_s9 + $0x238] sm:$0xff] }
 0x624   :  { %4081 = vmatmul.msk.f32.gmra.mxu1 %vm2116_vm0, %v4063_v52  ;;  %v4137_v52 = vld [vmem:[%s6836_s9 + $0x328] sm:$0xff] }
 0x626   :  { %v2433_v48 = vpop.f32.mrf.mxu3  ;;  %4178 = vmatmul.msk.f32.gmra.mxu0 %vm2116_vm0, %v4160_v33 }
 0x627   :  { %v6341_v55 = vadd.f32 %v2433_v48, %v2296_v46  ;;  %v4072_v46 = vld [vmem:[%s6836_s9 + $0x240] sm:$0xff]  ;;  %v4169_v48 = vld [vmem:[%s6836_s9 + $0x398] sm:$0xff] }
 0x629   :  { %v2192_v40 = vpop.f32.mrf.mxu1 }
 0x62a   :  { %v2302_v1 = vadd.f32 %v2301_v59, %v2192_v40  ;;  %v4073_v40 = vld [vmem:[%s6836_s9 + $0x248] sm:$0xff] }
 0x62b   :  { %4147 = vmatmul.msk.f32.gmra.mxu3 %vm2116_vm0, %v4129_v10  ;;  %v6454_v44 = vpop.f32.mrf.mxu0  ;;  %4125 = vmatmul.msk.f32.gmra.mxu2 %vm2116_vm0, %v4107_v9 }
 0x62c   :  { %4082 = vmatmul.msk.f32.gmra.mxu1 %vm2116_vm0, %v4064_v7 }
 0x62e   :  { %v2436_v13 = vpop.f32.mrf.mxu3  ;;  %4179 = vmatmul.msk.f32.gmra.mxu0 %vm2116_vm0, %v4161_v31  ;;  %v4170_v31 = vld [vmem:[%s6836_s9 + $0x3a0] sm:$0xff] }
 0x62f   :  { %v6359_v56 = vadd.f32 %v2436_v13, %v2299_v22  ;;  %v4139_v22 = vld [vmem:[%s6836_s9 + $0x338] sm:$0xff]  ;;  %v4074_v13 = vld [vmem:[%s6836_s9 + $0x250] sm:$0xff] }
 0x631   :  { %v2195_v14 = vpop.f32.mrf.mxu1 }
 0x632   :  { %v2305_v18 = vadd.f32 %v2304_v27, %v2195_v14  ;;  %v4140_v14 = vld [vmem:[%s6836_s9 + $0x340] sm:$0xff] }
 0x633   :  { %4148 = vmatmul.msk.f32.gmra.mxu3 %vm2116_vm0, %v4130_v47  ;;  %v6475_v42 = vpop.f32.mrf.mxu0 }
 0x634   :  { %4083 = vmatmul.msk.f32.gmra.mxu1 %vm2116_vm0, %v4065_v2 }
 0x636   :  { %v2439_v30 = vpop.f32.mrf.mxu3  ;;  %4180 = vmatmul.msk.f32.gmra.mxu0 %vm2116_vm0, %v4162_v21  ;;  %v4192_v21 = vld [vmem:[%s6836_s9 + $0x3c0] sm:$0xff] }
 0x637   :  { %v6377_v63 = vadd.f32 %v2439_v30, %v2302_v1  ;;  %v4172_v1 = vld [vmem:[%s6836_s9 + $0x3b0] sm:$0xff]  ;;  %v6551_v30 = vpop.f32.mrf.mxu2 }
 0x639   :  { %v2198_v62 = vpop.f32.mrf.mxu1 }
 0x63a   :  { %v2308_v11 = vadd.f32 %v2307_v26, %v2198_v62  ;;  %v4193_v62 = vld [vmem:[%s6836_s9 + $0x3c8] sm:$0xff] }
 0x63b   :  { %4149 = vmatmul.msk.f32.gmra.mxu3 %vm2116_vm0, %v4131_v39  ;;  %v6494_v33 = vpop.f32.mrf.mxu0 }
 0x63c   :  { %4084 = vmatmul.msk.f32.gmra.mxu1 %vm2116_vm0, %v4066_v6  ;;  %v4173_v6 = vld [vmem:[%s6836_s9 + $0x3b8] sm:$0xff] }
 0x63e   :  { %v2442_v29 = vpop.f32.mrf.mxu3  ;;  %4181 = vmatmul.msk.f32.gmra.mxu0 %vm2116_vm0, %v4163_v45 }
 0x63f   :  { %v6395_v53 = vadd.f32 %v2442_v29, %v2305_v18  ;;  %v6568_v45 = vpop.f32.mrf.mxu2 }
 0x641   :  { %v6404_v25 = vpop.f32.mrf.mxu1 }
 0x643   :  { %4150 = vmatmul.msk.f32.gmra.mxu3 %vm2116_vm0, %v4132_v0  ;;  %v6515_v7 = vpop.f32.mrf.mxu0  ;;  %v4194_v0 = vld [vmem:[%s6836_s9 + $0x3d0] sm:$0xff] }
 0x644   :  { %4085 = vmatmul.msk.f32.gmra.mxu1 %vm2116_vm0, %v4067_v57 }
 0x646   :  { %v2445_v41 = vpop.f32.mrf.mxu3  ;;  %4182 = vmatmul.msk.f32.gmra.mxu0 %vm2116_vm0, %v4164_v16 }
 0x647   :  { %v6415_v61 = vadd.f32 %v2445_v41, %v2308_v11  ;;  %v2316_v57 = vpop.f32.mrf.mxu2  ;;  %v4195_v11 = vld [vmem:[%s6836_s9 + $0x3d8] sm:$0xff] }
 0x649   :  { %v6424_v4 = vpop.f32.mrf.mxu1 }
 0x64b   :  { %4151 = vmatmul.msk.f32.gmra.mxu3 %vm2116_vm0, %v4133_v12  ;;  %v6536_v47 = vpop.f32.mrf.mxu0  ;;  %v4196_v12 = vld [vmem:[%s6836_s9 + $0x3e0] sm:$0xff] }
 0x64c   :  { %4086 = vmatmul.msk.f32.gmra.mxu1 %vm2116_vm0, %v4068_v43 }
 0x64e   :  { %4183 = vmatmul.msk.f32.gmra.mxu0 %vm2116_vm0, %v4165_v37  ;;  %v6554_v28 = vpop.f32.mrf.mxu3 }
 0x64f   :  { %v2319_v43 = vpop.f32.mrf.mxu2 }
 0x651   :  { %v6444_v54 = vpop.f32.mrf.mxu1 }
 0x653   :  { %4152 = vmatmul.msk.f32.gmra.mxu3 %vm2116_vm0, %v4134_v5  ;;  %v6557_v27 = vpop.f32.mrf.mxu0 }
 0x654   :  { %4087 = vmatmul.msk.f32.gmra.mxu1 %vm2116_vm0, %v4069_v50  ;;  %v4197_v50 = vld [vmem:[%s6836_s9 + $0x3e8] sm:$0xff] }
 0x656   :  { %4184 = vmatmul.msk.f32.gmra.mxu0 %vm2116_vm0, %v4166_v49  ;;  %v6571_v18 = vpop.f32.mrf.mxu3 }
 0x657   :  { %v2322_v49 = vpop.f32.mrf.mxu2 }
 0x659   :  { %v6464_v34 = vpop.f32.mrf.mxu1 }
 0x65b   :  { %4153 = vmatmul.msk.f32.gmra.mxu3 %vm2116_vm0, %v4135_v32  ;;  %v6573_v29 = vpop.f32.mrf.mxu0 }
 0x65c   :  { %4088 = vmatmul.msk.f32.gmra.mxu1 %vm2116_vm0, %v4070_v60 }
 0x65e   :  { %4185 = vmatmul.msk.f32.gmra.mxu0 %vm2116_vm0, %v4167_v8  ;;  %v2454_v26 = vpop.f32.mrf.mxu3  ;;  %v4198_v8 = vld [vmem:[%s6836_s9 + $0x3f0] sm:$0xff] }
 0x661   :  { %v6480_v17 = vpop.f32.mrf.mxu1 }
 0x663   :  { %4154 = vmatmul.msk.f32.gmra.mxu3 %vm2116_vm0, %v4136_v51  ;;  %v2608_v41 = vpop.f32.mrf.mxu0  ;;  %v2325_v51 = vpop.f32.mrf.mxu2 }
 0x664   :  { %4089 = vmatmul.msk.f32.gmra.mxu1 %vm2116_vm0, %v4071_v24 }
 0x666   :  { %4186 = vmatmul.msk.f32.gmra.mxu0 %vm2116_vm0, %v4168_v38  ;;  %v2457_v37 = vpop.f32.mrf.mxu3 }
 0x669   :  { %v6496_v36 = vpop.f32.mrf.mxu1 }
 0x66b   :  { %4155 = vmatmul.msk.f32.gmra.mxu3 %vm2116_vm0, %v4137_v52  ;;  %v2611_v19 = vpop.f32.mrf.mxu0 }
 0x66c   :  { %4090 = vmatmul.msk.f32.gmra.mxu1 %vm2116_vm0, %v4072_v46  ;;  %v4199_v46 = vld [vmem:[%s6836_s9 + $0x3f8] sm:$0xff] }
 0x66e   :  { %4187 = vmatmul.msk.f32.gmra.mxu0 %vm2116_vm0, %v4169_v48  ;;  %v2460_v9 = vpop.f32.mrf.mxu3  ;;  %v6615_v48 = vpop.f32.mrf.mxu2 }
 0x671   :  { %v6510_v10 = vpop.f32.mrf.mxu1 }
 0x673   :  { %4156 = vmatmul.msk.f32.gmra.mxu3 %vm2116_vm0, %v4138_v3  ;;  %v2614_v32 = vpop.f32.mrf.mxu0 }
 0x674   :  { %4091 = vmatmul.msk.f32.gmra.mxu1 %vm2116_vm0, %v4073_v40 }
 0x676   :  { %4188 = vmatmul.msk.f32.gmra.mxu0 %vm2116_vm0, %v4170_v31  ;;  %v6605_v24 = vpop.f32.mrf.mxu3  ;;  %v4200_v31 = vld [vmem:[%s6836_s9 + $0x400] sm:$0xff] }
 0x679   :  { %v6526_v59 = vpop.f32.mrf.mxu1 }
 0x67b   :  { %4157 = vmatmul.msk.f32.gmra.mxu3 %vm2116_vm0, %v4139_v22  ;;  %v6607_v38 = vpop.f32.mrf.mxu0 }
 0x67c   :  { %4092 = vmatmul.msk.f32.gmra.mxu1 %vm2116_vm0, %v4074_v13  ;;  %v2317_v13 = vadd.f32 %v2316_v57, %v6444_v54  ;;  %v3425_v54 = vld [vmem:[%s6839_s10 + $0x68] sm:$0xff]  ;;  %v6642_v57 = vpop.f32.mrf.mxu2 }
 0x67e   :  { %4189 = vmatmul.msk.f32.gmra.mxu0 %vm2116_vm0, %v4171_v23  ;;  %v6617_v3 = vpop.f32.mrf.mxu3  ;;  %v3427_v23 = vld [vmem:[%s6839_s10 + $0x78] sm:$0xff] }
 0x67f   :  { %3518 = vmatpush.msra.mxu2 %v3427_v23 }
 0x681   :  { %v6542_v2 = vpop.f32.mrf.mxu1 }
 0x683   :  { %4158 = vmatmul.msk.f32.gmra.mxu3 %vm2116_vm0, %v4140_v14  ;;  %v6624_v22 = vpop.f32.mrf.mxu0  ;;  %v2483_v14 = vadd.f32 %v2454_v26, %v2317_v13 }
 0x684   :  { %4210 = vmatmul.msk.f32.vlgmr.msra.gmra.mxu1 %vm2116_vm0, %v4192_v21  ;;  %v3426_v21 = vld [vmem:[%s6839_s10 + $0x70] sm:$0xff] }
 0x685   :  { %3519 = vmatpush.msra.mxu2 %v3426_v21  ;;  %v2334_v21 = vpop.f32.mrf.mxu2 }
 0x686   :  { %4190 = vmatmul.msk.f32.gmra.mxu0 %vm2116_vm0, %v4172_v1  ;;  %v2637_v1 = vadd.f32 %v2608_v41, %v2483_v14  ;;  %v6644_v26 = vpop.f32.mrf.mxu3  ;;  %v2320_v41 = vadd.f32 %v2319_v43, %v6464_v34  ;;  %v4202_v34 = vld [vmem:[%s6836_s9 + $0x410] sm:$0xff]  ;;  %v3421_v43 = vld [vmem:[%s6839_s10 + $0x48] sm:$0xff]  ;;  %v2323_v14 = vadd.f32 %v2322_v49, %v6480_v17  ;;  %v4203_v17 = vld [vmem:[%s6836_s9 + $0x418] sm:$0xff] }
 0x687   :  { %3520 = vmatpush.msra.mxu2 %v3425_v54  ;;  %v3418_v54 = vld [vmem:[%s6839_s10 + $0x30] sm:$0xff]  ;;  %v3417_v49 = vld [vmem:[%s6839_s10 + $0x28] sm:$0xff] }
 0x689   :  { %v6559_v39 = vpop.f32.mrf.mxu1 }
 0x68c   :  { %4211 = vmatmul.msk.f32.gmra.mxu1 %vm2116_vm0, %v4193_v62 }
 0x68e   :  { %4191 = vmatmul.msk.f32.gmra.mxu0 %vm2116_vm0, %v4173_v6  ;;  %v4201_v6 = vld [vmem:[%s6836_s9 + $0x408] sm:$0xff] }
 0x691   :  { %v6575_v20 = vpop.f32.mrf.mxu1 }
 0x694   :  { %4212 = vmatmul.msk.f32.gmra.mxu1 %vm2116_vm0, %v4194_v0 }
 0x699   :  { %v6581_v16 = vpop.f32.mrf.mxu1 }
 0x69c   :  { %4213 = vmatmul.msk.f32.gmra.mxu1 %vm2116_vm0, %v4195_v11  ;;  %v3424_v11 = vld [vmem:[%s6839_s10 + $0x60] sm:$0xff] }
 0x69d   :  { %3521 = vmatpush.msra.mxu2 %v3424_v11 }
 0x6a1   :  { %v6587_v35 = vpop.f32.mrf.mxu1 }
 0x6a4   :  { %4214 = vmatmul.msk.f32.gmra.mxu1 %vm2116_vm0, %v4196_v12  ;;  %v3423_v12 = vld [vmem:[%s6839_s10 + $0x58] sm:$0xff] }
 0x6a5   :  { %3522 = vmatpush.msra.mxu2 %v3423_v12 }
 0x6a9   :  { %v6593_v5 = vpop.f32.mrf.mxu1 }
 0x6ac   :  { %4215 = vmatmul.msk.f32.gmra.mxu1 %vm2116_vm0, %v4197_v50  ;;  %v2623_v50 = vpop.f32.mrf.mxu0 }
 0x6b1   :  { %v6599_v60 = vpop.f32.mrf.mxu1 }
 0x6b4   :  { %4216 = vmatmul.msk.f32.gmra.mxu1 %vm2116_vm0, %v4198_v8  ;;  %v2484_v8 = vadd.f32 %v2457_v37, %v2320_v41  ;;  %v3420_v37 = vld [vmem:[%s6839_s10 + $0x40] sm:$0xff] }
 0x6b9   :  { %v6609_v52 = vpop.f32.mrf.mxu1 }
 0x6bc   :  { %4217 = vmatmul.msk.f32.gmra.mxu1 %vm2116_vm0, %v4199_v46  ;;  %v3422_v46 = vld [vmem:[%s6839_s10 + $0x50] sm:$0xff] }
 0x6bd   :  { %3523 = vmatpush.msra.mxu2 %v3422_v46  ;;  %v2892_v46 = vpop.f32.mrf.mxu2 }
 0x6bf   :  { %3524 = vmatpush.msra.mxu2 %v3421_v43 }
 0x6c1   :  { %v6619_v40 = vpop.f32.mrf.mxu1  ;;  %3525 = vmatpush.msra.mxu2 %v3420_v37  ;;  %v4204_v37 = vld [vmem:[%s6836_s9 + $0x420] sm:$0xff] }
 0x6c4   :  { %4218 = vmatmul.msk.f32.gmra.mxu1 %vm2116_vm0, %v4200_v31  ;;  %v2638_v31 = vadd.f32 %v2611_v19, %v2484_v8  ;;  %v3419_v19 = vld [vmem:[%s6839_s10 + $0x38] sm:$0xff]  ;;  %v2326_v8 = vadd.f32 %v2325_v51, %v6496_v36 }
 0x6c5   :  { %3526 = vmatpush.msra.mxu2 %v3419_v19  ;;  %v3412_v19 = vld [vmem:[%s6839_s10] sm:$0xff] }
 0x6c7   :  { %3527 = vmatpush.msra.mxu2 %v3418_v54  ;;  %v2895_v54 = vpop.f32.mrf.mxu2 }
 0x6c9   :  { %v2762_v62 = vpop.f32.mrf.mxu1  ;;  %3528 = vmatpush.msra.mxu2 %v3417_v49  ;;  %v4205_v49 = vld [vmem:[%s6836_s9 + $0x428] sm:$0xff] }
 0x6ca   :  { %v6640_v0 = vadd.f32 %v2762_v62, %v2637_v1  ;;  %v2472_v1 = vpop.f32.mrf.mxu3  ;;  %v2485_v62 = vadd.f32 %v2460_v9, %v2323_v14  ;;  %v3416_v9 = vld [vmem:[%s6839_s10 + $0x20] sm:$0xff]  ;;  %v3413_v14 = vld [vmem:[%s6839_s10 + $0x8] sm:$0xff] }
 0x6cb   :  { %3529 = vmatpush.msra.mxu2 %v3416_v9 }
 0x6cc   :  { %4219 = vmatmul.msk.f32.gmra.mxu1 %vm2116_vm0, %v4201_v6  ;;  %v2626_v6 = vpop.f32.mrf.mxu0  ;;  %v2639_v11 = vadd.f32 %v2614_v32, %v2485_v62  ;;  %v3415_v32 = vld [vmem:[%s6839_s10 + $0x18] sm:$0xff] }
 0x6cd   :  { %3530 = vmatpush.msra.mxu2 %v3415_v32 }
 0x6cf   :  { %v2898_v32 = vpop.f32.mrf.mxu2 }
 0x6d1   :  { %v2765_v13 = vpop.f32.mrf.mxu1 }
 0x6d2   :  { %v6663_v23 = vadd.f32 %v2765_v13, %v2638_v31  ;;  %v2486_v31 = vadd.f32 %v6605_v24, %v2326_v8  ;;  %v3045_v13 = vpop.f32.mrf.mxu3 }
 0x6d4   :  { %4220 = vmatmul.msk.f32.gmra.mxu1 %vm2116_vm0, %v4202_v34  ;;  %v3414_v34 = vld [vmem:[%s6839_s10 + $0x10] sm:$0xff]  ;;  %v2640_v43 = vadd.f32 %v6607_v38, %v2486_v31  ;;  %v3198_v36 = vpop.f32.mrf.mxu0  ;;  %v2329_v38 = vadd.f32 %v6615_v48, %v6510_v10  ;;  %v2332_v10 = vadd.f32 %v6642_v57, %v6526_v59  ;;  %v2629_v59 = vadd.f32 %v6429_v58, %v6323_v15 }
 0x6d5   :  { %3531 = vmatpush.msra.mxu2 %v3414_v34 }
 0x6d6   :  { %v2487_v62 = vadd.f32 %v6617_v3, %v2329_v38  ;;  %v2488_v48 = vadd.f32 %v6644_v26, %v2332_v10  ;;  %v2783_v26 = vadd.f32 %v6559_v39, %v2629_v59 }
 0x6d7   :  { %3532 = vmatpush.msra.mxu2 %v3413_v14  ;;  %v2901_v38 = vpop.f32.mrf.mxu2 }
 0x6d8   :  { %v2642_v3 = vadd.f32 %v2623_v50, %v2488_v48 }
 0x6d9   :  { %v2768_v41 = vpop.f32.mrf.mxu1  ;;  %3533 = vmatpush.msra.mxu2 %v3412_v19 }
 0x6da   :  { %v6682_v12 = vadd.f32 %v2768_v41, %v2639_v11  ;;  %v2641_v11 = vadd.f32 %v6624_v22, %v2487_v62  ;;  %v3048_v41 = vpop.f32.mrf.mxu3  ;;  %v4206_v22 = vld [vmem:[%s6836_s9 + $0x430] sm:$0xff]  ;;  %v2937_v62 = vadd.f32 %v2892_v46, %v2783_v26 }
 0x6dc   :  { %4221 = vmatmul.msk.f32.gmra.mxu1 %vm2116_vm0, %v4203_v17  ;;  %v3201_v8 = vpop.f32.mrf.mxu0 }
 0x6df   :  { %v2904_v39 = vpop.f32.mrf.mxu2 }
 0x6e1   :  { %v2771_v51 = vpop.f32.mrf.mxu1 }
 0x6e2   :  { %v6703_v24 = vadd.f32 %v2771_v51, %v2640_v43  ;;  %v3051_v43 = vpop.f32.mrf.mxu3  ;;  %v2335_v51 = vadd.f32 %v2334_v21, %v6542_v2  ;;  %v3090_v2 = vadd.f32 %v3045_v13, %v2937_v62 }
 0x6e4   :  { %4222 = vmatmul.msk.f32.gmra.mxu1 %vm2116_vm0, %v4204_v37  ;;  %v3204_v37 = vpop.f32.mrf.mxu0  ;;  %v2489_v57 = vadd.f32 %v2472_v1, %v2335_v51  ;;  %v3243_v10 = vadd.f32 %v3198_v36, %v3090_v2  ;;  %v2631_v1 = vadd.f32 %v6475_v42, %v6359_v56 }
 0x6e6   :  { %v2643_v50 = vadd.f32 %v2626_v6, %v2489_v57  ;;  %v2785_v46 = vadd.f32 %v6581_v16, %v2631_v1  ;;  %v2633_v16 = vadd.f32 %v6515_v7, %v6395_v53  ;;  %v2311_v53 = vadd.f32 %v6551_v30, %v6404_v25 }
 0x6e8   :  { %v2939_v13 = vadd.f32 %v2898_v32, %v2785_v46  ;;  %v2787_v32 = vadd.f32 %v6593_v5, %v2633_v16 }
 0x6e9   :  { %v2774_v17 = vpop.f32.mrf.mxu1 }
 0x6ea   :  { %v6716_v9 = vadd.f32 %v2774_v17, %v2641_v11  ;;  %v3054_v11 = vpop.f32.mrf.mxu3  ;;  %v2630_v17 = vadd.f32 %v6454_v44, %v6341_v55  ;;  %v3092_v36 = vadd.f32 %v3051_v43, %v2939_v13  ;;  %v2941_v62 = vadd.f32 %v2904_v39, %v2787_v32 }
 0x6eb   :  { %v2314_v39 = vadd.f32 %v6568_v45, %v6424_v4 }
 0x6ec   :  { %4223 = vmatmul.msk.f32.gmra.mxu1 %vm2116_vm0, %v4205_v49  ;;  %v3207_v21 = vpop.f32.mrf.mxu0  ;;  %v2784_v49 = vadd.f32 %v6575_v20, %v2630_v17  ;;  %v2632_v20 = vadd.f32 %v6494_v33, %v6377_v63  ;;  %v3245_v59 = vadd.f32 %v3204_v37, %v3092_v36  ;;  %v2634_v37 = vadd.f32 %v6536_v47, %v6415_v61 }
 0x6ed   :  { %v2482_v25 = vadd.f32 %v6571_v18, %v2314_v39 }
 0x6ee   :  { %v2938_v58 = vadd.f32 %v2895_v54, %v2784_v49  ;;  %v2907_v54 = vpop.f32.mrf.mxu2  ;;  %v2786_v51 = vadd.f32 %v6587_v35, %v2632_v20 }
 0x6f0   :  { %v3091_v6 = vadd.f32 %v3048_v41, %v2938_v58  ;;  %v2940_v26 = vadd.f32 %v2901_v38, %v2786_v51  ;;  %v2788_v38 = vadd.f32 %v6599_v60, %v2634_v37 }
 0x6f1   :  { %v2777_v31 = vpop.f32.mrf.mxu1 }
 0x6f2   :  { %v6725_v34 = vadd.f32 %v2777_v31, %v2642_v3  ;;  %v3057_v3 = vpop.f32.mrf.mxu3  ;;  %v3244_v31 = vadd.f32 %v3201_v8, %v3091_v6  ;;  %v3093_v8 = vadd.f32 %v3054_v11, %v2940_v26  ;;  %v2481_v11 = vadd.f32 %v6554_v28, %v2311_v53 }
 0x6f3   :  { %v3094_v17 = vadd.f32 %v3057_v3, %v2941_v62  ;;  %v2636_v6 = vadd.f32 %v6573_v29, %v2482_v25 }
 0x6f4   :  { %4224 = vmatmul.msk.f32.gmra.mxu1 %vm2116_vm0, %v4206_v22  ;;  %v3210_v22 = vpop.f32.mrf.mxu0 }
 0x6f5   :  { %v3247_v2 = vadd.f32 %v3210_v22, %v3094_v17 }
 0x6f9   :  { %v2780_v14 = vpop.f32.mrf.mxu1 }
 0x6fa   :  { %v6732_v19 = vadd.f32 %v2780_v14, %v2643_v50  ;;  %v3060_v57 = vpop.f32.mrf.mxu3  ;;  %v3246_v50 = vadd.f32 %v3207_v21, %v3093_v8  ;;  %v2910_v14 = vpop.f32.mrf.mxu2  ;;  %v2942_v21 = vadd.f32 %v2907_v54, %v2788_v38 }
 0x6fc   :  { %v3213_v41 = vpop.f32.mrf.mxu0 }
 0x701   :  { %v3352_v48 = vpop.f32.mrf.mxu1 }
 0x702   :  { %v3397_v15 = vadd.f32 %v3352_v48, %v3243_v10  ;;  %v3063_v43 = vpop.f32.mrf.mxu3  ;;  %v2913_v5 = vpop.f32.mrf.mxu2  ;;  %v2635_v48 = vadd.f32 %v6557_v27, %v2481_v11  ;;  %v2790_v27 = vadd.f32 %v6619_v40, %v2636_v6 }
 0x704   :  { %3534 = vmatmul.f32.vlgmr.msra.gmra.mxu2 %v3397_v15  ;;  %v3216_v35 = vpop.f32.mrf.mxu0  ;;  %v3095_v15 = vadd.f32 %v3060_v57, %v2942_v21  ;;  %v2789_v61 = vadd.f32 %v6609_v52, %v2635_v48 }
 0x706   :  { %v3248_v47 = vadd.f32 %v3213_v41, %v3095_v15  ;;  %v2943_v30 = vadd.f32 %v2910_v14, %v2789_v61 }
 0x708   :  { %v3096_v3 = vadd.f32 %v3063_v43, %v2943_v30 }
 0x709   :  { %v3355_v55 = vpop.f32.mrf.mxu1 }
 0x70a   :  { %v3398_v44 = vadd.f32 %v3355_v55, %v3244_v31  ;;  %v3066_v10 = vpop.f32.mrf.mxu3  ;;  %v2916_v28 = vpop.f32.mrf.mxu2  ;;  %v3249_v31 = vadd.f32 %v3216_v35, %v3096_v3 }
 0x70b   :  { %v2945_v51 = vadd.f32 %v2916_v28, %v6640_v0 }
 0x70c   :  { %3537 = vmatmul.f32.gmra.mxu2 %v3398_v44  ;;  %v3219_v58 = vpop.f32.mrf.mxu0  ;;  %v2944_v44 = vadd.f32 %v2913_v5, %v2790_v27 }
 0x70e   :  { %v3097_v13 = vadd.f32 %v3066_v10, %v2944_v44 }
 0x710   :  { %v3250_v45 = vadd.f32 %v3219_v58, %v3097_v13 }
 0x711   :  { %v3358_v56 = vpop.f32.mrf.mxu1 }
 0x712   :  { %v3399_v42 = vadd.f32 %v3358_v56, %v3245_v59  ;;  %v3069_v46 = vpop.f32.mrf.mxu3  ;;  %v2919_v4 = vpop.f32.mrf.mxu2 }
 0x713   :  { %v3098_v29 = vadd.f32 %v3069_v46, %v2945_v51  ;;  %v2946_v41 = vadd.f32 %v2919_v4, %v6663_v23 }
 0x714   :  { %3540 = vmatmul.f32.gmra.mxu2 %v3399_v42  ;;  %v3222_v22 = vpop.f32.mrf.mxu0 }
 0x715   :  { %v3251_v59 = vadd.f32 %v3222_v22, %v3098_v29  ;;  %v3506_v29 = vpop.permute.xlu0 %3505 }
 0x719   :  { %v3361_v63 = vpop.f32.mrf.mxu1 }
 0x71a   :  { %v3400_v33 = vadd.f32 %v3361_v63, %v3246_v50  ;;  %v3072_v20 = vpop.f32.mrf.mxu3  ;;  %v2922_v57 = vpop.f32.mrf.mxu2 }
 0x71b   :  { %v3099_v16 = vadd.f32 %v3072_v20, %v2946_v41  ;;  %v2947_v63 = vadd.f32 %v2922_v57, %v6682_v12 }
 0x71c   :  { %3543 = vmatmul.f32.gmra.mxu2 %v3400_v33  ;;  %v3225_v54 = vpop.f32.mrf.mxu0 }
 0x71d   :  { %v3252_v8 = vadd.f32 %v3225_v54, %v3099_v16  ;;  %v3511_v54 = vpop.permute.xlu2 %3510 }
 0x721   :  { %v3364_v49 = vpop.f32.mrf.mxu1 }
 0x722   :  { %v3401_v7 = vadd.f32 %v3364_v49, %v3247_v2  ;;  %v3075_v42 = vpop.f32.mrf.mxu3  ;;  %v2925_v14 = vpop.f32.mrf.mxu2 }
 0x723   :  { %v3100_v33 = vadd.f32 %v3075_v42, %v2947_v63  ;;  %v2948_v17 = vadd.f32 %v2925_v14, %v6703_v24 }
 0x724   :  { %3546 = vmatmul.f32.gmra.mxu2 %v3401_v7  ;;  %v3228_v26 = vpop.f32.mrf.mxu0 }
 0x725   :  { %v3253_v62 = vadd.f32 %v3228_v26, %v3100_v33 }
 0x729   :  { %v3367_v60 = vpop.f32.mrf.mxu1 }
 0x72a   :  { %v3402_v1 = vadd.f32 %v3367_v60, %v3248_v47  ;;  %v3078_v0 = vpop.f32.mrf.mxu3  ;;  %v2928_v23 = vpop.f32.mrf.mxu2 }
 0x72b   :  { %v3101_v38 = vadd.f32 %v3078_v0, %v2948_v17  ;;  %v2949_v11 = vadd.f32 %v2928_v23, %v6716_v9 }
 0x72c   :  { %3549 = vmatmul.f32.gmra.mxu2 %v3402_v1  ;;  %v3231_v43 = vpop.f32.mrf.mxu0 }
 0x72d   :  { %v3254_v49 = vadd.f32 %v3231_v43, %v3101_v38 }
 0x731   :  { %v3370_v52 = vpop.f32.mrf.mxu1 }
 0x732   :  { %v3403_v55 = vadd.f32 %v3370_v52, %v3249_v31  ;;  %v3081_v2 = vpop.f32.mrf.mxu3  ;;  %v2931_v21 = vpop.f32.mrf.mxu2 }
 0x733   :  { %v3102_v12 = vadd.f32 %v3081_v2, %v2949_v11  ;;  %v2950_v24 = vadd.f32 %v2931_v21, %v6725_v34 }
 0x734   :  { %3552 = vmatmul.f32.gmra.mxu2 %v3403_v55  ;;  %v3234_v53 = vpop.f32.mrf.mxu0 }
 0x735   :  { %v3255_v10 = vadd.f32 %v3234_v53, %v3102_v12 }
 0x739   :  { %v3373_v18 = vpop.f32.mrf.mxu1 }
 0x73a   :  { %v3404_v36 = vadd.f32 %v3373_v18, %v3250_v45  ;;  %v3084_v48 = vpop.f32.mrf.mxu3  ;;  %v2934_v39 = vpop.f32.mrf.mxu2 }
 0x73b   :  { %v3103_v47 = vadd.f32 %v3084_v48, %v2950_v24  ;;  %v2951_v28 = vadd.f32 %v2934_v39, %v6732_v19 }
 0x73c   :  { %3555 = vmatmul.f32.gmra.mxu2 %v3404_v36  ;;  %v3237_v61 = vpop.f32.mrf.mxu0  ;;  %v3516_v36 = vpop.permute.xlu1 %3515 }
 0x73d   :  { %v3256_v60 = vadd.f32 %v3237_v61, %v3103_v47 }
 0x741   :  { %v3376_v40 = vpop.f32.mrf.mxu1 }
 0x742   :  { %v3405_v56 = vadd.f32 %v3376_v40, %v3251_v59  ;;  %v3087_v30 = vpop.f32.mrf.mxu3  ;;  %v3496_v40 = vpop.permute.xlu2 %3495 }
 0x743   :  { %v3104_v6 = vadd.f32 %v3087_v30, %v2951_v28 }
 0x744   :  { %3558 = vmatmul.f32.gmra.mxu2 %v3405_v56  ;;  %v3240_v9 = vpop.f32.mrf.mxu0  ;;  %v3501_v59 = vpop.permute.xlu1 %3500 }
 0x745   :  { %v3257_v3 = vadd.f32 %v3240_v9, %v3104_v6  ;;  %v3491_v56 = vpop.permute.xlu0 %3490  ;;  %v3595_v6 = vld [vmem:[%s6840_s12] sm:$0xff] }
 0x749   :  { %v3379_v32 = vpop.f32.mrf.mxu1 }
 0x74a   :  { %v3406_v50 = vadd.f32 %v3379_v32, %v3252_v8 }
 0x74c   :  { %3561 = vmatmul.f32.gmra.mxu2 %v3406_v50  ;;  %v3486_v16 = vpop.permute.xlu1 %3485  ;;  %v3481_v50 = vpop.permute.xlu2 %3480 }
 0x74d   :  { %v3476_v0 = vpop.permute.xlu0 %3475 }
 0x751   :  { %v3382_v35 = vpop.f32.mrf.mxu1 }
 0x752   :  { %v3407_v37 = vadd.f32 %v3382_v35, %v3253_v62 }
 0x754   :  { %3564 = vmatmul.f32.gmra.mxu2 %v3407_v37  ;;  %v3471_v23 = vpop.permute.xlu1 %3470 }
 0x759   :  { %v3385_v7 = vpop.f32.mrf.mxu1 }
 0x75a   :  { %v3408_v5 = vadd.f32 %v3385_v7, %v3254_v49  ;;  %v3466_v49 = vpop.permute.xlu2 %3465 }
 0x75c   :  { %3567 = vmatmul.f32.gmra.mxu2 %v3408_v5  ;;  %v3461_v5 = vpop.permute.xlu0 %3460 }
 0x761   :  { %v3388_v15 = vpop.f32.mrf.mxu1 }
 0x762   :  { %v3409_v58 = vadd.f32 %v3388_v15, %v3255_v10  ;;  %v3451_v47 = vpop.permute.xlu2 %3450 }
 0x764   :  { %3570 = vmatmul.f32.gmra.mxu2 %v3409_v58  ;;  %v3456_v58 = vpop.permute.xlu1 %3455 }
 0x769   :  { %v3391_v1 = vpop.f32.mrf.mxu1 }
 0x76a   :  { %v3410_v25 = vadd.f32 %v3391_v1, %v3256_v60  ;;  %v3446_v1 = vpop.permute.xlu0 %3445 }
 0x76c   :  { %3573 = vmatmul.f32.gmra.mxu2 %v3410_v25 }
 0x771   :  { %v3394_v46 = vpop.f32.mrf.mxu1 }
 0x772   :  { %v3411_v27 = vadd.f32 %v3394_v46, %v3257_v3  ;;  %v3596_v3 = vld [vmem:[%s6840_s12 + $0x8] sm:$0xff]  ;;  %v3597_v46 = vld [vmem:[%s6840_s12 + $0x10] sm:$0xff] }
 0x774   :  { %3576 = vmatmul.f32.gmra.mxu2 %v3411_v27  ;;  %v3598_v27 = vld [vmem:[%s6840_s12 + $0x18] sm:$0xff] }
 0x787   :  { %v6766_v31 = vpop.f32.mrf.mxu2 }
 0x788   :  { %v3536_v25 = vadd.f32 %v6766_v31, %v3446_v1  ;;  %v3599_v31 = vld [vmem:[%s6840_s12 + $0x20] sm:$0xff] }
 0x78a   :  { %v3580_v9 = vmax.f32 %v3536_v25, 0.0 }
 0x78f   :  { %v3538_v22 = vpop.f32.mrf.mxu2 }
 0x790   :  { %v3539_v60 = vadd.f32 %v3538_v22, %v3451_v47  ;;  %v3600_v22 = vld [vmem:[%s6840_s12 + $0x28] sm:$0xff] }
 0x791   :  { %v3767_v47 = vld [vmem:[%s6841_s14 + $0x8] sm:$0xff] }
 0x792   :  { %v3581_v28 = vmax.f32 %v3539_v60, 0.0 }
 0x797   :  { %v3541_v34 = vpop.f32.mrf.mxu2 }
 0x798   :  { %v3542_v61 = vadd.f32 %v3541_v34, %v3456_v58  ;;  %v3601_v34 = vld [vmem:[%s6840_s12 + $0x30] sm:$0xff] }
 0x79a   :  { %v3582_v30 = vmax.f32 %v3542_v61, 0.0 }
 0x79f   :  { %v3544_v52 = vpop.f32.mrf.mxu2 }
 0x7a0   :  { %v3545_v48 = vadd.f32 %v3544_v52, %v3461_v5  ;;  %v3602_v52 = vld [vmem:[%s6840_s12 + $0x38] sm:$0xff] }
 0x7a2   :  { %v3583_v39 = vmax.f32 %v3545_v48, 0.0 }
 0x7a7   :  { %v3547_v55 = vpop.f32.mrf.mxu2 }
 0x7a8   :  { %v3548_v21 = vadd.f32 %v3547_v55, %v3466_v49  ;;  %v3603_v55 = vld [vmem:[%s6840_s12 + $0x40] sm:$0xff] }
 0x7aa   :  { %v3584_v24 = vmax.f32 %v3548_v21, 0.0 }
 0x7af   :  { %v3550_v44 = vpop.f32.mrf.mxu2 }
 0x7b0   :  { %v3551_v11 = vadd.f32 %v3550_v44, %v3471_v23  ;;  %v3604_v44 = vld [vmem:[%s6840_s12 + $0x48] sm:$0xff] }
 0x7b2   :  { %v3585_v15 = vmax.f32 %v3551_v11, 0.0 }
 0x7b7   :  { %v3553_v13 = vpop.f32.mrf.mxu2 }
 0x7b8   :  { %v3554_v53 = vadd.f32 %v3553_v13, %v3476_v0  ;;  %v3605_v13 = vld [vmem:[%s6840_s12 + $0x50] sm:$0xf] }
 0x7ba   :  { %v3586_v10 = vmax.f32 %v3554_v53, 0.0 }
 0x7bf   :  { %v3556_v4 = vpop.f32.mrf.mxu2 }
 0x7c0   :  { %v3557_v38 = vadd.f32 %v3556_v4, %v3481_v50 }
 0x7c2   :  { %v3587_v12 = vmax.f32 %v3557_v38, 0.0 }
 0x7c7   :  { %v3559_v45 = vpop.f32.mrf.mxu2 }
 0x7c8   :  { %v3560_v37 = vadd.f32 %v3559_v45, %v3486_v16 }
 0x7ca   :  { %v3588_v7 = vmax.f32 %v3560_v37, 0.0 }
 0x7cf   :  { %v3562_v20 = vpop.f32.mrf.mxu2 }
 0x7d0   :  { %v3563_v62 = vadd.f32 %v3562_v20, %v3491_v56  ;;  %v3660_v56 = vpop.permute.xlu0 %3659 }
 0x7d2   :  { %v3589_v2 = vmax.f32 %v3563_v62, 0.0 }
 0x7d7   :  { %v3565_v18 = vpop.f32.mrf.mxu2 }
 0x7d8   :  { %v3566_v33 = vadd.f32 %v3565_v18, %v3496_v40 }
 0x7da   :  { %v3590_v17 = vmax.f32 %v3566_v33, 0.0 }
 0x7df   :  { %v3568_v19 = vpop.f32.mrf.mxu2 }
 0x7e0   :  { %v3569_v14 = vadd.f32 %v3568_v19, %v3501_v59  ;;  %v3670_v59 = vpop.permute.xlu1 %3669 }
 0x7e2   :  { %v3591_v35 = vmax.f32 %v3569_v14, 0.0  ;;  %v3645_v14 = vpop.permute.xlu0 %3644 }
 0x7e7   :  { %v3571_v51 = vpop.f32.mrf.mxu2 }
 0x7e8   :  { %v3572_v8 = vadd.f32 %v3571_v51, %v3506_v29 }
 0x7ea   :  { %v3592_v43 = vmax.f32 %v3572_v8, 0.0  ;;  %v3630_v53 = vpop.permute.xlu0 %3629 }
 0x7ef   :  { %v3574_v57 = vpop.f32.mrf.mxu2 }
 0x7f0   :  { %v3575_v41 = vadd.f32 %v3574_v57, %v3511_v54  ;;  %v3665_v57 = vpop.permute.xlu2 %3664 }
 0x7f2   :  { %v3593_v63 = vmax.f32 %v3575_v41, 0.0  ;;  %v3773_v60 = vpop.permute.xlu0 %3772 }
 0x7f7   :  { %v3577_v42 = vpop.f32.mrf.mxu2 }
 0x7f8   :  { %v3578_v26 = vadd.f32 %v3577_v42, %v3516_v36  ;;  %v3655_v42 = vpop.permute.xlu1 %3654  ;;  %v3650_v41 = vpop.permute.xlu2 %3649 }
 0x7fa   :  { %v3594_v32 = vmax.f32 %v3578_v26, 0.0 }
 0x7fc   :  { %3706 = vmatpush.msra.mxu3 %v3594_v32 }
 0x7fe   :  { %3707 = vmatpush.msra.mxu3 %v3593_v63 }
 0x800   :  { %3708 = vmatpush.msra.mxu3 %v3592_v43  ;;  %v3640_v33 = vpop.permute.xlu1 %3639 }
 0x802   :  { %3709 = vmatpush.msra.mxu3 %v3591_v35  ;;  %v3635_v35 = vpop.permute.xlu2 %3634 }
 0x804   :  { %3710 = vmatpush.msra.mxu3 %v3590_v17 }
 0x806   :  { %3711 = vmatpush.msra.mxu3 %v3589_v2 }
 0x808   :  { %3712 = vmatpush.msra.mxu3 %v3588_v7  ;;  %v3625_v11 = vpop.permute.xlu1 %3624 }
 0x80a   :  { %3713 = vmatpush.msra.mxu3 %v3587_v12 }
 0x80c   :  { %3714 = vmatpush.msra.mxu3 %v3586_v10  ;;  %v3620_v10 = vpop.permute.xlu2 %3619 }
 0x80e   :  { %3715 = vmatpush.msra.mxu3 %v3585_v15 }
 0x810   :  { %3716 = vmatpush.msra.mxu3 %v3584_v24  ;;  %v3766_v24 = vld [vmem:[%s6841_s14] sm:$0xff]  ;;  %v3778_v25 = vpop.permute.xlu1 %3777 }
 0x812   :  { %3717 = vmatpush.msra.mxu3 %v3583_v39 }
 0x814   :  { %3718 = vmatpush.msra.mxu3 %v3582_v30 }
 0x816   :  { %3719 = vmatpush.msra.mxu3 %v3581_v28 }
 0x818   :  { %3720 = vmatpush.msra.mxu3 %v3580_v9 }
 0x819   :  { %4225 = vmatmul.msk.f32.vlgmr.msra.gmra.mxu3 %vm3283_vm2, %v3595_v6 }
 0x821   :  { %4226 = vmatmul.msk.f32.gmra.mxu3 %vm3283_vm2, %v3596_v3 }
 0x829   :  { %4227 = vmatmul.msk.f32.gmra.mxu3 %vm3283_vm2, %v3597_v46 }
 0x831   :  { %4228 = vmatmul.msk.f32.gmra.mxu3 %vm3283_vm2, %v3598_v27 }
 0x839   :  { %4229 = vmatmul.msk.f32.gmra.mxu3 %vm3283_vm2, %v3599_v31 }
 0x841   :  { %4230 = vmatmul.msk.f32.gmra.mxu3 %vm3283_vm2, %v3600_v22 }
 0x849   :  { %4231 = vmatmul.msk.f32.gmra.mxu3 %vm3283_vm2, %v3601_v34 }
 0x851   :  { %4232 = vmatmul.msk.f32.gmra.mxu3 %vm3283_vm2, %v3602_v52 }
 0x859   :  { %4233 = vmatmul.msk.f32.gmra.mxu3 %vm3283_vm2, %v3603_v55 }
 0x861   :  { %4234 = vmatmul.msk.f32.gmra.mxu3 %vm3283_vm2, %v3604_v44 }
 0x869   :  { %4235 = vmatmul.msk.f32.gmra.mxu3 %vm3283_vm2, %v3605_v13 }
 0x89c   :  { %v3722_v4 = vpop.f32.mrf.mxu3 }
 0x89d   :  { %v3723_v48 = vadd.f32 %v3722_v4, %v3620_v10 }
 0x89f   :  { %v3755_v61 = vmax.f32 %v3723_v48, 0.0 }
 0x8a4   :  { %v3725_v45 = vpop.f32.mrf.mxu3 }
 0x8a5   :  { %v3726_v12 = vadd.f32 %v3725_v45, %v3625_v11 }
 0x8a7   :  { %v3756_v58 = vmax.f32 %v3726_v12, 0.0 }
 0x8ac   :  { %v3728_v20 = vpop.f32.mrf.mxu3 }
 0x8ad   :  { %v3729_v7 = vadd.f32 %v3728_v20, %v3630_v53 }
 0x8af   :  { %v3757_v15 = vmax.f32 %v3729_v7, 0.0 }
 0x8b4   :  { %v3731_v18 = vpop.f32.mrf.mxu3 }
 0x8b5   :  { %v3732_v2 = vadd.f32 %v3731_v18, %v3635_v35 }
 0x8b7   :  { %v3758_v21 = vmax.f32 %v3732_v2, 0.0 }
 0x8bc   :  { %v3734_v19 = vpop.f32.mrf.mxu3 }
 0x8bd   :  { %v3735_v23 = vadd.f32 %v3734_v19, %v3640_v33 }
 0x8bf   :  { %v3759_v5 = vmax.f32 %v3735_v23, 0.0 }
 0x8c4   :  { %v3737_v36 = vpop.f32.mrf.mxu3 }
 0x8c5   :  { %v3738_v37 = vadd.f32 %v3737_v36, %v3645_v14 }
 0x8c7   :  { %v3760_v49 = vmax.f32 %v3738_v37, 0.0 }
 0x8cc   :  { %v3740_v54 = vpop.f32.mrf.mxu3 }
 0x8cd   :  { %v3741_v43 = vadd.f32 %v3740_v54, %v3650_v41 }
 0x8cf   :  { %v3761_v38 = vmax.f32 %v3741_v43, 0.0 }
 0x8d4   :  { %v3743_v51 = vpop.f32.mrf.mxu3 }
 0x8d5   :  { %v3744_v63 = vadd.f32 %v3743_v51, %v3655_v42 }
 0x8d7   :  { %v3762_v17 = vmax.f32 %v3744_v63, 0.0 }
 0x8dc   :  { %v3746_v29 = vpop.f32.mrf.mxu3 }
 0x8dd   :  { %v3747_v32 = vadd.f32 %v3746_v29, %v3660_v56 }
 0x8df   :  { %v3763_v62 = vmax.f32 %v3747_v32, 0.0 }
 0x8e4   :  { %v3749_v40 = vpop.f32.mrf.mxu3 }
 0x8e5   :  { %v3750_v16 = vadd.f32 %v3749_v40, %v3665_v57 }
 0x8e7   :  { %v3764_v0 = vmax.f32 %v3750_v16, 0.0 }
 0x8ec   :  { %v3752_v26 = vpop.f32.mrf.mxu3 }
 0x8ed   :  { %v3753_v8 = vadd.f32 %v3752_v26, %v3670_v59 }
 0x8ef   :  { %v3765_v50 = vmax.f32 %v3753_v8, 0.0 }
 0x8f1   :  { %4236 = vmatpush.msk.msra.mxu0 %vm2162_vm15, %v3765_v50 }
 0x8f3   :  { %3796 = vmatpush.msra.mxu0 %v3764_v0 }
 0x8f5   :  { %3797 = vmatpush.msra.mxu0 %v3763_v62 }
 0x8f7   :  { %3798 = vmatpush.msra.mxu0 %v3762_v17 }
 0x8f9   :  { %3799 = vmatpush.msra.mxu0 %v3761_v38 }
 0x8fb   :  { %3800 = vmatpush.msra.mxu0 %v3760_v49 }
 0x8fd   :  { %3801 = vmatpush.msra.mxu0 %v3759_v5 }
 0x8ff   :  { %3802 = vmatpush.msra.mxu0 %v3758_v21 }
 0x901   :  { %3803 = vmatpush.msra.mxu0 %v3757_v15 }
 0x903   :  { %3804 = vmatpush.msra.mxu0 %v3756_v58 }
 0x905   :  { %3805 = vmatpush.msra.mxu0 %v3755_v61 }
 0x906   :  { %4237 = vmatmul.msk.f32.vlgmr.msra.gmra.mxu0 %vm3780_vm5, %v3766_v24 }
 0x90e   :  { %4238 = vmatmul.msk.f32.gmra.mxu0 %vm3780_vm5, %v3767_v47 }
 0x983   :  { %v3807_v39 = vpop.f32.mrf.mxu0 }
 0x984   :  { %v3808_v1 = vadd.f32 %v3807_v39, %v3773_v60 }
 0x986   :  { %3813 = vst [vmem:[%s6842_s16] sm:$0xff] %v3808_v1 }
 0x98b   :  { %v3810_v30 = vpop.f32.mrf.mxu0 }
 0x98c   :  { %v3811_v28 = vadd.f32 %v3810_v30, %v3778_v25 }
 0x98e   :  { %3814 = vst [vmem:[%s6842_s16 + $0x8] sm:$0xff] %v3811_v28 }

</bundles_post_ra>
